<compile_context>
chip_gen: v5e
topology: v5e:2x2
jax: 0.10.0
libtpu: 0.0.40
codegen_flags: <defaults>
</compile_context>

<pallas_src>
import math
import functools

import jax
import jax.numpy as jnp
from jax import lax
from jax.experimental import pallas as pl
from jax.experimental.pallas import tpu as pltpu


def _triple(v):
    if isinstance(v, (tuple, list)):
        assert len(v) == 3
        return tuple(int(x) for x in v)
    return (int(v), int(v), int(v))


def _round_up(x, m):
    return ((x + m - 1) // m) * m


@functools.lru_cache(maxsize=1)
def _vmem_budget_bytes():
    """Generation-aware VMEM budget: ~60% of physical, 64 MiB fallback (v7x-safe)."""
    cap = 64 * 1024 * 1024
    try:
        cap = int(pltpu.get_tpu_info().vmem_capacity_bytes)
    except Exception:
        pass
    return int(min(cap * 0.6, 96 * 1024 * 1024))


def _vmem_limit_bytes(block_bytes):
    """Scoped-VMEM request derived from actual block sizes, capped by the budget."""
    budget = _vmem_budget_bytes()
    est = int(block_bytes * 2.2) + (8 << 20)       # double buffering + epilogue temps
    return int(min(budget, max(est, 32 << 20)))


def _pick_m_tile(m, kpad, np1):
    """Row tile for the spatial GEMM: multiple of 8, VMEM-budgeted, and (when possible)
    >= 2 grid steps so v7x's two TensorCores both get work."""
    budget = _vmem_budget_bytes()
    # bytes per output row in flight: bf16 in (x2 buf) + bf16 out (x2 buf) + f32 dot temp
    row_bytes = 2 * 2 * kpad + 2 * 2 * np1 + 4 * np1
    tm = 2048 if budget > (64 << 20) else 1024
    while tm > 8 and tm * row_bytes > budget // 4:
        tm //= 2
    tm = min(tm, _round_up(m, 8))
    if _round_up(m, tm) // tm < 2 and m > 16:
        tm = max(8, _round_up((m + 1) // 2, 8))
    return max(8, tm)


def _pick_hw_tile(hw, t_pad, to_, np1, np2, kt):
    """HW-row tile for the temporal GEMM: multiple of 8, VMEM-budgeted."""
    budget = _vmem_budget_bytes()
    # bytes per HW row: bf16 input (x2 buf) + bf16 slab + f32 dot temp + f32 out (x2 buf)
    row_bytes = (2 * t_pad * np1 * 2 + to_ * kt * np1 * 2
                 + to_ * np2 * 4 + 2 * to_ * np2 * 4)
    hwb = 1024 if budget > (64 << 20) else 512
    while hwb > 8 and hwb * row_bytes > budget // 2:
        hwb //= 2
    return max(8, min(hwb, _round_up(hw, 8)))


# ---------------------------------------------------------------------------
# Kernel 1: spatial conv as ONE GEMM over the pre-built im2col matrix, with
#           folded bias/BN + ReLU epilogue.
#   cols block : (TM, Kpad)  bf16   (Kpad = round_up(kh*kw*Cin, 128) -> lane-dense)
#   w          : (Kpad, Np1) bf16   (BN scale folded, channels zero-padded to 128-mult)
#   shift      : (1, Np1)    f32    (b*scale + shift, zero-padded)
#   out        : (TM, Np1)   bf16   (lane-dense)
# ---------------------------------------------------------------------------
def _spatial_kernel(cols_ref, w_ref, shift_ref, o_ref):
    acc = jnp.dot(cols_ref[...], w_ref[...], preferred_element_type=jnp.float32)
    o_ref[...] = jnp.maximum(acc + shift_ref[...], 0.0).astype(o_ref.dtype)


def _spatial_conv_pallas(cols, w1, shift1):
    m, kpad = cols.shape
    np1 = w1.shape[1]
    tm = _pick_m_tile(m, kpad, np1)
    m_pad = _round_up(m, tm)
    if m_pad != m:
        cols = jnp.pad(cols, ((0, m_pad - m), (0, 0)))

    block_bytes = (tm * kpad * 2 + tm * np1 * 2 + kpad * np1 * 2 + tm * np1 * 4)
    out = pl.pallas_call(
        _spatial_kernel,
        out_shape=jax.ShapeDtypeStruct((m_pad, np1), jnp.bfloat16),
        grid_spec=pltpu.PrefetchScalarGridSpec(
            num_scalar_prefetch=0,
            grid=(m_pad // tm,),
            in_specs=[
                pl.BlockSpec((tm, kpad), lambda i: (i, 0)),
                pl.BlockSpec((kpad, np1), lambda i: (0, 0)),
                pl.BlockSpec((1, np1), lambda i: (0, 0)),
            ],
            out_specs=pl.BlockSpec((tm, np1), lambda i: (i, 0)),
        ),
        compiler_params=pltpu.CompilerParams(
            dimension_semantics=("parallel",),
            vmem_limit_bytes=_vmem_limit_bytes(block_bytes)),
    )(cols, w1, shift1)
    return out[:m]


# ---------------------------------------------------------------------------
# Kernel 2: temporal conv (kt,1,1) + bias as ONE GEMM with K = kt*Np1.
#   y block : (1, Tpad, HWB, Np1)  bf16  (T already zero-padded in the wrapper)
#   w       : (kt*Np1, Np2)        bf16
#   shift   : (1, Np2)             f32
#   out     : (1, To, HWB, Np2)    f32
# ---------------------------------------------------------------------------
def _temporal_kernel(y_ref, w_ref, shift_ref, o_ref, *, kt, st, to_):
    yb = y_ref[...]                                   # (1, Tpad, HWB, Np1) bf16
    _, t_pad, hwb, np1 = yb.shape
    np2 = o_ref.shape[-1]

    # Pack the kt taps into one lane-aligned slab and issue a single large-K MXU dot;
    # no per-tap f32 accumulator round trips, no zero-pad concatenate.
    taps = []
    for dt in range(kt):
        if st == 1:
            taps.append(yb[:, dt:dt + to_, :, :])
        else:  # general temporal stride (untested path)
            taps.append(lax.slice(yb, (0, dt, 0, 0),
                                  (1, dt + (to_ - 1) * st + 1, hwb, np1),
                                  (1, st, 1, 1)))
    slab = jnp.concatenate(taps, axis=-1)             # (1, To, HWB, kt*Np1)
    a = slab.reshape(to_ * hwb, kt * np1)
    acc = jnp.dot(a, w_ref[...], preferred_element_type=jnp.float32)
    z = acc + shift_ref[...]
    o_ref[...] = z.reshape(1, to_, hwb, np2).astype(o_ref.dtype)


def _temporal_conv_pallas(y, w2, shift2, *, kt, st, pt, to_):
    n, t, hw, np1 = y.shape
    np2 = w2.shape[1]
    t_pad = t + 2 * pt
    hwb = _pick_hw_tile(hw, t_pad, to_, np1, np2, kt)
    hw_pad = _round_up(hw, hwb)

    # One wrapper-side zero pad of the bf16 intermediate replaces the per-grid-step
    # in-kernel concatenate of zero frames (and makes HW tile-divisible).
    if pt > 0 or hw_pad != hw:
        y = jnp.pad(y, ((0, 0), (pt, pt), (0, hw_pad - hw), (0, 0)))

    block_bytes = (t_pad * hwb * np1 * 2 + to_ * hwb * kt * np1 * 2
                   + 2 * to_ * hwb * np2 * 4 + kt * np1 * np2 * 2)
    kernel = functools.partial(_temporal_kernel, kt=kt, st=st, to_=to_)
    out = pl.pallas_call(
        kernel,
        out_shape=jax.ShapeDtypeStruct((n, to_, hw_pad, np2), jnp.float32),
        grid_spec=pltpu.PrefetchScalarGridSpec(
            num_scalar_prefetch=0,
            grid=(n, hw_pad // hwb),
            in_specs=[
                pl.BlockSpec((1, t_pad, hwb, np1), lambda i, j: (i, 0, j, 0)),
                pl.BlockSpec((kt * np1, np2), lambda i, j: (0, 0)),
                pl.BlockSpec((1, np2), lambda i, j: (0, 0)),
            ],
            out_specs=pl.BlockSpec((1, to_, hwb, np2), lambda i, j: (i, 0, j, 0)),
        ),
        compiler_params=pltpu.CompilerParams(
            dimension_semantics=("parallel", "parallel"),
            vmem_limit_bytes=_vmem_limit_bytes(block_bytes)),
    )(y, w2, shift2)
    return out[:, :, :hw, :]


# ---------------------------------------------------------------------------
# Full forward (glue jitted so transpose/pad/im2col/reshape/slice fuse in XLA)
# ---------------------------------------------------------------------------
@functools.partial(jax.jit,
                   static_argnames=("kernel_size", "stride", "padding", "out_channels"))
def _st_conv_forward(x_ncthw, w1, shift1, w2, shift2, *,
                     kernel_size, stride, padding, out_channels):
    kt, kh, kw = kernel_size
    st, sh, sw = stride
    pt, ph, pw = padding
    n, c, t, h, w = x_ncthw.shape
    ho = (h + 2 * ph - kh) // sh + 1
    wo = (w + 2 * pw - kw) // sw + 1
    to = (t + 2 * pt - kt) // st + 1
    kpad, np1 = w1.shape
    np2 = w2.shape[1]
    k_real = kh * kw * c

    # channels-last, bf16, spatially zero-padded input
    x = jnp.transpose(x_ncthw, (0, 2, 3, 4, 1)).astype(jnp.bfloat16)
    xp = jnp.pad(x, ((0, 0), (0, 0), (ph, ph), (pw, pw), (0, 0)))
    xp = xp.reshape(n * t, h + 2 * ph, w + 2 * pw, c)

    # wrapper-side im2col: one lane-dense (M, Kpad) bf16 matrix (K = kh*kw*Cin -> 128x)
    patches = []
    for dh in range(kh):
        for dw in range(kw):
            patches.append(
                xp[:, dh:dh + (ho - 1) * sh + 1:sh, dw:dw + (wo - 1) * sw + 1:sw, :])
    cols = jnp.concatenate(patches, axis=-1).reshape(n * t * ho * wo, k_real)
    if kpad != k_real:
        cols = jnp.pad(cols, ((0, 0), (0, kpad - k_real)))

    # spatial conv + bias/BN + ReLU as one fused GEMM; bf16 lane-dense intermediate
    y = _spatial_conv_pallas(cols, w1, shift1)
    y = y.reshape(n, t, ho * wo, np1)

    # temporal conv + bias as one fused GEMM (K = kt*Np1)
    z = _temporal_conv_pallas(y, w2, shift2, kt=kt, st=st, pt=pt, to_=to)
    z = z.reshape(n, to, ho, wo, np2)[..., :out_channels]
    return jnp.transpose(z, (0, 4, 1, 2, 3))          # back to (N, C, T, H, W)


# ---------------------------------------------------------------------------
# Module (parameters initialized deterministically in-script)
# ---------------------------------------------------------------------------
class SpatioTemporalConvPallas:
    def __init__(self, in_channels, out_channels, kernel_size, stride=1,
                 padding=0, bias=True, *, key):
        kt, kh, kw = _triple(kernel_size)
        st, sh, sw = _triple(stride)
        pt, ph, pw = _triple(padding)
        self.kernel_size = (kt, kh, kw)
        self.stride = (st, sh, sw)
        self.padding = (pt, ph, pw)
        self.in_channels = in_channels
        self.out_channels = out_channels

        intermed = int(math.floor(
            kt * kh * kw * in_channels * out_channels
            / (kh * kw * in_channels + kt * out_channels)))
        self.intermed = intermed
        self.k_spatial = kh * kw * in_channels
        self.kpad = _round_up(self.k_spatial, 128)      # lane-dense contraction
        self.np1 = _round_up(intermed, 128)
        self.np2 = _round_up(out_channels, 128)

        k1, k2, k3, k4, k5, k6 = jax.random.split(key, 6)
        # spatial conv weights, stored (kh, kw, Cin, Cmid)
        self.w_spatial = jax.random.normal(
            k1, (kh, kw, in_channels, intermed), jnp.float32) / math.sqrt(kh * kw * in_channels)
        self.b_spatial = (0.01 * jax.random.normal(k2, (intermed,), jnp.float32)
                          if bias else jnp.zeros((intermed,), jnp.float32))
        # BatchNorm3d params (inference mode: running_mean=0, running_var=1)
        gamma = 1.0 + 0.1 * jax.random.normal(k3, (intermed,), jnp.float32)
        beta = 0.1 * jax.random.normal(k4, (intermed,), jnp.float32)
        eps = 1e-5
        running_mean = jnp.zeros((intermed,), jnp.float32)
        running_var = jnp.ones((intermed,), jnp.float32)
        self.bn_scale = gamma / jnp.sqrt(running_var + eps)
        self.bn_shift = beta - running_mean * self.bn_scale
        # temporal conv weights, stored (kt, Cmid, Cout)
        self.w_temporal = jax.random.normal(
            k5, (kt, intermed, out_channels), jnp.float32) / math.sqrt(kt * intermed)
        self.b_temporal = (0.01 * jax.random.normal(k6, (out_channels,), jnp.float32)
                           if bias else jnp.zeros((out_channels,), jnp.float32))

        # ---- fold bias/BN into the weights, pad K and channels, cast to bf16 ----
        w1_f = (self.w_spatial * self.bn_scale[None, None, None, :]
                ).reshape(self.k_spatial, intermed)
        self.w1 = jnp.pad(w1_f, ((0, self.kpad - self.k_spatial),
                                 (0, self.np1 - intermed))).astype(jnp.bfloat16)
        shift1_f = self.b_spatial * self.bn_scale + self.bn_shift
        self.shift1 = jnp.pad(shift1_f, (0, self.np1 - intermed)
                              ).reshape(1, self.np1).astype(jnp.float32)

        w2_f = jnp.pad(self.w_temporal,
                       ((0, 0), (0, self.np1 - intermed), (0, self.np2 - out_channels)))
        self.w2 = w2_f.reshape(kt * self.np1, self.np2).astype(jnp.bfloat16)
        self.shift2 = jnp.pad(self.b_temporal, (0, self.np2 - out_channels)
                              ).reshape(1, self.np2).astype(jnp.float32)

    # ----- forward (Pallas) -------------------------------------------------
    def __call__(self, x_ncthw):
        assert x_ncthw.shape[1] == self.in_channels
        return _st_conv_forward(
            x_ncthw, self.w1, self.shift1, self.w2, self.shift2,
            kernel_size=self.kernel_size, stride=self.stride,
            padding=self.padding, out_channels=self.out_channels)

    # ----- pure-JAX reference (for correctness check only) ------------------
    def reference(self, x_ncthw):
        kt, kh, kw = self.kernel_size
        st, sh, sw = self.stride
        pt, ph, pw = self.padding
        w_s = jnp.transpose(self.w_spatial, (3, 2, 0, 1))[:, :, None, :, :]  # (Cmid,Cin,1,kh,kw)
        y = lax.conv_general_dilated(
            x_ncthw, w_s, (1, sh, sw),
            [(0, 0), (ph, ph), (pw, pw)],
            dimension_numbers=('NCDHW', 'OIDHW', 'NCDHW'),
            precision=lax.Precision.HIGHEST)
        y = y + self.b_spatial[None, :, None, None, None]
        y = y * self.bn_scale[None, :, None, None, None] + self.bn_shift[None, :, None, None, None]
        y = jnp.maximum(y, 0.0)
        w_t = jnp.transpose(self.w_temporal, (2, 1, 0))[:, :, :, None, None]  # (Cout,Cmid,kt,1,1)
        z = lax.conv_general_dilated(
            y, w_t, (st, 1, 1),
            [(pt, pt), (0, 0), (0, 0)],
            dimension_numbers=('NCDHW', 'OIDHW', 'NCDHW'),
            precision=lax.Precision.HIGHEST)
        return z + self.b_temporal[None, :, None, None, None]


if __name__ == "__main__":
    key = jax.random.PRNGKey(0)
    k_params, k_input = jax.random.split(key)

    # small shapes consistent with the module: (N, C, T, H, W)
    N, Cin, T, H, W = 2, 4, 8, 16, 16
    Cout = 8
    module = SpatioTemporalConvPallas(Cin, Cout, kernel_size=3, stride=1,
                                      padding=1, bias=True, key=k_params)

    x = jax.random.normal(k_input, (N, Cin, T, H, W), jnp.float32)

    out = jax.block_until_ready(module(x))
    assert out.shape == (N, Cout, T, H, W), out.shape

    ref = jax.block_until_ready(module.reference(x))
    max_err = float(jnp.max(jnp.abs(out - ref)))
    assert jnp.allclose(out, ref, atol=5e-2, rtol=5e-2), max_err

    print("KERNEL_OK")
</pallas_src>

<mosaic_0001>
module attributes {stable_mosaic.version = 11 : i64} {
  func.func @_spatial_kernel(%arg0: i32, %arg1: memref<1024x128xbf16, #tpu.memory_space<vmem>>, %arg2: memref<128x128xbf16, #tpu.memory_space<vmem>>, %arg3: memref<1x128xf32, #tpu.memory_space<vmem>>, %arg4: memref<1024x128xbf16, #tpu.memory_space<vmem>>) attributes {dimension_semantics = [#tpu.dimension_semantics<parallel>], iteration_bounds = array<i64: 4>, scalar_prefetch = 0 : i64, scratch_operands = 0 : i64, tpu.core_type = #tpu.core_type<tc>, window_params = [{transform_indices = @transform_0, window_bounds = array<i64: 1024, 128>}, {pipeline_mode = #tpu.pipeline_mode<synchronous>, transform_indices = @transform_1, window_bounds = array<i64: 128, 128>}, {pipeline_mode = #tpu.pipeline_mode<synchronous>, transform_indices = @transform_2, window_bounds = array<i64: 1, 128>}, {transform_indices = @transform_3, window_bounds = array<i64: 1024, 128>}]} {
    %c0 = arith.constant 0 : index
    %c0_0 = arith.constant 0 : index
    %0 = vector.load %arg1[%c0, %c0_0] : memref<1024x128xbf16, #tpu.memory_space<vmem>>, vector<1024x128xbf16>
    %c0_1 = arith.constant 0 : index
    %c0_2 = arith.constant 0 : index
    %1 = vector.load %arg2[%c0_1, %c0_2] : memref<128x128xbf16, #tpu.memory_space<vmem>>, vector<128x128xbf16>
    %cst = arith.constant dense<0.000000e+00> : vector<1024x128xf32>
    %2 = tpu.matmul %0, %1, %cst {dimension_numbers = #tpu.dot_dimension_numbers<[1], [0], [0], [1], [0, 0, 1, 1], [], []>} : vector<1024x128xbf16>, vector<128x128xbf16>, vector<1024x128xf32> -> vector<1024x128xf32>
    %c0_3 = arith.constant 0 : index
    %c0_4 = arith.constant 0 : index
    %3 = vector.load %arg3[%c0_3, %c0_4] : memref<1x128xf32, #tpu.memory_space<vmem>>, vector<1x128xf32>
    %4 = vector.broadcast %3 : vector<1x128xf32> to vector<1024x128xf32>
    %5 = arith.addf %2, %4 : vector<1024x128xf32>
    %cst_5 = arith.constant 0.000000e+00 : f32
    %6 = vector.broadcast %cst_5 : f32 to vector<1024x128xf32>
    %7 = arith.maximumf %5, %6 : vector<1024x128xf32>
    %8 = arith.truncf %7 : vector<1024x128xf32> to vector<1024x128xbf16>
    %c0_6 = arith.constant 0 : index
    %c0_7 = arith.constant 0 : index
    %9 = vector.load %arg4[%c0_6, %c0_7] : memref<1024x128xbf16, #tpu.memory_space<vmem>>, vector<1024x128xbf16>
    tpu.vector_store %arg4[%c0_6, %c0_7], %8 {strides = array<i32>} : memref<1024x128xbf16, #tpu.memory_space<vmem>>, vector<1024x128xbf16>,
    return
  }
  func.func @transform_0(%arg0: i32) -> (i32, i32) {
    %c0_i32 = arith.constant 0 : i32
    %c0_i32_0 = arith.constant 0 : i32
    return %arg0, %c0_i32 : i32, i32
  }
  func.func @transform_1(%arg0: i32) -> (i32, i32) {
    %c0_i32 = arith.constant 0 : i32
    %c0_i32_0 = arith.constant 0 : i32
    %c0_i32_1 = arith.constant 0 : i32
    return %c0_i32, %c0_i32_0 : i32, i32
  }
  func.func @transform_2(%arg0: i32) -> (i32, i32) {
    %c0_i32 = arith.constant 0 : i32
    %c0_i32_0 = arith.constant 0 : i32
    %c0_i32_1 = arith.constant 0 : i32
    return %c0_i32, %c0_i32_0 : i32, i32
  }
  func.func @transform_3(%arg0: i32) -> (i32, i32) {
    %c0_i32 = arith.constant 0 : i32
    %c0_i32_0 = arith.constant 0 : i32
    return %arg0, %c0_i32 : i32, i32
  }
}

module attributes {stable_mosaic.version = 11 : i64} {
  func.func @_temporal_kernel(%arg0: i32, %arg1: i32, %arg2: memref<1x10x256x128xbf16, #tpu.memory_space<vmem>>, %arg3: memref<384x128xbf16, #tpu.memory_space<vmem>>, %arg4: memref<1x128xf32, #tpu.memory_space<vmem>>, %arg5: memref<1x8x256x128xf32, #tpu.memory_space<vmem>>) attributes {dimension_semantics = [#tpu.dimension_semantics<parallel>, #tpu.dimension_semantics<parallel>], iteration_bounds = array<i64: 2, 1>, scalar_prefetch = 0 : i64, scratch_operands = 0 : i64, tpu.core_type = #tpu.core_type<tc>, window_params = [{transform_indices = @transform_0, window_bounds = array<i64: 1, 10, 256, 128>}, {pipeline_mode = #tpu.pipeline_mode<synchronous>, transform_indices = @transform_1, window_bounds = array<i64: 384, 128>}, {pipeline_mode = #tpu.pipeline_mode<synchronous>, transform_indices = @transform_2, window_bounds = array<i64: 1, 128>}, {transform_indices = @transform_3, window_bounds = array<i64: 1, 8, 256, 128>}]} {
    %c0 = arith.constant 0 : index
    %c0_0 = arith.constant 0 : index
    %c0_1 = arith.constant 0 : index
    %c0_2 = arith.constant 0 : index
    %0 = vector.load %arg2[%c0, %c0_0, %c0_1, %c0_2] : memref<1x10x256x128xbf16, #tpu.memory_space<vmem>>, vector<1x10x256x128xbf16>
    %1 = vector.extract_strided_slice %0 {offsets = [0, 0, 0, 0], sizes = [1, 8, 256, 128], strides = [1, 1, 1, 1]} : vector<1x10x256x128xbf16> to vector<1x8x256x128xbf16>
    %2 = vector.extract_strided_slice %0 {offsets = [0, 1, 0, 0], sizes = [1, 8, 256, 128], strides = [1, 1, 1, 1]} : vector<1x10x256x128xbf16> to vector<1x8x256x128xbf16>
    %3 = vector.extract_strided_slice %0 {offsets = [0, 2, 0, 0], sizes = [1, 8, 256, 128], strides = [1, 1, 1, 1]} : vector<1x10x256x128xbf16> to vector<1x8x256x128xbf16>
    %4 = tpu.concatenate %1, %2, %3 in 3 : vector<1x8x256x128xbf16>, vector<1x8x256x128xbf16>, vector<1x8x256x128xbf16> -> vector<1x8x256x384xbf16>
    %5 = vector.shape_cast %4 : vector<1x8x256x384xbf16> to vector<2048x384xbf16>
    %c0_3 = arith.constant 0 : index
    %c0_4 = arith.constant 0 : index
    %6 = vector.load %arg3[%c0_3, %c0_4] : memref<384x128xbf16, #tpu.memory_space<vmem>>, vector<384x128xbf16>
    %cst = arith.constant dense<0.000000e+00> : vector<2048x128xf32>
    %7 = tpu.matmul %5, %6, %cst {dimension_numbers = #tpu.dot_dimension_numbers<[1], [0], [0], [1], [0, 0, 1, 1], [], []>} : vector<2048x384xbf16>, vector<384x128xbf16>, vector<2048x128xf32> -> vector<2048x128xf32>
    %c0_5 = arith.constant 0 : index
    %c0_6 = arith.constant 0 : index
    %8 = vector.load %arg4[%c0_5, %c0_6] : memref<1x128xf32, #tpu.memory_space<vmem>>, vector<1x128xf32>
    %9 = vector.broadcast %8 : vector<1x128xf32> to vector<2048x128xf32>
    %10 = arith.addf %7, %9 : vector<2048x128xf32>
    %11 = vector.shape_cast %10 : vector<2048x128xf32> to vector<1x8x256x128xf32>
    %c0_7 = arith.constant 0 : index
    %c0_8 = arith.constant 0 : index
    %c0_9 = arith.constant 0 : index
    %c0_10 = arith.constant 0 : index
    %12 = vector.load %arg5[%c0_7, %c0_8, %c0_9, %c0_10] : memref<1x8x256x128xf32, #tpu.memory_space<vmem>>, vector<1x8x256x128xf32>
    tpu.vector_store %arg5[%c0_7, %c0_8, %c0_9, %c0_10], %11 {strides = array<i32>} : memref<1x8x256x128xf32, #tpu.memory_space<vmem>>, vector<1x8x256x128xf32>,
    return
  }
  func.func @transform_0(%arg0: i32, %arg1: i32) -> (i32, i32, i32, i32) {
    %c0_i32 = arith.constant 0 : i32
    %c0_i32_0 = arith.constant 0 : i32
    %c0_i32_1 = arith.constant 0 : i32
    return %arg0, %c0_i32, %arg1, %c0_i32_0 : i32, i32, i32, i32
  }
  func.func @transform_1(%arg0: i32, %arg1: i32) -> (i32, i32) {
    %c0_i32 = arith.constant 0 : i32
    %c0_i32_0 = arith.constant 0 : i32
    %c0_i32_1 = arith.constant 0 : i32
    return %c0_i32, %c0_i32_0 : i32, i32
  }
  func.func @transform_2(%arg0: i32, %arg1: i32) -> (i32, i32) {
    %c0_i32 = arith.constant 0 : i32
    %c0_i32_0 = arith.constant 0 : i32
    %c0_i32_1 = arith.constant 0 : i32
    return %c0_i32, %c0_i32_0 : i32, i32
  }
  func.func @transform_3(%arg0: i32, %arg1: i32) -> (i32, i32, i32, i32) {
    %c0_i32 = arith.constant 0 : i32
    %c0_i32_0 = arith.constant 0 : i32
    %c0_i32_1 = arith.constant 0 : i32
    return %arg0, %c0_i32, %arg1, %c0_i32_0 : i32, i32, i32, i32
  }
}

</mosaic_0001>

<bundles_post_ra>
// kernel: _st_conv_forward.2
= control target key start
LH: loop header
LB: loop body
LE: loop exit
PB: predicated region body
PF: predicated region fallthrough
CT: control target
= control target key end

     0   :  { %s2339_s12 = smov 0   ;;  %s2641_s0 = inlined_call_operand.vmem [shape: bf16[4096,128], index: 0, kind: input, shape index: {}]   ;;  %s2642_s1 = inlined_call_operand.vmem [shape: bf16[128,128], index: 1, kind: input, shape index: {}]   ;;  %s2643_s2 = inlined_call_operand.vmem [shape: f32[1,128], index: 2, kind: input, shape index: {}]   ;;  %s2644_s3 = inlined_call_operand.vmem [shape: bf16[4096,128], index: 3, kind: output, shape index: {}]  }
   0x1 LB: > { %s1523_s13 = sadd.s32 4294967295, %s2317_s12   ;;  %p1527_p0 = scmp.ge.s32.totalorder %s2317_s12, 1  ;;  %s2317_s12 = sphi %s2339_s12, %s13_s12  }
   0x2   : > { %p138_p1 = scmp.lt.s32.totalorder %s2317_s12, 5 }
   0x4   : > { %p139_p2 = pnand %p1527_p0, %p138_p1 }
   0x5   : > { %s1528_s22 = sshll.u32 (!%p139_p2), %s1523_s13, 7 }
   0x6   : > { %142 = sbr.rel (%p139_p2) target bundleno = 432 (0x1b0), region = 32  ;;  %p163_p3 = scmp.lt.s32.totalorder (!%p139_p2), %s1528_s22, 511 }
   0xb   : > { %v1893_v0 = vld [vmem:[%s2642_s1 + $0x38] sm:$0xff]  ;;  %v1892_v1 = vld [vmem:[%s2642_s1 + $0x30] sm:$0xff]  ;;  %v1891_v2 = vld [vmem:[%s2642_s1 + $0x28] sm:$0xff]  ;;  %s2646_s22 = smov (!%p163_p3, %s1528_s22), 511 }
   0xc   : > { %754 = vmatpush.bf16.msra.mxu0 %v1893_v0  ;;  %2277 = vmatpush.bf16.msra.mxu1 %v1893_v0  ;;  %v1890_v3 = vld [vmem:[%s2642_s1 + $0x20] sm:$0xff]  ;;  %v1889_v4 = vld [vmem:[%s2642_s1 + $0x18] sm:$0xff]  ;;  %v1888_v5 = vld [vmem:[%s2642_s1 + $0x10] sm:$0xff]  ;;  %s1529_s29 = sshll.u32 %s2646_s22, 2 }
   0xd   : > { %2278 = vmatpush.bf16.msra.mxu2 %v1893_v0  ;;  %2279 = vmatpush.bf16.msra.mxu3 %v1893_v0  ;;  %v1887_v6 = vld [vmem:[%s2642_s1 + $0x8] sm:$0xff]  ;;  %v1886_v7 = vld [vmem:[%s2642_s1] sm:$0xff]  ;;  %s2379_s7 = scalar_lea.vmem %s2641_s0, %s1529_s29  ;;  %s2431_s13 = scalar_lea.vmem %s2644_s3, %s1529_s29 }
   0xe   : > { %v1822_v8 = vld [vmem:[%s2379_s7] sm:$0xff]  ;;  %v1823_v12 = vld [vmem:[%s2379_s7 + $0x8] sm:$0xff]  ;;  %v1824_v16 = vld [vmem:[%s2379_s7 + $0x10] sm:$0xff] }
   0xf   : > { %v1838_v9 = vld [vmem:[%s2379_s7 + $0x80] sm:$0xff]  ;;  %v1839_v13 = vld [vmem:[%s2379_s7 + $0x88] sm:$0xff]  ;;  %v1840_v17 = vld [vmem:[%s2379_s7 + $0x90] sm:$0xff] }
  0x10   : > { %755 = vmatpush.bf16.msra.mxu0 %v1892_v1  ;;  %2280 = vmatpush.bf16.msra.mxu1 %v1892_v1  ;;  %v1854_v10 = vld [vmem:[%s2379_s7 + $0x100] sm:$0xff]  ;;  %v1855_v14 = vld [vmem:[%s2379_s7 + $0x108] sm:$0xff]  ;;  %v1856_v18 = vld [vmem:[%s2379_s7 + $0x110] sm:$0xff] }
  0x11   : > { %2281 = vmatpush.bf16.msra.mxu2 %v1892_v1  ;;  %2282 = vmatpush.bf16.msra.mxu3 %v1892_v1  ;;  %v1870_v11 = vld [vmem:[%s2379_s7 + $0x180] sm:$0xff]  ;;  %v1871_v15 = vld [vmem:[%s2379_s7 + $0x188] sm:$0xff]  ;;  %v1872_v19 = vld [vmem:[%s2379_s7 + $0x190] sm:$0xff] }
  0x12   : > { %v1825_v20 = vld [vmem:[%s2379_s7 + $0x18] sm:$0xff]  ;;  %v1826_v24 = vld [vmem:[%s2379_s7 + $0x20] sm:$0xff]  ;;  %v1827_v28 = vld [vmem:[%s2379_s7 + $0x28] sm:$0xff] }
  0x13   : > { %v1841_v21 = vld [vmem:[%s2379_s7 + $0x98] sm:$0xff]  ;;  %v1842_v25 = vld [vmem:[%s2379_s7 + $0xa0] sm:$0xff]  ;;  %v1843_v29 = vld [vmem:[%s2379_s7 + $0xa8] sm:$0xff] }
  0x14   : > { %756 = vmatpush.bf16.msra.mxu0 %v1891_v2  ;;  %2283 = vmatpush.bf16.msra.mxu1 %v1891_v2  ;;  %v1857_v22 = vld [vmem:[%s2379_s7 + $0x118] sm:$0xff]  ;;  %v1858_v26 = vld [vmem:[%s2379_s7 + $0x120] sm:$0xff]  ;;  %v1859_v30 = vld [vmem:[%s2379_s7 + $0x128] sm:$0xff] }
  0x15   : > { %2284 = vmatpush.bf16.msra.mxu2 %v1891_v2  ;;  %2285 = vmatpush.bf16.msra.mxu3 %v1891_v2  ;;  %v1873_v23 = vld [vmem:[%s2379_s7 + $0x198] sm:$0xff]  ;;  %v1874_v27 = vld [vmem:[%s2379_s7 + $0x1a0] sm:$0xff]  ;;  %v1875_v31 = vld [vmem:[%s2379_s7 + $0x1a8] sm:$0xff] }
  0x16   : > { %v1828_v32 = vld [vmem:[%s2379_s7 + $0x30] sm:$0xff]  ;;  %v1829_v36 = vld [vmem:[%s2379_s7 + $0x38] sm:$0xff]  ;;  %v1830_v40 = vld [vmem:[%s2379_s7 + $0x40] sm:$0xff] }
  0x17   : > { %v1844_v33 = vld [vmem:[%s2379_s7 + $0xb0] sm:$0xff]  ;;  %v1845_v37 = vld [vmem:[%s2379_s7 + $0xb8] sm:$0xff]  ;;  %v1846_v41 = vld [vmem:[%s2379_s7 + $0xc0] sm:$0xff] }
  0x18   : > { %757 = vmatpush.bf16.msra.mxu0 %v1890_v3  ;;  %2286 = vmatpush.bf16.msra.mxu1 %v1890_v3  ;;  %v1860_v34 = vld [vmem:[%s2379_s7 + $0x130] sm:$0xff]  ;;  %v1861_v38 = vld [vmem:[%s2379_s7 + $0x138] sm:$0xff]  ;;  %v1862_v44 = vld [vmem:[%s2379_s7 + $0x140] sm:$0xff] }
  0x19   : > { %2287 = vmatpush.bf16.msra.mxu2 %v1890_v3  ;;  %2288 = vmatpush.bf16.msra.mxu3 %v1890_v3  ;;  %v1876_v35 = vld [vmem:[%s2379_s7 + $0x1b0] sm:$0xff]  ;;  %v1877_v39 = vld [vmem:[%s2379_s7 + $0x1b8] sm:$0xff]  ;;  %v1878_v45 = vld [vmem:[%s2379_s7 + $0x1c0] sm:$0xff] }
  0x1a   : > { %v2420_v46 = vld [vmem:[%s2643_s2] ss:$0 sm:$0xff]  ;;  %v1831_v1 = vld [vmem:[%s2379_s7 + $0x48] sm:$0xff] }
  0x1b   : > { %v1847_v2 = vld [vmem:[%s2379_s7 + $0xc8] sm:$0xff] }
  0x1c   : > { %758 = vmatpush.bf16.msra.mxu0 %v1889_v4  ;;  %2289 = vmatpush.bf16.msra.mxu1 %v1889_v4 }
  0x1d   : > { %2290 = vmatpush.bf16.msra.mxu2 %v1889_v4  ;;  %2291 = vmatpush.bf16.msra.mxu3 %v1889_v4 }
  0x20   : > { %759 = vmatpush.bf16.msra.mxu0 %v1888_v5  ;;  %2292 = vmatpush.bf16.msra.mxu1 %v1888_v5 }
  0x21   : > { %2293 = vmatpush.bf16.msra.mxu2 %v1888_v5  ;;  %2294 = vmatpush.bf16.msra.mxu3 %v1888_v5 }
  0x24   : > { %760 = vmatpush.bf16.msra.mxu0 %v1887_v6  ;;  %2295 = vmatpush.bf16.msra.mxu1 %v1887_v6 }
  0x25   : > { %2296 = vmatpush.bf16.msra.mxu2 %v1887_v6  ;;  %2297 = vmatpush.bf16.msra.mxu3 %v1887_v6 }
  0x28   : > { %761 = vmatpush.bf16.msra.mxu0 %v1886_v7  ;;  %2298 = vmatpush.bf16.msra.mxu1 %v1886_v7 }
  0x29   : > { %2299 = vmatpush.bf16.msra.mxu2 %v1886_v7  ;;  %2300 = vmatpush.bf16.msra.mxu3 %v1886_v7  ;;  %v1863_v7 = vld [vmem:[%s2379_s7 + $0x148] sm:$0xff] }
  0x2b   : > { %762 = vmatmul.bf16.vlgmr.msra.gmra.mxu0 %v1822_v8  ;;  %842 = vmatmul.bf16.vlgmr.msra.gmra.mxu1 %v1838_v9  ;;  %v1879_v8 = vld [vmem:[%s2379_s7 + $0x1c8] sm:$0xff] }
  0x2c   : > { %922 = vmatmul.bf16.vlgmr.msra.gmra.mxu2 %v1854_v10  ;;  %1002 = vmatmul.bf16.vlgmr.msra.gmra.mxu3 %v1870_v11 }
  0x3b   : > { %767 = vmatmul.bf16.gmra.mxu0 %v1823_v12  ;;  %847 = vmatmul.bf16.gmra.mxu1 %v1839_v13 }
  0x3c   : > { %927 = vmatmul.bf16.gmra.mxu2 %v1855_v14  ;;  %1007 = vmatmul.bf16.gmra.mxu3 %v1871_v15 }
  0x4b   : > { %772 = vmatmul.bf16.gmra.mxu0 %v1824_v16  ;;  %852 = vmatmul.bf16.gmra.mxu1 %v1840_v17 }
  0x4c   : > { %932 = vmatmul.bf16.gmra.mxu2 %v1856_v18  ;;  %1012 = vmatmul.bf16.gmra.mxu3 %v1872_v19 }
  0x5b   : > { %777 = vmatmul.bf16.gmra.mxu0 %v1825_v20  ;;  %857 = vmatmul.bf16.gmra.mxu1 %v1841_v21 }
  0x5c   : > { %937 = vmatmul.bf16.gmra.mxu2 %v1857_v22  ;;  %1017 = vmatmul.bf16.gmra.mxu3 %v1873_v23 }
  0x6b   : > { %782 = vmatmul.bf16.gmra.mxu0 %v1826_v24  ;;  %862 = vmatmul.bf16.gmra.mxu1 %v1842_v25 }
  0x6c   : > { %942 = vmatmul.bf16.gmra.mxu2 %v1858_v26  ;;  %1022 = vmatmul.bf16.gmra.mxu3 %v1874_v27 }
  0x7b   : > { %787 = vmatmul.bf16.gmra.mxu0 %v1827_v28  ;;  %867 = vmatmul.bf16.gmra.mxu1 %v1843_v29 }
  0x7c   : > { %947 = vmatmul.bf16.gmra.mxu2 %v1859_v30  ;;  %1027 = vmatmul.bf16.gmra.mxu3 %v1875_v31 }
  0x8b   : > { %792 = vmatmul.bf16.gmra.mxu0 %v1828_v32  ;;  %872 = vmatmul.bf16.gmra.mxu1 %v1844_v33  ;;  %v1832_v33 = vld [vmem:[%s2379_s7 + $0x50] sm:$0xff] }
  0x8c   : > { %952 = vmatmul.bf16.gmra.mxu2 %v1860_v34  ;;  %1032 = vmatmul.bf16.gmra.mxu3 %v1876_v35  ;;  %v1848_v34 = vld [vmem:[%s2379_s7 + $0xd0] sm:$0xff] }
  0x9b   : > { %797 = vmatmul.bf16.gmra.mxu0 %v1829_v36  ;;  %877 = vmatmul.bf16.gmra.mxu1 %v1845_v37 }
  0x9c   : > { %957 = vmatmul.bf16.gmra.mxu2 %v1861_v38  ;;  %1037 = vmatmul.bf16.gmra.mxu3 %v1877_v39  ;;  %v1864_v39 = vld [vmem:[%s2379_s7 + $0x150] sm:$0xff] }
  0xa8   : > { %v763_v42 = vpop.f32.mrf.mxu0  ;;  %v843_v43 = vpop.f32.mrf.mxu1 }
  0xa9   : > { %v764_v47 = vadd.f32 %v2420_v46, %v763_v42  ;;  %v844_v48 = vadd.f32 %v2420_v46, %v843_v43 }
  0xab   : > { %802 = vmatmul.bf16.gmra.mxu0 %v1830_v40  ;;  %882 = vmatmul.bf16.gmra.mxu1 %v1846_v41  ;;  %v1083_v55 = vmax.f32 %v764_v47, 0.0  ;;  %v1115_v56 = vmax.f32 %v844_v48, 0.0  ;;  %v1880_v40 = vld [vmem:[%s2379_s7 + $0x1d0] sm:$0xff] }
  0xac   : > { %962 = vmatmul.bf16.gmra.mxu2 %v1862_v44  ;;  %1042 = vmatmul.bf16.gmra.mxu3 %v1878_v45 }
  0xaf   : > { %v923_v49 = vpop.f32.mrf.mxu2  ;;  %v1003_v50 = vpop.f32.mrf.mxu3 }
  0xb0   : > { %v765_v51 = vpop.f32.mrf.mxu0  ;;  %v845_v52 = vpop.f32.mrf.mxu1  ;;  %v924_v61 = vadd.f32 %v2420_v46, %v923_v49  ;;  %v1004_v62 = vadd.f32 %v2420_v46, %v1003_v50 }
  0xb1   : > { %v766_v53 = vadd.f32 %v2420_v46, %v765_v51  ;;  %v846_v54 = vadd.f32 %v2420_v46, %v845_v52 }
  0xb2   : > { %v1147_v9 = vmax.f32 %v924_v61, 0.0  ;;  %v1179_v10 = vmax.f32 %v1004_v62, 0.0 }
  0xb3   : > { %v1084_v57 = vmax.f32 %v766_v53, 0.0  ;;  %v1116_v58 = vmax.f32 %v846_v54, 0.0 }
  0xb5   : > { %v1897_v59 = vpack.c.bf16 %v1084_v57, %v1083_v55  ;;  %v1977_v60 = vpack.c.bf16 %v1116_v58, %v1115_v56 }
  0xb7   : > { %1898 = vst [vmem:[%s2431_s13] sm:$0xff] %v1897_v59   ;;  %v925_v63 = vpop.f32.mrf.mxu2  ;;  %v1005_v0 = vpop.f32.mrf.mxu3 }
  0xb8   : > { %2229 = vst [vmem:[%s2431_s13 + $0x80] sm:$0xff] %v1977_v60   ;;  %v926_v3 = vadd.f32 %v2420_v46, %v925_v63  ;;  %v1006_v4 = vadd.f32 %v2420_v46, %v1005_v0  ;;  %v768_v5 = vpop.f32.mrf.mxu0  ;;  %v848_v6 = vpop.f32.mrf.mxu1 }
  0xb9   : > { %v769_v15 = vadd.f32 %v2420_v46, %v768_v5  ;;  %v849_v16 = vadd.f32 %v2420_v46, %v848_v6 }
  0xba   : > { %v1148_v11 = vmax.f32 %v926_v3, 0.0  ;;  %v1180_v12 = vmax.f32 %v1006_v4, 0.0  ;;  %v1849_v3 = vld [vmem:[%s2379_s7 + $0xd8] sm:$0xff] }
  0xbb   : > { %807 = vmatmul.bf16.gmra.mxu0 %v1831_v1  ;;  %887 = vmatmul.bf16.gmra.mxu1 %v1847_v2  ;;  %v1085_v23 = vmax.f32 %v769_v15, 0.0  ;;  %v1117_v24 = vmax.f32 %v849_v16, 0.0  ;;  %v1833_v2 = vld [vmem:[%s2379_s7 + $0x58] sm:$0xff] }
  0xbc   : > { %v2057_v13 = vpack.c.bf16 %v1148_v11, %v1147_v9  ;;  %v2137_v14 = vpack.c.bf16 %v1180_v12, %v1179_v10  ;;  %967 = vmatmul.bf16.gmra.mxu2 %v1863_v7  ;;  %1047 = vmatmul.bf16.gmra.mxu3 %v1879_v8  ;;  %v1865_v8 = vld [vmem:[%s2379_s7 + $0x158] sm:$0xff] }
  0xbd   : > { %v1881_v9 = vld [vmem:[%s2379_s7 + $0x1d8] sm:$0xff] }
  0xbe   : > { %2245 = vst [vmem:[%s2431_s13 + $0x100] sm:$0xff] %v2057_v13  }
  0xbf   : > { %2261 = vst [vmem:[%s2431_s13 + $0x180] sm:$0xff] %v2137_v14   ;;  %v928_v17 = vpop.f32.mrf.mxu2  ;;  %v1008_v18 = vpop.f32.mrf.mxu3 }
  0xc0   : > { %v770_v19 = vpop.f32.mrf.mxu0  ;;  %v850_v20 = vpop.f32.mrf.mxu1  ;;  %v929_v29 = vadd.f32 %v2420_v46, %v928_v17  ;;  %v1009_v30 = vadd.f32 %v2420_v46, %v1008_v18 }
  0xc1   : > { %v771_v21 = vadd.f32 %v2420_v46, %v770_v19  ;;  %v851_v22 = vadd.f32 %v2420_v46, %v850_v20 }
  0xc2   : > { %v1149_v41 = vmax.f32 %v929_v29, 0.0  ;;  %v1181_v42 = vmax.f32 %v1009_v30, 0.0 }
  0xc3   : > { %v1086_v25 = vmax.f32 %v771_v21, 0.0  ;;  %v1118_v26 = vmax.f32 %v851_v22, 0.0 }
  0xc5   : > { %v1902_v27 = vpack.c.bf16 %v1086_v25, %v1085_v23  ;;  %v1982_v28 = vpack.c.bf16 %v1118_v26, %v1117_v24 }
  0xc7   : > { %2214 = vst [vmem:[%s2431_s13 + $0x8] sm:$0xff] %v1902_v27   ;;  %v930_v31 = vpop.f32.mrf.mxu2  ;;  %v1010_v32 = vpop.f32.mrf.mxu3 }
  0xc8   : > { %2230 = vst [vmem:[%s2431_s13 + $0x88] sm:$0xff] %v1982_v28   ;;  %v931_v35 = vadd.f32 %v2420_v46, %v930_v31  ;;  %v1011_v36 = vadd.f32 %v2420_v46, %v1010_v32  ;;  %v773_v37 = vpop.f32.mrf.mxu0  ;;  %v853_v38 = vpop.f32.mrf.mxu1 }
  0xc9   : > { %v774_v48 = vadd.f32 %v2420_v46, %v773_v37  ;;  %v854_v49 = vadd.f32 %v2420_v46, %v853_v38 }
  0xca   : > { %v1150_v43 = vmax.f32 %v931_v35, 0.0  ;;  %v1182_v44 = vmax.f32 %v1011_v36, 0.0  ;;  %v1850_v35 = vld [vmem:[%s2379_s7 + $0xe0] sm:$0xff] }
  0xcb   : > { %812 = vmatmul.bf16.gmra.mxu0 %v1832_v33  ;;  %892 = vmatmul.bf16.gmra.mxu1 %v1848_v34  ;;  %v1087_v56 = vmax.f32 %v774_v48, 0.0  ;;  %v1119_v57 = vmax.f32 %v854_v49, 0.0  ;;  %v1834_v34 = vld [vmem:[%s2379_s7 + $0x60] sm:$0xff] }
  0xcc   : > { %v2062_v45 = vpack.c.bf16 %v1150_v43, %v1149_v41  ;;  %v2142_v47 = vpack.c.bf16 %v1182_v44, %v1181_v42  ;;  %972 = vmatmul.bf16.gmra.mxu2 %v1864_v39  ;;  %1052 = vmatmul.bf16.gmra.mxu3 %v1880_v40  ;;  %v1866_v40 = vld [vmem:[%s2379_s7 + $0x160] sm:$0xff] }
  0xcd   : > { %v1882_v41 = vld [vmem:[%s2379_s7 + $0x1e0] sm:$0xff] }
  0xce   : > { %2246 = vst [vmem:[%s2431_s13 + $0x108] sm:$0xff] %v2062_v45  }
  0xcf   : > { %2262 = vst [vmem:[%s2431_s13 + $0x188] sm:$0xff] %v2142_v47   ;;  %v933_v50 = vpop.f32.mrf.mxu2  ;;  %v1013_v51 = vpop.f32.mrf.mxu3 }
  0xd0   : > { %v775_v52 = vpop.f32.mrf.mxu0  ;;  %v855_v53 = vpop.f32.mrf.mxu1  ;;  %v934_v62 = vadd.f32 %v2420_v46, %v933_v50  ;;  %v1014_v63 = vadd.f32 %v2420_v46, %v1013_v51 }
  0xd1   : > { %v776_v54 = vadd.f32 %v2420_v46, %v775_v52  ;;  %v856_v55 = vadd.f32 %v2420_v46, %v855_v53 }
  0xd2   : > { %v1151_v10 = vmax.f32 %v934_v62, 0.0  ;;  %v1183_v11 = vmax.f32 %v1014_v63, 0.0 }
  0xd3   : > { %v1088_v58 = vmax.f32 %v776_v54, 0.0  ;;  %v1120_v59 = vmax.f32 %v856_v55, 0.0 }
  0xd5   : > { %v1907_v60 = vpack.c.bf16 %v1088_v58, %v1087_v56  ;;  %v1987_v61 = vpack.c.bf16 %v1120_v59, %v1119_v57 }
  0xd7   : > { %2215 = vst [vmem:[%s2431_s13 + $0x10] sm:$0xff] %v1907_v60   ;;  %v935_v0 = vpop.f32.mrf.mxu2  ;;  %v1015_v1 = vpop.f32.mrf.mxu3 }
  0xd8   : > { %2231 = vst [vmem:[%s2431_s13 + $0x90] sm:$0xff] %v1987_v61   ;;  %v936_v4 = vadd.f32 %v2420_v46, %v935_v0  ;;  %v1016_v5 = vadd.f32 %v2420_v46, %v1015_v1  ;;  %v778_v6 = vpop.f32.mrf.mxu0  ;;  %v858_v7 = vpop.f32.mrf.mxu1 }
  0xd9   : > { %v779_v16 = vadd.f32 %v2420_v46, %v778_v6  ;;  %v859_v17 = vadd.f32 %v2420_v46, %v858_v7 }
  0xda   : > { %v1152_v12 = vmax.f32 %v936_v4, 0.0  ;;  %v1184_v13 = vmax.f32 %v1016_v5, 0.0  ;;  %v1851_v4 = vld [vmem:[%s2379_s7 + $0xe8] sm:$0xff] }
  0xdb   : > { %817 = vmatmul.bf16.gmra.mxu0 %v1833_v2  ;;  %897 = vmatmul.bf16.gmra.mxu1 %v1849_v3  ;;  %v1089_v24 = vmax.f32 %v779_v16, 0.0  ;;  %v1121_v25 = vmax.f32 %v859_v17, 0.0  ;;  %v1835_v3 = vld [vmem:[%s2379_s7 + $0x68] sm:$0xff] }
  0xdc   : > { %v2067_v14 = vpack.c.bf16 %v1152_v12, %v1151_v10  ;;  %v2147_v15 = vpack.c.bf16 %v1184_v13, %v1183_v11  ;;  %977 = vmatmul.bf16.gmra.mxu2 %v1865_v8  ;;  %1057 = vmatmul.bf16.gmra.mxu3 %v1881_v9  ;;  %v1867_v9 = vld [vmem:[%s2379_s7 + $0x168] sm:$0xff] }
  0xdd   : > { %v1883_v10 = vld [vmem:[%s2379_s7 + $0x1e8] sm:$0xff] }
  0xde   : > { %2247 = vst [vmem:[%s2431_s13 + $0x110] sm:$0xff] %v2067_v14  }
  0xdf   : > { %2263 = vst [vmem:[%s2431_s13 + $0x190] sm:$0xff] %v2147_v15   ;;  %v938_v18 = vpop.f32.mrf.mxu2  ;;  %v1018_v19 = vpop.f32.mrf.mxu3 }
  0xe0   : > { %v780_v20 = vpop.f32.mrf.mxu0  ;;  %v860_v21 = vpop.f32.mrf.mxu1  ;;  %v939_v30 = vadd.f32 %v2420_v46, %v938_v18  ;;  %v1019_v31 = vadd.f32 %v2420_v46, %v1018_v19 }
  0xe1   : > { %v781_v22 = vadd.f32 %v2420_v46, %v780_v20  ;;  %v861_v23 = vadd.f32 %v2420_v46, %v860_v21 }
  0xe2   : > { %v1153_v42 = vmax.f32 %v939_v30, 0.0  ;;  %v1185_v43 = vmax.f32 %v1019_v31, 0.0 }
  0xe3   : > { %v1090_v26 = vmax.f32 %v781_v22, 0.0  ;;  %v1122_v27 = vmax.f32 %v861_v23, 0.0 }
  0xe5   : > { %v1912_v28 = vpack.c.bf16 %v1090_v26, %v1089_v24  ;;  %v1992_v29 = vpack.c.bf16 %v1122_v27, %v1121_v25 }
  0xe7   : > { %2216 = vst [vmem:[%s2431_s13 + $0x18] sm:$0xff] %v1912_v28   ;;  %v940_v32 = vpop.f32.mrf.mxu2  ;;  %v1020_v33 = vpop.f32.mrf.mxu3 }
  0xe8   : > { %2232 = vst [vmem:[%s2431_s13 + $0x98] sm:$0xff] %v1992_v29   ;;  %v941_v36 = vadd.f32 %v2420_v46, %v940_v32  ;;  %v1021_v37 = vadd.f32 %v2420_v46, %v1020_v33  ;;  %v783_v38 = vpop.f32.mrf.mxu0  ;;  %v863_v39 = vpop.f32.mrf.mxu1 }
  0xe9   : > { %v784_v49 = vadd.f32 %v2420_v46, %v783_v38  ;;  %v864_v50 = vadd.f32 %v2420_v46, %v863_v39 }
  0xea   : > { %v1154_v44 = vmax.f32 %v941_v36, 0.0  ;;  %v1186_v45 = vmax.f32 %v1021_v37, 0.0  ;;  %v1852_v36 = vld [vmem:[%s2379_s7 + $0xf0] sm:$0xff] }
  0xeb   : > { %822 = vmatmul.bf16.gmra.mxu0 %v1834_v34  ;;  %902 = vmatmul.bf16.gmra.mxu1 %v1850_v35  ;;  %v1091_v57 = vmax.f32 %v784_v49, 0.0  ;;  %v1123_v58 = vmax.f32 %v864_v50, 0.0  ;;  %v1836_v35 = vld [vmem:[%s2379_s7 + $0x70] sm:$0xff] }
  0xec   : > { %v2072_v47 = vpack.c.bf16 %v1154_v44, %v1153_v42  ;;  %v2152_v48 = vpack.c.bf16 %v1186_v45, %v1185_v43  ;;  %982 = vmatmul.bf16.gmra.mxu2 %v1866_v40  ;;  %1062 = vmatmul.bf16.gmra.mxu3 %v1882_v41  ;;  %v1868_v41 = vld [vmem:[%s2379_s7 + $0x170] sm:$0xff] }
  0xed   : > { %v1884_v42 = vld [vmem:[%s2379_s7 + $0x1f0] sm:$0xff] }
  0xee   : > { %2248 = vst [vmem:[%s2431_s13 + $0x118] sm:$0xff] %v2072_v47  }
  0xef   : > { %2264 = vst [vmem:[%s2431_s13 + $0x198] sm:$0xff] %v2152_v48   ;;  %v943_v51 = vpop.f32.mrf.mxu2  ;;  %v1023_v52 = vpop.f32.mrf.mxu3 }
  0xf0   : > { %v785_v53 = vpop.f32.mrf.mxu0  ;;  %v865_v54 = vpop.f32.mrf.mxu1  ;;  %v944_v63 = vadd.f32 %v2420_v46, %v943_v51  ;;  %v1024_v0 = vadd.f32 %v2420_v46, %v1023_v52 }
  0xf1   : > { %v786_v55 = vadd.f32 %v2420_v46, %v785_v53  ;;  %v866_v56 = vadd.f32 %v2420_v46, %v865_v54 }
  0xf2   : > { %v1155_v11 = vmax.f32 %v944_v63, 0.0  ;;  %v1187_v12 = vmax.f32 %v1024_v0, 0.0 }
  0xf3   : > { %v1092_v59 = vmax.f32 %v786_v55, 0.0  ;;  %v1124_v60 = vmax.f32 %v866_v56, 0.0 }
  0xf5   : > { %v1917_v61 = vpack.c.bf16 %v1092_v59, %v1091_v57  ;;  %v1997_v62 = vpack.c.bf16 %v1124_v60, %v1123_v58 }
  0xf7   : > { %2217 = vst [vmem:[%s2431_s13 + $0x20] sm:$0xff] %v1917_v61   ;;  %v945_v1 = vpop.f32.mrf.mxu2  ;;  %v1025_v2 = vpop.f32.mrf.mxu3 }
  0xf8   : > { %2233 = vst [vmem:[%s2431_s13 + $0xa0] sm:$0xff] %v1997_v62   ;;  %v946_v5 = vadd.f32 %v2420_v46, %v945_v1  ;;  %v1026_v6 = vadd.f32 %v2420_v46, %v1025_v2  ;;  %v788_v7 = vpop.f32.mrf.mxu0  ;;  %v868_v8 = vpop.f32.mrf.mxu1 }
  0xf9   : > { %v789_v17 = vadd.f32 %v2420_v46, %v788_v7  ;;  %v869_v18 = vadd.f32 %v2420_v46, %v868_v8 }
  0xfa   : > { %v1156_v13 = vmax.f32 %v946_v5, 0.0  ;;  %v1188_v14 = vmax.f32 %v1026_v6, 0.0  ;;  %v1853_v5 = vld [vmem:[%s2379_s7 + $0xf8] sm:$0xff] }
  0xfb   : > { %827 = vmatmul.bf16.gmra.mxu0 %v1835_v3  ;;  %907 = vmatmul.bf16.gmra.mxu1 %v1851_v4  ;;  %v1093_v25 = vmax.f32 %v789_v17, 0.0  ;;  %v1125_v26 = vmax.f32 %v869_v18, 0.0  ;;  %v1837_v4 = vld [vmem:[%s2379_s7 + $0x78] sm:$0xff] }
  0xfc   : > { %v2077_v15 = vpack.c.bf16 %v1156_v13, %v1155_v11  ;;  %v2157_v16 = vpack.c.bf16 %v1188_v14, %v1187_v12  ;;  %987 = vmatmul.bf16.gmra.mxu2 %v1867_v9  ;;  %1067 = vmatmul.bf16.gmra.mxu3 %v1883_v10  ;;  %v1869_v10 = vld [vmem:[%s2379_s7 + $0x178] sm:$0xff] }
  0xfd   : > { %v1885_v11 = vld [vmem:[%s2379_s7 + $0x1f8] sm:$0xff] }
  0xfe   : > { %2249 = vst [vmem:[%s2431_s13 + $0x120] sm:$0xff] %v2077_v15  }
  0xff   : > { %2265 = vst [vmem:[%s2431_s13 + $0x1a0] sm:$0xff] %v2157_v16   ;;  %v948_v19 = vpop.f32.mrf.mxu2  ;;  %v1028_v20 = vpop.f32.mrf.mxu3 }
 0x100   : > { %v790_v21 = vpop.f32.mrf.mxu0  ;;  %v870_v22 = vpop.f32.mrf.mxu1  ;;  %v949_v31 = vadd.f32 %v2420_v46, %v948_v19  ;;  %v1029_v32 = vadd.f32 %v2420_v46, %v1028_v20 }
 0x101   : > { %v791_v23 = vadd.f32 %v2420_v46, %v790_v21  ;;  %v871_v24 = vadd.f32 %v2420_v46, %v870_v22 }
 0x102   : > { %v1157_v43 = vmax.f32 %v949_v31, 0.0  ;;  %v1189_v44 = vmax.f32 %v1029_v32, 0.0 }
 0x103   : > { %v1094_v27 = vmax.f32 %v791_v23, 0.0  ;;  %v1126_v28 = vmax.f32 %v871_v24, 0.0 }
 0x105   : > { %v1922_v29 = vpack.c.bf16 %v1094_v27, %v1093_v25  ;;  %v2002_v30 = vpack.c.bf16 %v1126_v28, %v1125_v26 }
 0x107   : > { %2218 = vst [vmem:[%s2431_s13 + $0x28] sm:$0xff] %v1922_v29   ;;  %v950_v33 = vpop.f32.mrf.mxu2  ;;  %v1030_v34 = vpop.f32.mrf.mxu3 }
 0x108   : > { %2234 = vst [vmem:[%s2431_s13 + $0xa8] sm:$0xff] %v2002_v30   ;;  %v951_v37 = vadd.f32 %v2420_v46, %v950_v33  ;;  %v1031_v38 = vadd.f32 %v2420_v46, %v1030_v34  ;;  %v793_v39 = vpop.f32.mrf.mxu0  ;;  %v873_v40 = vpop.f32.mrf.mxu1 }
 0x109   : > { %v794_v50 = vadd.f32 %v2420_v46, %v793_v39  ;;  %v874_v51 = vadd.f32 %v2420_v46, %v873_v40 }
 0x10a   : > { %v1158_v45 = vmax.f32 %v951_v37, 0.0  ;;  %v1190_v47 = vmax.f32 %v1031_v38, 0.0 }
 0x10b   : > { %832 = vmatmul.bf16.gmra.mxu0 %v1836_v35  ;;  %912 = vmatmul.bf16.gmra.mxu1 %v1852_v36  ;;  %v1095_v58 = vmax.f32 %v794_v50, 0.0  ;;  %v1127_v59 = vmax.f32 %v874_v51, 0.0 }
 0x10c   : > { %v2082_v48 = vpack.c.bf16 %v1158_v45, %v1157_v43  ;;  %v2162_v49 = vpack.c.bf16 %v1190_v47, %v1189_v44  ;;  %992 = vmatmul.bf16.gmra.mxu2 %v1868_v41  ;;  %1072 = vmatmul.bf16.gmra.mxu3 %v1884_v42 }
 0x10e   : > { %2250 = vst [vmem:[%s2431_s13 + $0x128] sm:$0xff] %v2082_v48  }
 0x10f   : > { %2266 = vst [vmem:[%s2431_s13 + $0x1a8] sm:$0xff] %v2162_v49   ;;  %v953_v52 = vpop.f32.mrf.mxu2  ;;  %v1033_v53 = vpop.f32.mrf.mxu3 }
 0x110   : > { %v795_v54 = vpop.f32.mrf.mxu0  ;;  %v875_v55 = vpop.f32.mrf.mxu1  ;;  %v954_v0 = vadd.f32 %v2420_v46, %v953_v52  ;;  %v1034_v1 = vadd.f32 %v2420_v46, %v1033_v53 }
 0x111   : > { %v796_v56 = vadd.f32 %v2420_v46, %v795_v54  ;;  %v876_v57 = vadd.f32 %v2420_v46, %v875_v55 }
 0x112   : > { %v1159_v12 = vmax.f32 %v954_v0, 0.0  ;;  %v1191_v13 = vmax.f32 %v1034_v1, 0.0 }
 0x113   : > { %v1096_v60 = vmax.f32 %v796_v56, 0.0  ;;  %v1128_v61 = vmax.f32 %v876_v57, 0.0 }
 0x115   : > { %v1927_v62 = vpack.c.bf16 %v1096_v60, %v1095_v58  ;;  %v2007_v63 = vpack.c.bf16 %v1128_v61, %v1127_v59 }
 0x117   : > { %2219 = vst [vmem:[%s2431_s13 + $0x30] sm:$0xff] %v1927_v62   ;;  %v955_v2 = vpop.f32.mrf.mxu2  ;;  %v1035_v3 = vpop.f32.mrf.mxu3 }
 0x118   : > { %2235 = vst [vmem:[%s2431_s13 + $0xb0] sm:$0xff] %v2007_v63   ;;  %v956_v6 = vadd.f32 %v2420_v46, %v955_v2  ;;  %v1036_v7 = vadd.f32 %v2420_v46, %v1035_v3  ;;  %v798_v8 = vpop.f32.mrf.mxu0  ;;  %v878_v9 = vpop.f32.mrf.mxu1 }
 0x119   : > { %v799_v18 = vadd.f32 %v2420_v46, %v798_v8  ;;  %v879_v19 = vadd.f32 %v2420_v46, %v878_v9 }
 0x11a   : > { %v1160_v14 = vmax.f32 %v956_v6, 0.0  ;;  %v1192_v15 = vmax.f32 %v1036_v7, 0.0 }
 0x11b   : > { %837 = vmatmul.bf16.gmra.mxu0 %v1837_v4  ;;  %917 = vmatmul.bf16.gmra.mxu1 %v1853_v5  ;;  %v1097_v26 = vmax.f32 %v799_v18, 0.0  ;;  %v1129_v27 = vmax.f32 %v879_v19, 0.0 }
 0x11c   : > { %v2087_v16 = vpack.c.bf16 %v1160_v14, %v1159_v12  ;;  %v2167_v17 = vpack.c.bf16 %v1192_v15, %v1191_v13  ;;  %997 = vmatmul.bf16.gmra.mxu2 %v1869_v10  ;;  %1077 = vmatmul.bf16.gmra.mxu3 %v1885_v11 }
 0x11e   : > { %2251 = vst [vmem:[%s2431_s13 + $0x130] sm:$0xff] %v2087_v16  }
 0x11f   : > { %2267 = vst [vmem:[%s2431_s13 + $0x1b0] sm:$0xff] %v2167_v17   ;;  %v958_v20 = vpop.f32.mrf.mxu2  ;;  %v1038_v21 = vpop.f32.mrf.mxu3 }
 0x120   : > { %v800_v22 = vpop.f32.mrf.mxu0  ;;  %v880_v23 = vpop.f32.mrf.mxu1  ;;  %v959_v32 = vadd.f32 %v2420_v46, %v958_v20  ;;  %v1039_v33 = vadd.f32 %v2420_v46, %v1038_v21 }
 0x121   : > { %v801_v24 = vadd.f32 %v2420_v46, %v800_v22  ;;  %v881_v25 = vadd.f32 %v2420_v46, %v880_v23 }
 0x122   : > { %v1161_v40 = vmax.f32 %v959_v32, 0.0  ;;  %v1193_v41 = vmax.f32 %v1039_v33, 0.0 }
 0x123   : > { %v1098_v28 = vmax.f32 %v801_v24, 0.0  ;;  %v1130_v29 = vmax.f32 %v881_v25, 0.0 }
 0x125   : > { %v1932_v30 = vpack.c.bf16 %v1098_v28, %v1097_v26  ;;  %v2012_v31 = vpack.c.bf16 %v1130_v29, %v1129_v27 }
 0x127   : > { %2220 = vst [vmem:[%s2431_s13 + $0x38] sm:$0xff] %v1932_v30   ;;  %v960_v34 = vpop.f32.mrf.mxu2  ;;  %v1040_v35 = vpop.f32.mrf.mxu3 }
 0x128   : > { %2236 = vst [vmem:[%s2431_s13 + $0xb8] sm:$0xff] %v2012_v31   ;;  %v961_v36 = vadd.f32 %v2420_v46, %v960_v34  ;;  %v1041_v37 = vadd.f32 %v2420_v46, %v1040_v35  ;;  %v803_v38 = vpop.f32.mrf.mxu0  ;;  %v883_v39 = vpop.f32.mrf.mxu1 }
 0x129   : > { %v804_v47 = vadd.f32 %v2420_v46, %v803_v38  ;;  %v884_v48 = vadd.f32 %v2420_v46, %v883_v39 }
 0x12a   : > { %v1162_v42 = vmax.f32 %v961_v36, 0.0  ;;  %v1194_v43 = vmax.f32 %v1041_v37, 0.0 }
 0x12b   : > { %v1099_v55 = vmax.f32 %v804_v47, 0.0  ;;  %v1131_v56 = vmax.f32 %v884_v48, 0.0 }
 0x12c   : > { %v2092_v44 = vpack.c.bf16 %v1162_v42, %v1161_v40  ;;  %v2172_v45 = vpack.c.bf16 %v1194_v43, %v1193_v41 }
 0x12e   : > { %2252 = vst [vmem:[%s2431_s13 + $0x138] sm:$0xff] %v2092_v44  }
 0x12f   : > { %2268 = vst [vmem:[%s2431_s13 + $0x1b8] sm:$0xff] %v2172_v45   ;;  %v963_v49 = vpop.f32.mrf.mxu2  ;;  %v1043_v50 = vpop.f32.mrf.mxu3 }
 0x130   : > { %v805_v51 = vpop.f32.mrf.mxu0  ;;  %v885_v52 = vpop.f32.mrf.mxu1  ;;  %v964_v61 = vadd.f32 %v2420_v46, %v963_v49  ;;  %v1044_v62 = vadd.f32 %v2420_v46, %v1043_v50 }
 0x131   : > { %v806_v53 = vadd.f32 %v2420_v46, %v805_v51  ;;  %v886_v54 = vadd.f32 %v2420_v46, %v885_v52 }
 0x132   : > { %v1163_v5 = vmax.f32 %v964_v61, 0.0  ;;  %v1195_v6 = vmax.f32 %v1044_v62, 0.0 }
 0x133   : > { %v1100_v57 = vmax.f32 %v806_v53, 0.0  ;;  %v1132_v58 = vmax.f32 %v886_v54, 0.0 }
 0x135   : > { %v1937_v59 = vpack.c.bf16 %v1100_v57, %v1099_v55  ;;  %v2017_v60 = vpack.c.bf16 %v1132_v58, %v1131_v56 }
 0x137   : > { %2221 = vst [vmem:[%s2431_s13 + $0x40] sm:$0xff] %v1937_v59   ;;  %v965_v63 = vpop.f32.mrf.mxu2  ;;  %v1045_v0 = vpop.f32.mrf.mxu3 }
 0x138   : > { %2237 = vst [vmem:[%s2431_s13 + $0xc0] sm:$0xff] %v2017_v60   ;;  %v966_v1 = vadd.f32 %v2420_v46, %v965_v63  ;;  %v1046_v2 = vadd.f32 %v2420_v46, %v1045_v0  ;;  %v808_v3 = vpop.f32.mrf.mxu0  ;;  %v888_v4 = vpop.f32.mrf.mxu1 }
 0x139   : > { %v809_v11 = vadd.f32 %v2420_v46, %v808_v3  ;;  %v889_v12 = vadd.f32 %v2420_v46, %v888_v4 }
 0x13a   : > { %v1164_v7 = vmax.f32 %v966_v1, 0.0  ;;  %v1196_v8 = vmax.f32 %v1046_v2, 0.0 }
 0x13b   : > { %v1101_v19 = vmax.f32 %v809_v11, 0.0  ;;  %v1133_v20 = vmax.f32 %v889_v12, 0.0 }
 0x13c   : > { %v2097_v9 = vpack.c.bf16 %v1164_v7, %v1163_v5  ;;  %v2177_v10 = vpack.c.bf16 %v1196_v8, %v1195_v6 }
 0x13e   : > { %2253 = vst [vmem:[%s2431_s13 + $0x140] sm:$0xff] %v2097_v9  }
 0x13f   : > { %2269 = vst [vmem:[%s2431_s13 + $0x1c0] sm:$0xff] %v2177_v10   ;;  %v968_v13 = vpop.f32.mrf.mxu2  ;;  %v1048_v14 = vpop.f32.mrf.mxu3 }
 0x140   : > { %v810_v15 = vpop.f32.mrf.mxu0  ;;  %v890_v16 = vpop.f32.mrf.mxu1  ;;  %v969_v25 = vadd.f32 %v2420_v46, %v968_v13  ;;  %v1049_v26 = vadd.f32 %v2420_v46, %v1048_v14 }
 0x141   : > { %v811_v17 = vadd.f32 %v2420_v46, %v810_v15  ;;  %v891_v18 = vadd.f32 %v2420_v46, %v890_v16 }
 0x142   : > { %v1165_v33 = vmax.f32 %v969_v25, 0.0  ;;  %v1197_v34 = vmax.f32 %v1049_v26, 0.0 }
 0x143   : > { %v1102_v21 = vmax.f32 %v811_v17, 0.0  ;;  %v1134_v22 = vmax.f32 %v891_v18, 0.0 }
 0x145   : > { %v1942_v23 = vpack.c.bf16 %v1102_v21, %v1101_v19  ;;  %v2022_v24 = vpack.c.bf16 %v1134_v22, %v1133_v20 }
 0x147   : > { %2222 = vst [vmem:[%s2431_s13 + $0x48] sm:$0xff] %v1942_v23   ;;  %v970_v27 = vpop.f32.mrf.mxu2  ;;  %v1050_v28 = vpop.f32.mrf.mxu3 }
 0x148   : > { %2238 = vst [vmem:[%s2431_s13 + $0xc8] sm:$0xff] %v2022_v24   ;;  %v971_v29 = vadd.f32 %v2420_v46, %v970_v27  ;;  %v1051_v30 = vadd.f32 %v2420_v46, %v1050_v28  ;;  %v813_v31 = vpop.f32.mrf.mxu0  ;;  %v893_v32 = vpop.f32.mrf.mxu1 }
 0x149   : > { %v814_v39 = vadd.f32 %v2420_v46, %v813_v31  ;;  %v894_v40 = vadd.f32 %v2420_v46, %v893_v32 }
 0x14a   : > { %v1166_v35 = vmax.f32 %v971_v29, 0.0  ;;  %v1198_v36 = vmax.f32 %v1051_v30, 0.0 }
 0x14b   : > { %v1103_v48 = vmax.f32 %v814_v39, 0.0  ;;  %v1135_v49 = vmax.f32 %v894_v40, 0.0 }
 0x14c   : > { %v2102_v37 = vpack.c.bf16 %v1166_v35, %v1165_v33  ;;  %v2182_v38 = vpack.c.bf16 %v1198_v36, %v1197_v34 }
 0x14e   : > { %2254 = vst [vmem:[%s2431_s13 + $0x148] sm:$0xff] %v2102_v37  }
 0x14f   : > { %2270 = vst [vmem:[%s2431_s13 + $0x1c8] sm:$0xff] %v2182_v38   ;;  %v973_v41 = vpop.f32.mrf.mxu2  ;;  %v1053_v42 = vpop.f32.mrf.mxu3 }
 0x150   : > { %v815_v43 = vpop.f32.mrf.mxu0  ;;  %v895_v44 = vpop.f32.mrf.mxu1  ;;  %v974_v54 = vadd.f32 %v2420_v46, %v973_v41  ;;  %v1054_v55 = vadd.f32 %v2420_v46, %v1053_v42 }
 0x151   : > { %v816_v45 = vadd.f32 %v2420_v46, %v815_v43  ;;  %v896_v47 = vadd.f32 %v2420_v46, %v895_v44 }
 0x152   : > { %v1167_v62 = vmax.f32 %v974_v54, 0.0  ;;  %v1199_v63 = vmax.f32 %v1054_v55, 0.0 }
 0x153   : > { %v1104_v50 = vmax.f32 %v816_v45, 0.0  ;;  %v1136_v51 = vmax.f32 %v896_v47, 0.0 }
 0x155   : > { %v1947_v52 = vpack.c.bf16 %v1104_v50, %v1103_v48  ;;  %v2027_v53 = vpack.c.bf16 %v1136_v51, %v1135_v49 }
 0x157   : > { %2223 = vst [vmem:[%s2431_s13 + $0x50] sm:$0xff] %v1947_v52   ;;  %v975_v56 = vpop.f32.mrf.mxu2  ;;  %v1055_v57 = vpop.f32.mrf.mxu3 }
 0x158   : > { %2239 = vst [vmem:[%s2431_s13 + $0xd0] sm:$0xff] %v2027_v53   ;;  %v976_v58 = vadd.f32 %v2420_v46, %v975_v56  ;;  %v1056_v59 = vadd.f32 %v2420_v46, %v1055_v57  ;;  %v818_v60 = vpop.f32.mrf.mxu0  ;;  %v898_v61 = vpop.f32.mrf.mxu1 }
 0x159   : > { %v819_v4 = vadd.f32 %v2420_v46, %v818_v60  ;;  %v899_v5 = vadd.f32 %v2420_v46, %v898_v61 }
 0x15a   : > { %v1168_v0 = vmax.f32 %v976_v58, 0.0  ;;  %v1200_v1 = vmax.f32 %v1056_v59, 0.0 }
 0x15b   : > { %v1105_v12 = vmax.f32 %v819_v4, 0.0  ;;  %v1137_v13 = vmax.f32 %v899_v5, 0.0 }
 0x15c   : > { %v2107_v2 = vpack.c.bf16 %v1168_v0, %v1167_v62  ;;  %v2187_v3 = vpack.c.bf16 %v1200_v1, %v1199_v63 }
 0x15e   : > { %2255 = vst [vmem:[%s2431_s13 + $0x150] sm:$0xff] %v2107_v2  }
 0x15f   : > { %2271 = vst [vmem:[%s2431_s13 + $0x1d0] sm:$0xff] %v2187_v3   ;;  %v978_v6 = vpop.f32.mrf.mxu2  ;;  %v1058_v7 = vpop.f32.mrf.mxu3 }
 0x160   : > { %v820_v8 = vpop.f32.mrf.mxu0  ;;  %v900_v9 = vpop.f32.mrf.mxu1  ;;  %v979_v18 = vadd.f32 %v2420_v46, %v978_v6  ;;  %v1059_v19 = vadd.f32 %v2420_v46, %v1058_v7 }
 0x161   : > { %v821_v10 = vadd.f32 %v2420_v46, %v820_v8  ;;  %v901_v11 = vadd.f32 %v2420_v46, %v900_v9 }
 0x162   : > { %v1169_v26 = vmax.f32 %v979_v18, 0.0  ;;  %v1201_v27 = vmax.f32 %v1059_v19, 0.0 }
 0x163   : > { %v1106_v14 = vmax.f32 %v821_v10, 0.0  ;;  %v1138_v15 = vmax.f32 %v901_v11, 0.0 }
 0x165   : > { %v1952_v16 = vpack.c.bf16 %v1106_v14, %v1105_v12  ;;  %v2032_v17 = vpack.c.bf16 %v1138_v15, %v1137_v13 }
 0x167   : > { %2224 = vst [vmem:[%s2431_s13 + $0x58] sm:$0xff] %v1952_v16   ;;  %v980_v20 = vpop.f32.mrf.mxu2  ;;  %v1060_v21 = vpop.f32.mrf.mxu3 }
 0x168   : > { %2240 = vst [vmem:[%s2431_s13 + $0xd8] sm:$0xff] %v2032_v17   ;;  %v981_v22 = vadd.f32 %v2420_v46, %v980_v20  ;;  %v1061_v23 = vadd.f32 %v2420_v46, %v1060_v21  ;;  %v823_v24 = vpop.f32.mrf.mxu0  ;;  %v903_v25 = vpop.f32.mrf.mxu1 }
 0x169   : > { %v824_v32 = vadd.f32 %v2420_v46, %v823_v24  ;;  %v904_v33 = vadd.f32 %v2420_v46, %v903_v25 }
 0x16a   : > { %v1170_v28 = vmax.f32 %v981_v22, 0.0  ;;  %v1202_v29 = vmax.f32 %v1061_v23, 0.0 }
 0x16b   : > { %v1107_v40 = vmax.f32 %v824_v32, 0.0  ;;  %v1139_v41 = vmax.f32 %v904_v33, 0.0 }
 0x16c   : > { %v2112_v30 = vpack.c.bf16 %v1170_v28, %v1169_v26  ;;  %v2192_v31 = vpack.c.bf16 %v1202_v29, %v1201_v27 }
 0x16e   : > { %2256 = vst [vmem:[%s2431_s13 + $0x158] sm:$0xff] %v2112_v30  }
 0x16f   : > { %2272 = vst [vmem:[%s2431_s13 + $0x1d8] sm:$0xff] %v2192_v31   ;;  %v983_v34 = vpop.f32.mrf.mxu2  ;;  %v1063_v35 = vpop.f32.mrf.mxu3  ;;  %v2310_v31 = vld [vmem:[%s2643_s2] ss:$0 sm:$0xff] }
 0x170   : > { %v825_v36 = vpop.f32.mrf.mxu0  ;;  %v905_v37 = vpop.f32.mrf.mxu1  ;;  %v984_v47 = vadd.f32 %v2420_v46, %v983_v34  ;;  %v1064_v48 = vadd.f32 %v2420_v46, %v1063_v35 }
 0x171   : > { %v826_v38 = vadd.f32 %v2420_v46, %v825_v36  ;;  %v906_v39 = vadd.f32 %v2420_v46, %v905_v37 }
 0x172   : > { %v1171_v55 = vmax.f32 %v984_v47, 0.0  ;;  %v1203_v56 = vmax.f32 %v1064_v48, 0.0 }
 0x173   : > { %v1108_v42 = vmax.f32 %v826_v38, 0.0  ;;  %v1140_v43 = vmax.f32 %v906_v39, 0.0 }
 0x175   : > { %v1957_v44 = vpack.c.bf16 %v1108_v42, %v1107_v40  ;;  %v2037_v45 = vpack.c.bf16 %v1140_v43, %v1139_v41 }
 0x177   : > { %2225 = vst [vmem:[%s2431_s13 + $0x60] sm:$0xff] %v1957_v44   ;;  %v985_v49 = vpop.f32.mrf.mxu2  ;;  %v1065_v50 = vpop.f32.mrf.mxu3 }
 0x178   : > { %2241 = vst [vmem:[%s2431_s13 + $0xe0] sm:$0xff] %v2037_v45   ;;  %v986_v51 = vadd.f32 %v2420_v46, %v985_v49  ;;  %v1066_v52 = vadd.f32 %v2420_v46, %v1065_v50  ;;  %v828_v53 = vpop.f32.mrf.mxu0  ;;  %v908_v54 = vpop.f32.mrf.mxu1 }
 0x179   : > { %v829_v61 = vadd.f32 %v2420_v46, %v828_v53  ;;  %v909_v62 = vadd.f32 %v2420_v46, %v908_v54 }
 0x17a   : > { %v1172_v57 = vmax.f32 %v986_v51, 0.0  ;;  %v1204_v58 = vmax.f32 %v1066_v52, 0.0 }
 0x17b   : > { %v1109_v5 = vmax.f32 %v829_v61, 0.0  ;;  %v1141_v6 = vmax.f32 %v909_v62, 0.0 }
 0x17c   : > { %v2117_v59 = vpack.c.bf16 %v1172_v57, %v1171_v55  ;;  %v2197_v60 = vpack.c.bf16 %v1204_v58, %v1203_v56 }
 0x17e   : > { %2257 = vst [vmem:[%s2431_s13 + $0x160] sm:$0xff] %v2117_v59  }
 0x17f   : > { %2273 = vst [vmem:[%s2431_s13 + $0x1e0] sm:$0xff] %v2197_v60   ;;  %v988_v63 = vpop.f32.mrf.mxu2  ;;  %v1068_v0 = vpop.f32.mrf.mxu3 }
 0x180   : > { %v830_v1 = vpop.f32.mrf.mxu0  ;;  %v910_v2 = vpop.f32.mrf.mxu1  ;;  %v989_v11 = vadd.f32 %v2420_v46, %v988_v63  ;;  %v1069_v12 = vadd.f32 %v2420_v46, %v1068_v0 }
 0x181   : > { %v831_v3 = vadd.f32 %v2420_v46, %v830_v1  ;;  %v911_v4 = vadd.f32 %v2420_v46, %v910_v2 }
 0x182   : > { %v1173_v19 = vmax.f32 %v989_v11, 0.0  ;;  %v1205_v20 = vmax.f32 %v1069_v12, 0.0 }
 0x183   : > { %v1110_v7 = vmax.f32 %v831_v3, 0.0  ;;  %v1142_v8 = vmax.f32 %v911_v4, 0.0 }
 0x185   : > { %v1962_v9 = vpack.c.bf16 %v1110_v7, %v1109_v5  ;;  %v2042_v10 = vpack.c.bf16 %v1142_v8, %v1141_v6 }
 0x187   : > { %2226 = vst [vmem:[%s2431_s13 + $0x68] sm:$0xff] %v1962_v9   ;;  %v990_v13 = vpop.f32.mrf.mxu2  ;;  %v1070_v14 = vpop.f32.mrf.mxu3 }
 0x188   : > { %2242 = vst [vmem:[%s2431_s13 + $0xe8] sm:$0xff] %v2042_v10   ;;  %v991_v15 = vadd.f32 %v2420_v46, %v990_v13  ;;  %v1071_v16 = vadd.f32 %v2420_v46, %v1070_v14  ;;  %v833_v17 = vpop.f32.mrf.mxu0  ;;  %v913_v18 = vpop.f32.mrf.mxu1 }
 0x189   : > { %v834_v25 = vadd.f32 %v2420_v46, %v833_v17  ;;  %v914_v26 = vadd.f32 %v2420_v46, %v913_v18 }
 0x18a   : > { %v1174_v21 = vmax.f32 %v991_v15, 0.0  ;;  %v1206_v22 = vmax.f32 %v1071_v16, 0.0 }
 0x18b   : > { %v1111_v34 = vmax.f32 %v834_v25, 0.0  ;;  %v1143_v35 = vmax.f32 %v914_v26, 0.0 }
 0x18c   : > { %v2122_v23 = vpack.c.bf16 %v1174_v21, %v1173_v19  ;;  %v2202_v24 = vpack.c.bf16 %v1206_v22, %v1205_v20 }
 0x18e   : > { %2258 = vst [vmem:[%s2431_s13 + $0x168] sm:$0xff] %v2122_v23  }
 0x18f   : > { %2274 = vst [vmem:[%s2431_s13 + $0x1e8] sm:$0xff] %v2202_v24   ;;  %v993_v27 = vpop.f32.mrf.mxu2  ;;  %v1073_v28 = vpop.f32.mrf.mxu3 }
 0x190   : > { %v835_v29 = vpop.f32.mrf.mxu0  ;;  %v915_v30 = vpop.f32.mrf.mxu1  ;;  %v994_v40 = vadd.f32 %v2310_v31, %v993_v27  ;;  %v1074_v46 = vadd.f32 %v2310_v31, %v1073_v28 }
 0x191   : > { %v836_v32 = vadd.f32 %v2310_v31, %v835_v29  ;;  %v916_v33 = vadd.f32 %v2310_v31, %v915_v30 }
 0x192   : > { %v1175_v48 = vmax.f32 %v994_v40, 0.0  ;;  %v1207_v49 = vmax.f32 %v1074_v46, 0.0 }
 0x193   : > { %v1112_v36 = vmax.f32 %v836_v32, 0.0  ;;  %v1144_v37 = vmax.f32 %v916_v33, 0.0 }
 0x195   : > { %v1967_v38 = vpack.c.bf16 %v1112_v36, %v1111_v34  ;;  %v2047_v39 = vpack.c.bf16 %v1144_v37, %v1143_v35 }
 0x197   : > { %2227 = vst [vmem:[%s2431_s13 + $0x70] sm:$0xff] %v1967_v38   ;;  %v995_v41 = vpop.f32.mrf.mxu2  ;;  %v1075_v42 = vpop.f32.mrf.mxu3 }
 0x198   : > { %2243 = vst [vmem:[%s2431_s13 + $0xf0] sm:$0xff] %v2047_v39   ;;  %v996_v43 = vadd.f32 %v2310_v31, %v995_v41  ;;  %v1076_v44 = vadd.f32 %v2310_v31, %v1075_v42  ;;  %v838_v45 = vpop.f32.mrf.mxu0  ;;  %v918_v47 = vpop.f32.mrf.mxu1 }
 0x199   : > { %v839_v54 = vadd.f32 %v2310_v31, %v838_v45  ;;  %v919_v55 = vadd.f32 %v2310_v31, %v918_v47 }
 0x19a   : > { %v1176_v50 = vmax.f32 %v996_v43, 0.0  ;;  %v1208_v51 = vmax.f32 %v1076_v44, 0.0 }
 0x19b   : > { %v1113_v62 = vmax.f32 %v839_v54, 0.0  ;;  %v1145_v63 = vmax.f32 %v919_v55, 0.0 }
 0x19c   : > { %v2127_v52 = vpack.c.bf16 %v1176_v50, %v1175_v48  ;;  %v2207_v53 = vpack.c.bf16 %v1208_v51, %v1207_v49 }
 0x19e   : > { %2259 = vst [vmem:[%s2431_s13 + $0x170] sm:$0xff] %v2127_v52  }
 0x19f   : > { %2275 = vst [vmem:[%s2431_s13 + $0x1f0] sm:$0xff] %v2207_v53   ;;  %v998_v56 = vpop.f32.mrf.mxu2  ;;  %v1078_v57 = vpop.f32.mrf.mxu3 }
 0x1a0   : > { %v840_v58 = vpop.f32.mrf.mxu0  ;;  %v920_v59 = vpop.f32.mrf.mxu1  ;;  %v999_v4 = vadd.f32 %v2310_v31, %v998_v56  ;;  %v1079_v5 = vadd.f32 %v2310_v31, %v1078_v57 }
 0x1a1   : > { %v841_v60 = vadd.f32 %v2310_v31, %v840_v58  ;;  %v921_v61 = vadd.f32 %v2310_v31, %v920_v59 }
 0x1a2   : > { %v1177_v10 = vmax.f32 %v999_v4, 0.0  ;;  %v1209_v11 = vmax.f32 %v1079_v5, 0.0 }
 0x1a3   : > { %v1114_v0 = vmax.f32 %v841_v60, 0.0  ;;  %v1146_v1 = vmax.f32 %v921_v61, 0.0 }
 0x1a5   : > { %v1972_v2 = vpack.c.bf16 %v1114_v0, %v1113_v62  ;;  %v2052_v3 = vpack.c.bf16 %v1146_v1, %v1145_v63 }
 0x1a7   : > { %2228 = vst [vmem:[%s2431_s13 + $0x78] sm:$0xff] %v1972_v2   ;;  %v1000_v6 = vpop.f32.mrf.mxu2  ;;  %v1080_v7 = vpop.f32.mrf.mxu3 }
 0x1a8   : > { %2244 = vst [vmem:[%s2431_s13 + $0xf8] sm:$0xff] %v2052_v3   ;;  %v1001_v8 = vadd.f32 %v2310_v31, %v1000_v6  ;;  %v1081_v9 = vadd.f32 %v2310_v31, %v1080_v7 }
 0x1aa   : > { %v1178_v12 = vmax.f32 %v1001_v8, 0.0  ;;  %v1210_v13 = vmax.f32 %v1081_v9, 0.0 }
 0x1ac   : > { %v2132_v14 = vpack.c.bf16 %v1178_v12, %v1177_v10  ;;  %v2212_v15 = vpack.c.bf16 %v1210_v13, %v1209_v11 }
 0x1ae   : > { %2260 = vst [vmem:[%s2431_s13 + $0x178] sm:$0xff] %v2132_v14  }
 0x1af   : > { %2276 = vst [vmem:[%s2431_s13 + $0x1f8] sm:$0xff] %v2212_v15  }
 0x1b0 PF: > { %s13_s12 = sadd.s32 1, %s2317_s12  }
 0x1b1   : > { %p10_p4 = scmp.ge.s32.totalorder %s13_s12, 6  }
 0x1b3   :  { %12 = sbr.rel (!%p10_p4) target bundleno = 1 (0x1), region = 62 }

// kernel: _st_conv_forward.3
= control target key start
LH: loop header
LB: loop body
LE: loop exit
PB: predicated region body
PF: predicated region fallthrough
CT: control target
= control target key end

     0   :  { %s5101_s12 = smov 0   ;;  %s5103_s13 = smov 0   ;;  %s6931_s0 = inlined_call_operand.vmem [shape: bf16[2,10,256,128], index: 0, kind: input, shape index: {}]   ;;  %s6932_s1 = inlined_call_operand.vmem [shape: bf16[384,128], index: 1, kind: input, shape index: {}]   ;;  %s6933_s2 = inlined_call_operand.vmem [shape: f32[1,128], index: 2, kind: input, shape index: {}]   ;;  %s6934_s3 = inlined_call_operand.vmem [shape: f32[2,8,256,128], index: 3, kind: output, shape index: {}]  }
   0x1   :  { %s5105_s14 = smov 0  }
   0x2 LB: > { %s25_s15 = sadd.s32 1, %s5075_s13  ;;  %p3980_p0 = scmp.ge.s32.totalorder %s5079_s14, 1  ;;  %s5079_s14 = sphi %s5105_s14, %s13_s14   ;;  %s5075_s13 = sphi %s5103_s13, %s7096_s13   ;;  %s5071_s12 = sphi %s5101_s12, %s7095_s12  }
   0x3   : > { %p27_p1 = scmp.ge.s32.totalorder %s25_s15, 2  ;;  %p158_p2 = scmp.lt.s32.totalorder %s5079_s14, 3 }
   0x5   : > { %s7098_s15 = smov (%p27_p1, %s25_s15), 0  ;;  %p159_p3 = pnand %p3980_p0, %p158_p2 }
   0x7   : > { %162 = sbr.rel (%p159_p3) target bundleno = 1709 (0x6ad), region = 32 }
   0xc   : > { %v4890_v0 = vld [vmem:[%s6932_s1 + $0x38] sm:$0xff]  ;;  %v4889_v3 = vld [vmem:[%s6932_s1 + $0x30] sm:$0xff]  ;;  %v4888_v6 = vld [vmem:[%s6932_s1 + $0x28] sm:$0xff]  ;;  %p191_p4 = scmp.lt.s32.totalorder %s5071_s12, 1 }
   0xd   : > { %v4898_v1 = vld [vmem:[%s6932_s1 + $0x78] sm:$0xff]  ;;  %1686 = vmatpush.bf16.msra.mxu0 %v4890_v0  ;;  %4907 = vmatpush.bf16.msra.mxu3 %v4890_v0  ;;  %v4897_v4 = vld [vmem:[%s6932_s1 + $0x70] sm:$0xff]  ;;  %v4896_v7 = vld [vmem:[%s6932_s1 + $0x68] sm:$0xff] }
   0xe   : > { %v5130_v2 = vld [vmem:[%s6932_s1 + $0xb8] sm:$0xff]  ;;  %2335 = vmatpush.bf16.msra.mxu1 %v4898_v1  ;;  %v5142_v5 = vld [vmem:[%s6932_s1 + $0xb0] sm:$0xff]  ;;  %v5154_v8 = vld [vmem:[%s6932_s1 + $0xa8] sm:$0xff]  ;;  %s7100_s12 = smov (!%p191_p4, %s5071_s12), 1 }
   0xf   : > { %2984 = vmatpush.bf16.msra.mxu2 %v5130_v2  ;;  %v4887_v9 = vld [vmem:[%s6932_s1 + $0x20] sm:$0xff]  ;;  %v4886_v12 = vld [vmem:[%s6932_s1 + $0x18] sm:$0xff]  ;;  %v4885_v15 = vld [vmem:[%s6932_s1 + $0x10] sm:$0xff]  ;;  %s4931_s4 = smul.u32 1280, %s7100_s12  ;;  %s4722_s24 = sshll.u32 %s7100_s12, 11 }
  0x10   : > { %v4895_v10 = vld [vmem:[%s6932_s1 + $0x60] sm:$0xff]  ;;  %v4894_v13 = vld [vmem:[%s6932_s1 + $0x58] sm:$0xff]  ;;  %v4893_v16 = vld [vmem:[%s6932_s1 + $0x50] sm:$0xff]  ;;  %s5329_s27 = scalar_lea.vmem %s6934_s3, %s4722_s24 }
  0x11   : > { %1687 = vmatpush.bf16.msra.mxu0 %v4889_v3  ;;  %4908 = vmatpush.bf16.msra.mxu3 %v4889_v3  ;;  %v5166_v11 = vld [vmem:[%s6932_s1 + $0xa0] sm:$0xff]  ;;  %v5179_v14 = vld [vmem:[%s6932_s1 + $0x98] sm:$0xff]  ;;  %v5194_v17 = vld [vmem:[%s6932_s1 + $0x90] sm:$0xff]  ;;  %s5213_s17 = scalar_lea.vmem %s6931_s0, %s4931_s4 }
  0x12   : > { %2336 = vmatpush.bf16.msra.mxu1 %v4897_v4  ;;  %v4884_v18 = vld [vmem:[%s6932_s1 + $0x8] sm:$0xff]  ;;  %v4883_v21 = vld [vmem:[%s6932_s1] sm:$0xff]  ;;  %v4725_v32 = vld [vmem:[%s5213_s17 + $0x10] sm:$0xff] }
  0x13   : > { %2985 = vmatpush.bf16.msra.mxu2 %v5142_v5  ;;  %v4892_v19 = vld [vmem:[%s6932_s1 + $0x48] sm:$0xff]  ;;  %v4891_v22 = vld [vmem:[%s6932_s1 + $0x40] sm:$0xff]  ;;  %v4821_v33 = vld [vmem:[%s5213_s17 + $0x310] sm:$0xff] }
  0x14   : > { %v4900_v20 = vld [vmem:[%s6932_s1 + $0x88] sm:$0xff]  ;;  %v4899_v23 = vld [vmem:[%s6932_s1 + $0x80] sm:$0xff]  ;;  %v5245_v34 = vld [vmem:[%s5213_s17 + $0x90] sm:$0xff] }
  0x15   : > { %1688 = vmatpush.bf16.msra.mxu0 %v4888_v6  ;;  %4909 = vmatpush.bf16.msra.mxu3 %v4888_v6  ;;  %v4723_v24 = vld [vmem:[%s5213_s17] sm:$0xff]  ;;  %v4724_v28 = vld [vmem:[%s5213_s17 + $0x8] sm:$0xff]  ;;  %v5248_v35 = vld [vmem:[%s5213_s17 + $0x110] sm:$0xff] }
  0x16   : > { %2337 = vmatpush.bf16.msra.mxu1 %v4896_v7  ;;  %v4819_v25 = vld [vmem:[%s5213_s17 + $0x300] sm:$0xff]  ;;  %v4820_v29 = vld [vmem:[%s5213_s17 + $0x308] sm:$0xff]  ;;  %v4726_v36 = vld [vmem:[%s5213_s17 + $0x18] sm:$0xff] }
  0x17   : > { %2986 = vmatpush.bf16.msra.mxu2 %v5154_v8  ;;  %v5224_v26 = vld [vmem:[%s5213_s17 + $0x80] sm:$0xff]  ;;  %v5234_v30 = vld [vmem:[%s5213_s17 + $0x88] sm:$0xff]  ;;  %v4822_v37 = vld [vmem:[%s5213_s17 + $0x318] sm:$0xff] }
  0x18   : > { %v5227_v27 = vld [vmem:[%s5213_s17 + $0x100] sm:$0xff]  ;;  %v5237_v31 = vld [vmem:[%s5213_s17 + $0x108] sm:$0xff]  ;;  %v5258_v38 = vld [vmem:[%s5213_s17 + $0x98] sm:$0xff] }
  0x19   : > { %1689 = vmatpush.bf16.msra.mxu0 %v4887_v9  ;;  %4910 = vmatpush.bf16.msra.mxu3 %v4887_v9  ;;  %v5261_v39 = vld [vmem:[%s5213_s17 + $0x118] sm:$0xff]  ;;  %v4727_v40 = vld [vmem:[%s5213_s17 + $0x20] sm:$0xff]  ;;  %v4728_v44 = vld [vmem:[%s5213_s17 + $0x28] sm:$0xff] }
  0x1a   : > { %2338 = vmatpush.bf16.msra.mxu1 %v4895_v10  ;;  %v4823_v41 = vld [vmem:[%s5213_s17 + $0x320] sm:$0xff]  ;;  %v4824_v45 = vld [vmem:[%s5213_s17 + $0x328] sm:$0xff]  ;;  %v4729_v48 = vld [vmem:[%s5213_s17 + $0x30] sm:$0xff] }
  0x1b   : > { %2987 = vmatpush.bf16.msra.mxu2 %v5166_v11  ;;  %v5270_v42 = vld [vmem:[%s5213_s17 + $0xa0] sm:$0xff]  ;;  %v5280_v46 = vld [vmem:[%s5213_s17 + $0xa8] sm:$0xff]  ;;  %v4825_v49 = vld [vmem:[%s5213_s17 + $0x330] sm:$0xff] }
  0x1c   : > { %v5273_v43 = vld [vmem:[%s5213_s17 + $0x120] sm:$0xff]  ;;  %v5283_v47 = vld [vmem:[%s5213_s17 + $0x128] sm:$0xff]  ;;  %v5290_v50 = vld [vmem:[%s5213_s17 + $0xb0] sm:$0xff] }
  0x1d   : > { %1690 = vmatpush.bf16.msra.mxu0 %v4886_v12  ;;  %4911 = vmatpush.bf16.msra.mxu3 %v4886_v12  ;;  %v5293_v51 = vld [vmem:[%s5213_s17 + $0x130] sm:$0xff]  ;;  %v4730_v52 = vld [vmem:[%s5213_s17 + $0x38] sm:$0xff]  ;;  %v5310_v56 = vld [vmem:[%s6933_s2] ss:$0 sm:$0xff] }
  0x1e   : > { %2339 = vmatpush.bf16.msra.mxu1 %v4894_v13  ;;  %v4826_v53 = vld [vmem:[%s5213_s17 + $0x338] sm:$0xff]  ;;  %v4731_v57 = vld [vmem:[%s5213_s17 + $0x40] sm:$0xff] }
  0x1f   : > { %2988 = vmatpush.bf16.msra.mxu2 %v5179_v14  ;;  %v5300_v54 = vld [vmem:[%s5213_s17 + $0xb8] sm:$0xff]  ;;  %v4827_v58 = vld [vmem:[%s5213_s17 + $0x340] sm:$0xff] }
  0x20   : > { %v5303_v55 = vld [vmem:[%s5213_s17 + $0x138] sm:$0xff]  ;;  %v5315_v60 = vld [vmem:[%s5213_s17 + $0xc0] sm:$0xff] }
  0x21   : > { %1691 = vmatpush.bf16.msra.mxu0 %v4885_v15  ;;  %4912 = vmatpush.bf16.msra.mxu3 %v4885_v15  ;;  %v5318_v61 = vld [vmem:[%s5213_s17 + $0x140] sm:$0xff]  ;;  %v5341_v15 = vld [vmem:[%s5213_s17 + $0x148] sm:$0xff] }
  0x22   : > { %2340 = vmatpush.bf16.msra.mxu1 %v4893_v16 }
  0x23   : > { %2989 = vmatpush.bf16.msra.mxu2 %v5194_v17 }
  0x25   : > { %1692 = vmatpush.bf16.msra.mxu0 %v4884_v18  ;;  %4913 = vmatpush.bf16.msra.mxu3 %v4884_v18 }
  0x26   : > { %2341 = vmatpush.bf16.msra.mxu1 %v4892_v19 }
  0x27   : > { %2990 = vmatpush.bf16.msra.mxu2 %v4900_v20 }
  0x29   : > { %1693 = vmatpush.bf16.msra.mxu0 %v4883_v21  ;;  %4914 = vmatpush.bf16.msra.mxu3 %v4883_v21 }
  0x2a   : > { %2342 = vmatpush.bf16.msra.mxu1 %v4891_v22 }
  0x2b   : > { %2991 = vmatpush.bf16.msra.mxu2 %v4899_v23 }
  0x2c   : > { %1694 = vmatmul.bf16.vlgmr.msra.gmra.mxu0 %v4723_v24  ;;  %2174 = vmatmul.bf16.vlgmr.msra.gmra.mxu3 %v4819_v25 }
  0x2d   : > { %4915 = vmatpush.bf16.msrb.mxu3 %v4898_v1  ;;  %2343 = vmatmul.bf16.vlgmr.msra.gmra.mxu1 %v5224_v26 }
  0x2e   : > { %2992 = vmatmul.bf16.vlgmr.msra.gmra.mxu2 %v5227_v27 }
  0x31   : > { %4916 = vmatpush.bf16.msrb.mxu3 %v4897_v4 }
  0x35   : > { %4917 = vmatpush.bf16.msrb.mxu3 %v4896_v7 }
  0x39   : > { %4918 = vmatpush.bf16.msrb.mxu3 %v4895_v10  ;;  %v4732_v10 = vld [vmem:[%s5213_s17 + $0x48] sm:$0xff] }
  0x3c   : > { %1699 = vmatmul.bf16.gmra.mxu0 %v4724_v28  ;;  %2179 = vmatmul.bf16.gmra.mxu3 %v4820_v29 }
  0x3d   : > { %4919 = vmatpush.bf16.msrb.mxu3 %v4894_v13  ;;  %2348 = vmatmul.bf16.gmra.mxu1 %v5234_v30 }
  0x3e   : > { %2997 = vmatmul.bf16.gmra.mxu2 %v5237_v31 }
  0x41   : > { %4920 = vmatpush.bf16.msrb.mxu3 %v4893_v16 }
  0x45   : > { %4921 = vmatpush.bf16.msrb.mxu3 %v4892_v19 }
  0x49   : > { %4922 = vmatpush.bf16.msrb.mxu3 %v4891_v22 }
  0x4c   : > { %1704 = vmatmul.bf16.gmra.mxu0 %v4725_v32  ;;  %2184 = vmatmul.bf16.gmra.mxu3 %v4821_v33  ;;  %v4733_v32 = vld [vmem:[%s5213_s17 + $0x50] sm:$0xff] }
  0x4d   : > { %4923 = vmatpush.bf16.msra.mxu3 %v5130_v2  ;;  %2353 = vmatmul.bf16.gmra.mxu1 %v5245_v34  ;;  %v4829_v33 = vld [vmem:[%s5213_s17 + $0x350] sm:$0xff] }
  0x4e   : > { %3002 = vmatmul.bf16.gmra.mxu2 %v5248_v35 }
  0x51   : > { %4924 = vmatpush.bf16.msra.mxu3 %v5142_v5 }
  0x55   : > { %4925 = vmatpush.bf16.msra.mxu3 %v5154_v8 }
  0x59   : > { %4926 = vmatpush.bf16.msra.mxu3 %v5166_v11  ;;  %v4828_v11 = vld [vmem:[%s5213_s17 + $0x348] sm:$0xff] }
  0x5c   : > { %1709 = vmatmul.bf16.gmra.mxu0 %v4726_v36  ;;  %2189 = vmatmul.bf16.gmra.mxu3 %v4822_v37 }
  0x5d   : > { %4927 = vmatpush.bf16.msra.mxu3 %v5179_v14  ;;  %2358 = vmatmul.bf16.gmra.mxu1 %v5258_v38  ;;  %v5338_v14 = vld [vmem:[%s5213_s17 + $0xc8] sm:$0xff] }
  0x5e   : > { %3007 = vmatmul.bf16.gmra.mxu2 %v5261_v39 }
  0x61   : > { %4928 = vmatpush.bf16.msra.mxu3 %v5194_v17 }
  0x65   : > { %4929 = vmatpush.bf16.msra.mxu3 %v4900_v20 }
  0x69   : > { %4930 = vmatpush.bf16.msra.mxu3 %v4899_v23 }
  0x6c   : > { %1714 = vmatmul.bf16.gmra.mxu0 %v4727_v40  ;;  %2194 = vmatmul.bf16.gmra.mxu3 %v4823_v41  ;;  %v5356_v40 = vld [vmem:[%s5213_s17 + $0xd0] sm:$0xff] }
  0x6d   : > { %2363 = vmatmul.bf16.gmra.mxu1 %v5270_v42  ;;  %v5359_v41 = vld [vmem:[%s5213_s17 + $0x150] sm:$0xff] }
  0x6e   : > { %3012 = vmatmul.bf16.gmra.mxu2 %v5273_v43 }
  0x7c   : > { %1719 = vmatmul.bf16.gmra.mxu0 %v4728_v44  ;;  %2199 = vmatmul.bf16.gmra.mxu3 %v4824_v45 }
  0x7d   : > { %2368 = vmatmul.bf16.gmra.mxu1 %v5280_v46 }
  0x7e   : > { %3017 = vmatmul.bf16.gmra.mxu2 %v5283_v47 }
  0x8c   : > { %1724 = vmatmul.bf16.gmra.mxu0 %v4729_v48  ;;  %2204 = vmatmul.bf16.gmra.mxu3 %v4825_v49 }
  0x8d   : > { %2373 = vmatmul.bf16.gmra.mxu1 %v5290_v50 }
  0x8e   : > { %3022 = vmatmul.bf16.gmra.mxu2 %v5293_v51 }
  0x9c   : > { %1729 = vmatmul.bf16.gmra.mxu0 %v4730_v52  ;;  %2209 = vmatmul.bf16.gmra.mxu3 %v4826_v53 }
  0x9d   : > { %2378 = vmatmul.bf16.gmra.mxu1 %v5300_v54 }
  0x9e   : > { %3027 = vmatmul.bf16.gmra.mxu2 %v5303_v55 }
  0xa9   : > { %v1695_v59 = vpop.f32.mrf.mxu0 }
  0xaa   : > { %v1696_v62 = vadd.f32 %v5310_v56, %v1695_v59  ;;  %v2344_v63 = vpop.f32.mrf.mxu1 }
  0xac   : > { %1734 = vmatmul.bf16.gmra.mxu0 %v4731_v57  ;;  %2214 = vmatmul.bf16.gmra.mxu3 %v4827_v58  ;;  %v2345_v0 = vadd.f32 %v2344_v63, %v1696_v62 }
  0xad   : > { %2383 = vmatmul.bf16.gmra.mxu1 %v5315_v60 }
  0xae   : > { %3032 = vmatmul.bf16.gmra.mxu2 %v5318_v61 }
  0xaf   : > { %v5324_v1 = vpop.f32.mrf.mxu3 }
  0xb1   : > { %v2993_v2 = vpop.f32.mrf.mxu2  ;;  %v1697_v4 = vpop.f32.mrf.mxu0 }
  0xb2   : > { %v2994_v3 = vadd.f32 %v2993_v2, %v2345_v0  ;;  %v2346_v5 = vpop.f32.mrf.mxu1  ;;  %v1698_v6 = vadd.f32 %v5310_v56, %v1697_v4  ;;  %v4734_v2 = vld [vmem:[%s5213_s17 + $0x58] sm:$0xff] }
  0xb4   : > { %3633 = vst [vmem:[%s5329_s27] sm:$0xff] %v2994_v3  ;;  %v2347_v7 = vadd.f32 %v2346_v5, %v1698_v6  ;;  %v4830_v3 = vld [vmem:[%s5213_s17 + $0x358] sm:$0xff] }
  0xb5   : > { %v5374_v6 = vld [vmem:[%s5213_s17 + $0xd8] sm:$0xff] }
  0xb7   : > { %v5333_v8 = vpop.f32.mrf.mxu3 }
  0xb9   : > { %v2995_v9 = vpop.f32.mrf.mxu2  ;;  %v1700_v13 = vpop.f32.mrf.mxu0 }
  0xba   : > { %v2996_v12 = vadd.f32 %v2995_v9, %v2347_v7  ;;  %v1701_v16 = vadd.f32 %v5310_v56, %v1700_v13  ;;  %v2349_v17 = vpop.f32.mrf.mxu1  ;;  %v5377_v7 = vld [vmem:[%s5213_s17 + $0x158] sm:$0xff] }
  0xbc   : > { %3634 = vst [vmem:[%s5329_s27 + $0x8] sm:$0xff] %v2996_v12  ;;  %1739 = vmatmul.bf16.gmra.mxu0 %v4732_v10  ;;  %2219 = vmatmul.bf16.gmra.mxu3 %v4828_v11  ;;  %v2350_v18 = vadd.f32 %v2349_v17, %v1701_v16 }
  0xbd   : > { %2388 = vmatmul.bf16.gmra.mxu1 %v5338_v14 }
  0xbe   : > { %3037 = vmatmul.bf16.gmra.mxu2 %v5341_v15 }
  0xbf   : > { %v5347_v19 = vpop.f32.mrf.mxu3 }
  0xc1   : > { %v2998_v20 = vpop.f32.mrf.mxu2  ;;  %v1702_v22 = vpop.f32.mrf.mxu0 }
  0xc2   : > { %v2999_v21 = vadd.f32 %v2998_v20, %v2350_v18  ;;  %v2351_v23 = vpop.f32.mrf.mxu1  ;;  %v1703_v24 = vadd.f32 %v5310_v56, %v1702_v22 }
  0xc4   : > { %3635 = vst [vmem:[%s5329_s27 + $0x10] sm:$0xff] %v2999_v21  ;;  %v2352_v25 = vadd.f32 %v2351_v23, %v1703_v24  ;;  %v4735_v24 = vld [vmem:[%s5213_s17 + $0x60] sm:$0xff] }
  0xc7   : > { %v5351_v28 = vpop.f32.mrf.mxu3 }
  0xc9   : > { %v3000_v29 = vpop.f32.mrf.mxu2  ;;  %v1705_v37 = vpop.f32.mrf.mxu0 }
  0xca   : > { %v3001_v36 = vadd.f32 %v3000_v29, %v2352_v25  ;;  %v1706_v44 = vadd.f32 %v5310_v56, %v1705_v37  ;;  %v2354_v45 = vpop.f32.mrf.mxu1  ;;  %v4831_v25 = vld [vmem:[%s5213_s17 + $0x360] sm:$0xff] }
  0xcc   : > { %3636 = vst [vmem:[%s5329_s27 + $0x18] sm:$0xff] %v3001_v36  ;;  %1744 = vmatmul.bf16.gmra.mxu0 %v4733_v32  ;;  %2224 = vmatmul.bf16.gmra.mxu3 %v4829_v33  ;;  %v2355_v48 = vadd.f32 %v2354_v45, %v1706_v44  ;;  %v5392_v33 = vld [vmem:[%s5213_s17 + $0xe0] sm:$0xff] }
  0xcd   : > { %2393 = vmatmul.bf16.gmra.mxu1 %v5356_v40  ;;  %v5395_v36 = vld [vmem:[%s5213_s17 + $0x160] sm:$0xff] }
  0xce   : > { %3042 = vmatmul.bf16.gmra.mxu2 %v5359_v41 }
  0xcf   : > { %v5365_v49 = vpop.f32.mrf.mxu3 }
  0xd1   : > { %v3003_v52 = vpop.f32.mrf.mxu2  ;;  %v1707_v57 = vpop.f32.mrf.mxu0 }
  0xd2   : > { %v3004_v53 = vadd.f32 %v3003_v52, %v2355_v48  ;;  %v2356_v58 = vpop.f32.mrf.mxu1  ;;  %v1708_v59 = vadd.f32 %v5310_v56, %v1707_v57 }
  0xd4   : > { %3637 = vst [vmem:[%s5329_s27 + $0x20] sm:$0xff] %v3004_v53  ;;  %v2357_v62 = vadd.f32 %v2356_v58, %v1708_v59 }
  0xd7   : > { %v5369_v63 = vpop.f32.mrf.mxu3 }
  0xd9   : > { %v3005_v0 = vpop.f32.mrf.mxu2  ;;  %v1710_v5 = vpop.f32.mrf.mxu0 }
  0xda   : > { %v3006_v4 = vadd.f32 %v3005_v0, %v2357_v62  ;;  %v1711_v9 = vadd.f32 %v5310_v56, %v1710_v5  ;;  %v2359_v10 = vpop.f32.mrf.mxu1 }
  0xdc   : > { %3638 = vst [vmem:[%s5329_s27 + $0x28] sm:$0xff] %v3006_v4  ;;  %1749 = vmatmul.bf16.gmra.mxu0 %v4734_v2  ;;  %2229 = vmatmul.bf16.gmra.mxu3 %v4830_v3  ;;  %v2360_v11 = vadd.f32 %v2359_v10, %v1711_v9  ;;  %v4736_v3 = vld [vmem:[%s5213_s17 + $0x68] sm:$0xff] }
  0xdd   : > { %2398 = vmatmul.bf16.gmra.mxu1 %v5374_v6  ;;  %v4832_v4 = vld [vmem:[%s5213_s17 + $0x368] sm:$0xff] }
  0xde   : > { %3047 = vmatmul.bf16.gmra.mxu2 %v5377_v7  ;;  %v5410_v10 = vld [vmem:[%s5213_s17 + $0xe8] sm:$0xff] }
  0xdf   : > { %v5383_v12 = vpop.f32.mrf.mxu3 }
  0xe1   : > { %v3008_v13 = vpop.f32.mrf.mxu2  ;;  %v1712_v17 = vpop.f32.mrf.mxu0 }
  0xe2   : > { %v3009_v16 = vadd.f32 %v3008_v13, %v2360_v11  ;;  %v2361_v18 = vpop.f32.mrf.mxu1  ;;  %v1713_v20 = vadd.f32 %v5310_v56, %v1712_v17  ;;  %v5413_v11 = vld [vmem:[%s5213_s17 + $0x168] sm:$0xff] }
  0xe4   : > { %3639 = vst [vmem:[%s5329_s27 + $0x30] sm:$0xff] %v3009_v16  ;;  %v2362_v21 = vadd.f32 %v2361_v18, %v1713_v20 }
  0xe7   : > { %v5387_v22 = vpop.f32.mrf.mxu3 }
  0xe9   : > { %v3010_v23 = vpop.f32.mrf.mxu2  ;;  %v1715_v32 = vpop.f32.mrf.mxu0 }
  0xea   : > { %v3011_v29 = vadd.f32 %v3010_v23, %v2362_v21  ;;  %v1716_v37 = vadd.f32 %v5310_v56, %v1715_v32  ;;  %v2364_v44 = vpop.f32.mrf.mxu1 }
  0xec   : > { %3640 = vst [vmem:[%s5329_s27 + $0x38] sm:$0xff] %v3011_v29  ;;  %1754 = vmatmul.bf16.gmra.mxu0 %v4735_v24  ;;  %2234 = vmatmul.bf16.gmra.mxu3 %v4831_v25  ;;  %v2365_v45 = vadd.f32 %v2364_v44, %v1716_v37  ;;  %v4737_v44 = vld [vmem:[%s5213_s17 + $0x70] sm:$0xff] }
  0xed   : > { %2403 = vmatmul.bf16.gmra.mxu1 %v5392_v33 }
  0xee   : > { %3052 = vmatmul.bf16.gmra.mxu2 %v5395_v36 }
  0xef   : > { %v5401_v48 = vpop.f32.mrf.mxu3 }
  0xf1   : > { %v3013_v52 = vpop.f32.mrf.mxu2  ;;  %v1717_v57 = vpop.f32.mrf.mxu0 }
  0xf2   : > { %v3014_v53 = vadd.f32 %v3013_v52, %v2365_v45  ;;  %v2366_v58 = vpop.f32.mrf.mxu1  ;;  %v1718_v59 = vadd.f32 %v5310_v56, %v1717_v57  ;;  %v4833_v45 = vld [vmem:[%s5213_s17 + $0x370] sm:$0xff] }
  0xf3   : > { %v5428_v57 = vld [vmem:[%s5213_s17 + $0xf0] sm:$0xff] }
  0xf4   : > { %3641 = vst [vmem:[%s5329_s27 + $0x40] sm:$0xff] %v3014_v53  ;;  %v2367_v62 = vadd.f32 %v2366_v58, %v1718_v59  ;;  %v5431_v58 = vld [vmem:[%s5213_s17 + $0x170] sm:$0xff] }
  0xf7   : > { %v5405_v0 = vpop.f32.mrf.mxu3 }
  0xf9   : > { %v3015_v2 = vpop.f32.mrf.mxu2  ;;  %v1720_v9 = vpop.f32.mrf.mxu0 }
  0xfa   : > { %v3016_v5 = vadd.f32 %v3015_v2, %v2367_v62  ;;  %v1721_v13 = vadd.f32 %v5310_v56, %v1720_v9  ;;  %v2369_v16 = vpop.f32.mrf.mxu1 }
  0xfc   : > { %3642 = vst [vmem:[%s5329_s27 + $0x48] sm:$0xff] %v3016_v5  ;;  %1759 = vmatmul.bf16.gmra.mxu0 %v4736_v3  ;;  %2239 = vmatmul.bf16.gmra.mxu3 %v4832_v4  ;;  %v2370_v17 = vadd.f32 %v2369_v16, %v1721_v13 }
  0xfd   : > { %2408 = vmatmul.bf16.gmra.mxu1 %v5410_v10 }
  0xfe   : > { %3057 = vmatmul.bf16.gmra.mxu2 %v5413_v11 }
  0xff   : > { %v5419_v18 = vpop.f32.mrf.mxu3 }
 0x101   : > { %v3018_v20 = vpop.f32.mrf.mxu2  ;;  %v1722_v23 = vpop.f32.mrf.mxu0 }
 0x102   : > { %v3019_v21 = vadd.f32 %v3018_v20, %v2370_v17  ;;  %v2371_v24 = vpop.f32.mrf.mxu1  ;;  %v1723_v25 = vadd.f32 %v5310_v56, %v1722_v23  ;;  %v4738_v23 = vld [vmem:[%s5213_s17 + $0x78] sm:$0xff] }
 0x104   : > { %3643 = vst [vmem:[%s5329_s27 + $0x50] sm:$0xff] %v3019_v21  ;;  %v2372_v29 = vadd.f32 %v2371_v24, %v1723_v25  ;;  %v4834_v24 = vld [vmem:[%s5213_s17 + $0x378] sm:$0xff] }
 0x107   : > { %v5423_v32 = vpop.f32.mrf.mxu3 }
 0x109   : > { %v3020_v37 = vpop.f32.mrf.mxu2  ;;  %v1725_v53 = vpop.f32.mrf.mxu0 }
 0x10a   : > { %v3021_v52 = vadd.f32 %v3020_v37, %v2372_v29  ;;  %v1726_v59 = vadd.f32 %v5310_v56, %v1725_v53  ;;  %v2374_v62 = vpop.f32.mrf.mxu1  ;;  %v5446_v37 = vld [vmem:[%s5213_s17 + $0xf8] sm:$0xff] }
 0x10c   : > { %3644 = vst [vmem:[%s5329_s27 + $0x58] sm:$0xff] %v3021_v52  ;;  %1764 = vmatmul.bf16.gmra.mxu0 %v4737_v44  ;;  %2244 = vmatmul.bf16.gmra.mxu3 %v4833_v45  ;;  %v2375_v2 = vadd.f32 %v2374_v62, %v1726_v59  ;;  %v5449_v44 = vld [vmem:[%s5213_s17 + $0x178] sm:$0xff] }
 0x10d   : > { %2413 = vmatmul.bf16.gmra.mxu1 %v5428_v57 }
 0x10e   : > { %3062 = vmatmul.bf16.gmra.mxu2 %v5431_v58 }
 0x10f   : > { %v5437_v3 = vpop.f32.mrf.mxu3 }
 0x111   : > { %v3023_v4 = vpop.f32.mrf.mxu2  ;;  %v1727_v9 = vpop.f32.mrf.mxu0 }
 0x112   : > { %v3024_v5 = vadd.f32 %v3023_v4, %v2375_v2  ;;  %v2376_v13 = vpop.f32.mrf.mxu1  ;;  %v1728_v16 = vadd.f32 %v5310_v56, %v1727_v9 }
 0x114   : > { %3645 = vst [vmem:[%s5329_s27 + $0x60] sm:$0xff] %v3024_v5  ;;  %v2377_v17 = vadd.f32 %v2376_v13, %v1728_v16 }
 0x117   : > { %v5441_v20 = vpop.f32.mrf.mxu3 }
 0x119   : > { %v3025_v21 = vpop.f32.mrf.mxu2  ;;  %v1730_v29 = vpop.f32.mrf.mxu0 }
 0x11a   : > { %v3026_v25 = vadd.f32 %v3025_v21, %v2377_v17  ;;  %v1731_v45 = vadd.f32 %v5310_v56, %v1730_v29  ;;  %v2379_v52 = vpop.f32.mrf.mxu1  ;;  %v5462_v21 = vld [vmem:[%s5213_s17 + $0x380] sm:$0xff] }
 0x11c   : > { %3646 = vst [vmem:[%s5329_s27 + $0x68] sm:$0xff] %v3026_v25  ;;  %1769 = vmatmul.bf16.gmra.mxu0 %v4738_v23  ;;  %2249 = vmatmul.bf16.gmra.mxu3 %v4834_v24  ;;  %v2380_v53 = vadd.f32 %v2379_v52, %v1731_v45  ;;  %v5465_v25 = vld [vmem:[%s5213_s17 + $0x180] sm:$0xff] }
 0x11d   : > { %2418 = vmatmul.bf16.gmra.mxu1 %v5446_v37 }
 0x11e   : > { %3067 = vmatmul.bf16.gmra.mxu2 %v5449_v44 }
 0x11f   : > { %v5455_v59 = vpop.f32.mrf.mxu3 }
 0x121   : > { %v3028_v62 = vpop.f32.mrf.mxu2  ;;  %v1732_v4 = vpop.f32.mrf.mxu0 }
 0x122   : > { %v3029_v2 = vadd.f32 %v3028_v62, %v2380_v53  ;;  %v2381_v5 = vpop.f32.mrf.mxu1  ;;  %v1733_v9 = vadd.f32 %v5310_v56, %v1732_v4 }
 0x124   : > { %3647 = vst [vmem:[%s5329_s27 + $0x70] sm:$0xff] %v3029_v2  ;;  %v2382_v13 = vadd.f32 %v2381_v5, %v1733_v9 }
 0x127   : > { %v5459_v16 = vpop.f32.mrf.mxu3 }
 0x129   : > { %v3030_v17 = vpop.f32.mrf.mxu2  ;;  %v1735_v24 = vpop.f32.mrf.mxu0 }
 0x12a   : > { %v3031_v23 = vadd.f32 %v3030_v17, %v2382_v13  ;;  %v1736_v29 = vadd.f32 %v5310_v56, %v1735_v24  ;;  %v2384_v45 = vpop.f32.mrf.mxu1 }
 0x12c   : > { %3648 = vst [vmem:[%s5329_s27 + $0x78] sm:$0xff] %v3031_v23  ;;  %1774 = vmatmul.bf16.gmra.mxu0 %v5224_v26  ;;  %2254 = vmatmul.bf16.gmra.mxu3 %v5462_v21  ;;  %v2385_v52 = vadd.f32 %v2384_v45, %v1736_v29  ;;  %v5480_v23 = vld [vmem:[%s5213_s17 + $0x388] sm:$0xff] }
 0x12d   : > { %2423 = vmatmul.bf16.gmra.mxu1 %v5227_v27  ;;  %v5483_v29 = vld [vmem:[%s5213_s17 + $0x188] sm:$0xff] }
 0x12e   : > { %3072 = vmatmul.bf16.gmra.mxu2 %v5465_v25 }
 0x12f   : > { %v5473_v53 = vpop.f32.mrf.mxu3 }
 0x130   : > { %6937 = vst [vmem:[#allocation2_spill] sm:$0xff] %v5473_v53 }
 0x131   : > { %v3033_v62 = vpop.f32.mrf.mxu2  ;;  %v1737_v4 = vpop.f32.mrf.mxu0 }
 0x132   : > { %v3034_v2 = vadd.f32 %v3033_v62, %v2385_v52  ;;  %v2386_v5 = vpop.f32.mrf.mxu1  ;;  %v1738_v9 = vadd.f32 %v5310_v56, %v1737_v4 }
 0x134   : > { %3649 = vst [vmem:[%s5329_s27 + $0x80] sm:$0xff] %v3034_v2  ;;  %v2387_v13 = vadd.f32 %v2386_v5, %v1738_v9 }
 0x137   : > { %v5477_v26 = vpop.f32.mrf.mxu3 }
 0x138   : > { %6938 = vst [vmem:[#allocation3_spill] sm:$0xff] %v5477_v26 }
 0x139   : > { %v3035_v17 = vpop.f32.mrf.mxu2  ;;  %v1740_v27 = vpop.f32.mrf.mxu0 }
 0x13a   : > { %v3036_v24 = vadd.f32 %v3035_v17, %v2387_v13  ;;  %v1741_v45 = vadd.f32 %v5310_v56, %v1740_v27  ;;  %v2389_v53 = vpop.f32.mrf.mxu1 }
 0x13c   : > { %3650 = vst [vmem:[%s5329_s27 + $0x88] sm:$0xff] %v3036_v24  ;;  %1779 = vmatmul.bf16.gmra.mxu0 %v5234_v30  ;;  %2259 = vmatmul.bf16.gmra.mxu3 %v5480_v23  ;;  %v2390_v52 = vadd.f32 %v2389_v53, %v1741_v45  ;;  %v5498_v53 = vld [vmem:[%s5213_s17 + $0x390] sm:$0xff] }
 0x13d   : > { %2428 = vmatmul.bf16.gmra.mxu1 %v5237_v31  ;;  %v5501_v45 = vld [vmem:[%s5213_s17 + $0x190] sm:$0xff] }
 0x13e   : > { %3077 = vmatmul.bf16.gmra.mxu2 %v5483_v29 }
 0x13f   : > { %v5491_v62 = vpop.f32.mrf.mxu3 }
 0x140   : > { %6939 = vst [vmem:[#allocation4_spill] sm:$0xff] %v5491_v62 }
 0x141   : > { %v3038_v2 = vpop.f32.mrf.mxu2  ;;  %v1742_v5 = vpop.f32.mrf.mxu0 }
 0x142   : > { %v3039_v4 = vadd.f32 %v3038_v2, %v2390_v52  ;;  %v2391_v9 = vpop.f32.mrf.mxu1  ;;  %v1743_v13 = vadd.f32 %v5310_v56, %v1742_v5 }
 0x144   : > { %3651 = vst [vmem:[%s5329_s27 + $0x90] sm:$0xff] %v3039_v4  ;;  %v2392_v17 = vadd.f32 %v2391_v9, %v1743_v13 }
 0x147   : > { %v5495_v30 = vpop.f32.mrf.mxu3 }
 0x148   : > { %6940 = vst [vmem:[#allocation5_spill] sm:$0xff] %v5495_v30 }
 0x149   : > { %v3040_v24 = vpop.f32.mrf.mxu2  ;;  %v1745_v31 = vpop.f32.mrf.mxu0 }
 0x14a   : > { %v3041_v27 = vadd.f32 %v3040_v24, %v2392_v17  ;;  %v1746_v62 = vadd.f32 %v5310_v56, %v1745_v31  ;;  %v2394_v26 = vpop.f32.mrf.mxu1  ;;  %v5519_v31 = vld [vmem:[%s5213_s17 + $0x198] sm:$0xff] }
 0x14c   : > { %3652 = vst [vmem:[%s5329_s27 + $0x98] sm:$0xff] %v3041_v27  ;;  %1784 = vmatmul.bf16.gmra.mxu0 %v5245_v34  ;;  %2264 = vmatmul.bf16.gmra.mxu3 %v5498_v53  ;;  %v2395_v52 = vadd.f32 %v2394_v26, %v1746_v62  ;;  %v5516_v26 = vld [vmem:[%s5213_s17 + $0x398] sm:$0xff] }
 0x14d   : > { %2433 = vmatmul.bf16.gmra.mxu1 %v5248_v35 }
 0x14e   : > { %3082 = vmatmul.bf16.gmra.mxu2 %v5501_v45 }
 0x14f   : > { %v5509_v2 = vpop.f32.mrf.mxu3 }
 0x150   : > { %6941 = vst [vmem:[#allocation6_spill] sm:$0xff] %v5509_v2 }
 0x151   : > { %v3043_v4 = vpop.f32.mrf.mxu2  ;;  %v1747_v9 = vpop.f32.mrf.mxu0 }
 0x152   : > { %v3044_v5 = vadd.f32 %v3043_v4, %v2395_v52  ;;  %v2396_v13 = vpop.f32.mrf.mxu1  ;;  %v1748_v17 = vadd.f32 %v5310_v56, %v1747_v9 }
 0x154   : > { %3653 = vst [vmem:[%s5329_s27 + $0xa0] sm:$0xff] %v3044_v5  ;;  %v2397_v24 = vadd.f32 %v2396_v13, %v1748_v17 }
 0x157   : > { %v5513_v34 = vpop.f32.mrf.mxu3 }
 0x158   : > { %6942 = vst [vmem:[#allocation7_spill] sm:$0xff] %v5513_v34 }
 0x159   : > { %v3045_v27 = vpop.f32.mrf.mxu2  ;;  %v1750_v35 = vpop.f32.mrf.mxu0 }
 0x15a   : > { %v3046_v62 = vadd.f32 %v3045_v27, %v2397_v24  ;;  %v1751_v2 = vadd.f32 %v5310_v56, %v1750_v35  ;;  %v2399_v30 = vpop.f32.mrf.mxu1  ;;  %v5537_v35 = vld [vmem:[%s5213_s17 + $0x1a0] sm:$0xff] }
 0x15c   : > { %3654 = vst [vmem:[%s5329_s27 + $0xa8] sm:$0xff] %v3046_v62  ;;  %1789 = vmatmul.bf16.gmra.mxu0 %v5258_v38  ;;  %2269 = vmatmul.bf16.gmra.mxu3 %v5516_v26  ;;  %v2400_v52 = vadd.f32 %v2399_v30, %v1751_v2  ;;  %v5534_v30 = vld [vmem:[%s5213_s17 + $0x3a0] sm:$0xff] }
 0x15d   : > { %2438 = vmatmul.bf16.gmra.mxu1 %v5261_v39 }
 0x15e   : > { %3087 = vmatmul.bf16.gmra.mxu2 %v5519_v31 }
 0x15f   : > { %v5527_v4 = vpop.f32.mrf.mxu3 }
 0x160   : > { %6943 = vst [vmem:[#allocation8_spill] sm:$0xff] %v5527_v4 }
 0x161   : > { %v3048_v5 = vpop.f32.mrf.mxu2  ;;  %v1752_v13 = vpop.f32.mrf.mxu0 }
 0x162   : > { %v3049_v9 = vadd.f32 %v3048_v5, %v2400_v52  ;;  %v2401_v17 = vpop.f32.mrf.mxu1  ;;  %v1753_v24 = vadd.f32 %v5310_v56, %v1752_v13 }
 0x164   : > { %3655 = vst [vmem:[%s5329_s27 + $0xb0] sm:$0xff] %v3049_v9  ;;  %v2402_v27 = vadd.f32 %v2401_v17, %v1753_v24 }
 0x167   : > { %v5531_v38 = vpop.f32.mrf.mxu3 }
 0x168   : > { %6944 = vst [vmem:[#allocation9_spill] sm:$0xff] %v5531_v38 }
 0x169   : > { %v3050_v62 = vpop.f32.mrf.mxu2  ;;  %v1755_v39 = vpop.f32.mrf.mxu0 }
 0x16a   : > { %v3051_v2 = vadd.f32 %v3050_v62, %v2402_v27  ;;  %v1756_v4 = vadd.f32 %v5310_v56, %v1755_v39  ;;  %v2404_v34 = vpop.f32.mrf.mxu1  ;;  %v5555_v39 = vld [vmem:[%s5213_s17 + $0x1a8] sm:$0xff] }
 0x16c   : > { %3656 = vst [vmem:[%s5329_s27 + $0xb8] sm:$0xff] %v3051_v2  ;;  %1794 = vmatmul.bf16.gmra.mxu0 %v5270_v42  ;;  %2274 = vmatmul.bf16.gmra.mxu3 %v5534_v30  ;;  %v2405_v52 = vadd.f32 %v2404_v34, %v1756_v4  ;;  %v5552_v34 = vld [vmem:[%s5213_s17 + $0x3a8] sm:$0xff] }
 0x16d   : > { %2443 = vmatmul.bf16.gmra.mxu1 %v5273_v43 }
 0x16e   : > { %3092 = vmatmul.bf16.gmra.mxu2 %v5537_v35 }
 0x16f   : > { %v5545_v5 = vpop.f32.mrf.mxu3 }
 0x170   : > { %6945 = vst [vmem:[#allocation10_spill] sm:$0xff] %v5545_v5 }
 0x171   : > { %v3053_v9 = vpop.f32.mrf.mxu2  ;;  %v1757_v17 = vpop.f32.mrf.mxu0 }
 0x172   : > { %v3054_v13 = vadd.f32 %v3053_v9, %v2405_v52  ;;  %v2406_v24 = vpop.f32.mrf.mxu1  ;;  %v1758_v27 = vadd.f32 %v5310_v56, %v1757_v17 }
 0x174   : > { %3657 = vst [vmem:[%s5329_s27 + $0xc0] sm:$0xff] %v3054_v13  ;;  %v2407_v62 = vadd.f32 %v2406_v24, %v1758_v27 }
 0x177   : > { %v5549_v42 = vpop.f32.mrf.mxu3 }
 0x178   : > { %6946 = vst [vmem:[#allocation11_spill] sm:$0xff] %v5549_v42 }
 0x179   : > { %v3055_v2 = vpop.f32.mrf.mxu2  ;;  %v1760_v43 = vpop.f32.mrf.mxu0 }
 0x17a   : > { %v3056_v4 = vadd.f32 %v3055_v2, %v2407_v62  ;;  %v1761_v5 = vadd.f32 %v5310_v56, %v1760_v43  ;;  %v2409_v38 = vpop.f32.mrf.mxu1  ;;  %v5573_v43 = vld [vmem:[%s5213_s17 + $0x1b0] sm:$0xff] }
 0x17c   : > { %3658 = vst [vmem:[%s5329_s27 + $0xc8] sm:$0xff] %v3056_v4  ;;  %1799 = vmatmul.bf16.gmra.mxu0 %v5280_v46  ;;  %2279 = vmatmul.bf16.gmra.mxu3 %v5552_v34  ;;  %v2410_v52 = vadd.f32 %v2409_v38, %v1761_v5  ;;  %v5570_v38 = vld [vmem:[%s5213_s17 + $0x3b0] sm:$0xff] }
 0x17d   : > { %2448 = vmatmul.bf16.gmra.mxu1 %v5283_v47 }
 0x17e   : > { %3097 = vmatmul.bf16.gmra.mxu2 %v5555_v39 }
 0x17f   : > { %v5563_v9 = vpop.f32.mrf.mxu3 }
 0x180   : > { %6947 = vst [vmem:[#allocation12_spill] sm:$0xff] %v5563_v9 }
 0x181   : > { %v3058_v13 = vpop.f32.mrf.mxu2  ;;  %v1762_v24 = vpop.f32.mrf.mxu0 }
 0x182   : > { %v3059_v17 = vadd.f32 %v3058_v13, %v2410_v52  ;;  %v2411_v27 = vpop.f32.mrf.mxu1  ;;  %v1763_v62 = vadd.f32 %v5310_v56, %v1762_v24 }
 0x184   : > { %3659 = vst [vmem:[%s5329_s27 + $0xd0] sm:$0xff] %v3059_v17  ;;  %v2412_v2 = vadd.f32 %v2411_v27, %v1763_v62 }
 0x187   : > { %v5567_v46 = vpop.f32.mrf.mxu3 }
 0x188   : > { %6948 = vst [vmem:[#allocation13_spill] sm:$0xff] %v5567_v46 }
 0x189   : > { %v3060_v4 = vpop.f32.mrf.mxu2  ;;  %v1765_v47 = vpop.f32.mrf.mxu0 }
 0x18a   : > { %v3061_v5 = vadd.f32 %v3060_v4, %v2412_v2  ;;  %v1766_v9 = vadd.f32 %v5310_v56, %v1765_v47  ;;  %v2414_v42 = vpop.f32.mrf.mxu1  ;;  %v5591_v47 = vld [vmem:[%s5213_s17 + $0x1b8] sm:$0xff] }
 0x18c   : > { %3660 = vst [vmem:[%s5329_s27 + $0xd8] sm:$0xff] %v3061_v5  ;;  %1804 = vmatmul.bf16.gmra.mxu0 %v5290_v50  ;;  %2284 = vmatmul.bf16.gmra.mxu3 %v5570_v38  ;;  %v2415_v52 = vadd.f32 %v2414_v42, %v1766_v9  ;;  %v5588_v42 = vld [vmem:[%s5213_s17 + $0x3b8] sm:$0xff] }
 0x18d   : > { %2453 = vmatmul.bf16.gmra.mxu1 %v5293_v51 }
 0x18e   : > { %3102 = vmatmul.bf16.gmra.mxu2 %v5573_v43 }
 0x18f   : > { %v5581_v13 = vpop.f32.mrf.mxu3 }
 0x190   : > { %6949 = vst [vmem:[#allocation14_spill] sm:$0xff] %v5581_v13 }
 0x191   : > { %v3063_v17 = vpop.f32.mrf.mxu2  ;;  %v1767_v27 = vpop.f32.mrf.mxu0 }
 0x192   : > { %v3064_v24 = vadd.f32 %v3063_v17, %v2415_v52  ;;  %v2416_v62 = vpop.f32.mrf.mxu1  ;;  %v1768_v2 = vadd.f32 %v5310_v56, %v1767_v27 }
 0x194   : > { %3661 = vst [vmem:[%s5329_s27 + $0xe0] sm:$0xff] %v3064_v24  ;;  %v2417_v4 = vadd.f32 %v2416_v62, %v1768_v2 }
 0x197   : > { %v5585_v50 = vpop.f32.mrf.mxu3 }
 0x198   : > { %6950 = vst [vmem:[#allocation15_spill] sm:$0xff] %v5585_v50 }
 0x199   : > { %v3065_v5 = vpop.f32.mrf.mxu2  ;;  %v1770_v51 = vpop.f32.mrf.mxu0 }
 0x19a   : > { %v3066_v9 = vadd.f32 %v3065_v5, %v2417_v4  ;;  %v1771_v13 = vadd.f32 %v5310_v56, %v1770_v51  ;;  %v2419_v46 = vpop.f32.mrf.mxu1  ;;  %v5609_v51 = vld [vmem:[%s5213_s17 + $0x1c0] sm:$0xff] }
 0x19c   : > { %3662 = vst [vmem:[%s5329_s27 + $0xe8] sm:$0xff] %v3066_v9  ;;  %1809 = vmatmul.bf16.gmra.mxu0 %v5300_v54  ;;  %2289 = vmatmul.bf16.gmra.mxu3 %v5588_v42  ;;  %v2420_v52 = vadd.f32 %v2419_v46, %v1771_v13  ;;  %v5606_v46 = vld [vmem:[%s5213_s17 + $0x3c0] sm:$0xff] }
 0x19d   : > { %2458 = vmatmul.bf16.gmra.mxu1 %v5303_v55 }
 0x19e   : > { %3107 = vmatmul.bf16.gmra.mxu2 %v5591_v47 }
 0x19f   : > { %v5599_v17 = vpop.f32.mrf.mxu3 }
 0x1a0   : > { %6951 = vst [vmem:[#allocation16_spill] sm:$0xff] %v5599_v17 }
 0x1a1   : > { %v3068_v24 = vpop.f32.mrf.mxu2  ;;  %v1772_v62 = vpop.f32.mrf.mxu0 }
 0x1a2   : > { %v3069_v27 = vadd.f32 %v3068_v24, %v2420_v52  ;;  %v2421_v2 = vpop.f32.mrf.mxu1  ;;  %v1773_v4 = vadd.f32 %v5310_v56, %v1772_v62 }
 0x1a4   : > { %3663 = vst [vmem:[%s5329_s27 + $0xf0] sm:$0xff] %v3069_v27  ;;  %v2422_v5 = vadd.f32 %v2421_v2, %v1773_v4 }
 0x1a7   : > { %v5603_v54 = vpop.f32.mrf.mxu3 }
 0x1a8   : > { %6952 = vst [vmem:[#allocation17_spill] sm:$0xff] %v5603_v54 }
 0x1a9   : > { %v3070_v9 = vpop.f32.mrf.mxu2  ;;  %v1775_v55 = vpop.f32.mrf.mxu0 }
 0x1aa   : > { %v3071_v13 = vadd.f32 %v3070_v9, %v2422_v5  ;;  %v1776_v17 = vadd.f32 %v5310_v56, %v1775_v55  ;;  %v2424_v50 = vpop.f32.mrf.mxu1  ;;  %v5627_v55 = vld [vmem:[%s5213_s17 + $0x1c8] sm:$0xff] }
 0x1ac   : > { %3664 = vst [vmem:[%s5329_s27 + $0xf8] sm:$0xff] %v3071_v13  ;;  %1814 = vmatmul.bf16.gmra.mxu0 %v5315_v60  ;;  %2294 = vmatmul.bf16.gmra.mxu3 %v5606_v46  ;;  %v2425_v52 = vadd.f32 %v2424_v50, %v1776_v17  ;;  %v5624_v50 = vld [vmem:[%s5213_s17 + $0x3c8] sm:$0xff] }
 0x1ad   : > { %2463 = vmatmul.bf16.gmra.mxu1 %v5318_v61 }
 0x1ae   : > { %3112 = vmatmul.bf16.gmra.mxu2 %v5609_v51 }
 0x1af   : > { %v5617_v24 = vpop.f32.mrf.mxu3 }
 0x1b0   : > { %6953 = vst [vmem:[#allocation18_spill] sm:$0xff] %v5617_v24 }
 0x1b1   : > { %v3073_v27 = vpop.f32.mrf.mxu2  ;;  %v1777_v2 = vpop.f32.mrf.mxu0 }
 0x1b2   : > { %v3074_v62 = vadd.f32 %v3073_v27, %v2425_v52  ;;  %v2426_v4 = vpop.f32.mrf.mxu1  ;;  %v1778_v5 = vadd.f32 %v5310_v56, %v1777_v2 }
 0x1b4   : > { %3665 = vst [vmem:[%s5329_s27 + $0x100] sm:$0xff] %v3074_v62  ;;  %v2427_v9 = vadd.f32 %v2426_v4, %v1778_v5 }
 0x1b7   : > { %v5621_v60 = vpop.f32.mrf.mxu3 }
 0x1b8   : > { %6954 = vst [vmem:[#allocation19_spill] sm:$0xff] %v5621_v60 }
 0x1b9   : > { %v3075_v13 = vpop.f32.mrf.mxu2  ;;  %v1780_v61 = vpop.f32.mrf.mxu0 }
 0x1ba   : > { %v3076_v17 = vadd.f32 %v3075_v13, %v2427_v9  ;;  %v1781_v24 = vadd.f32 %v5310_v56, %v1780_v61  ;;  %v2429_v54 = vpop.f32.mrf.mxu1  ;;  %v5645_v61 = vld [vmem:[%s5213_s17 + $0x1d0] sm:$0xff] }
 0x1bc   : > { %3666 = vst [vmem:[%s5329_s27 + $0x108] sm:$0xff] %v3076_v17  ;;  %1819 = vmatmul.bf16.gmra.mxu0 %v5338_v14  ;;  %2299 = vmatmul.bf16.gmra.mxu3 %v5624_v50  ;;  %v2430_v52 = vadd.f32 %v2429_v54, %v1781_v24  ;;  %v5642_v54 = vld [vmem:[%s5213_s17 + $0x3d0] sm:$0xff] }
 0x1bd   : > { %2468 = vmatmul.bf16.gmra.mxu1 %v5341_v15 }
 0x1be   : > { %3117 = vmatmul.bf16.gmra.mxu2 %v5627_v55 }
 0x1bf   : > { %v5635_v27 = vpop.f32.mrf.mxu3 }
 0x1c0   : > { %6955 = vst [vmem:[#allocation20_spill] sm:$0xff] %v5635_v27 }
 0x1c1   : > { %v3078_v62 = vpop.f32.mrf.mxu2  ;;  %v1782_v4 = vpop.f32.mrf.mxu0 }
 0x1c2   : > { %v3079_v2 = vadd.f32 %v3078_v62, %v2430_v52  ;;  %v2431_v5 = vpop.f32.mrf.mxu1  ;;  %v1783_v9 = vadd.f32 %v5310_v56, %v1782_v4 }
 0x1c4   : > { %3667 = vst [vmem:[%s5329_s27 + $0x110] sm:$0xff] %v3079_v2  ;;  %v2432_v13 = vadd.f32 %v2431_v5, %v1783_v9 }
 0x1c7   : > { %v5639_v14 = vpop.f32.mrf.mxu3 }
 0x1c8   : > { %6956 = vst [vmem:[#allocation21_spill] sm:$0xff] %v5639_v14 }
 0x1c9   : > { %v3080_v17 = vpop.f32.mrf.mxu2  ;;  %v1785_v15 = vpop.f32.mrf.mxu0 }
 0x1ca   : > { %v3081_v24 = vadd.f32 %v3080_v17, %v2432_v13  ;;  %v1786_v27 = vadd.f32 %v5310_v56, %v1785_v15  ;;  %v2434_v60 = vpop.f32.mrf.mxu1  ;;  %v5663_v15 = vld [vmem:[%s5213_s17 + $0x1d8] sm:$0xff] }
 0x1cc   : > { %3668 = vst [vmem:[%s5329_s27 + $0x118] sm:$0xff] %v3081_v24  ;;  %1824 = vmatmul.bf16.gmra.mxu0 %v5356_v40  ;;  %2304 = vmatmul.bf16.gmra.mxu3 %v5642_v54  ;;  %v2435_v52 = vadd.f32 %v2434_v60, %v1786_v27  ;;  %v5660_v60 = vld [vmem:[%s5213_s17 + $0x3d8] sm:$0xff] }
 0x1cd   : > { %2473 = vmatmul.bf16.gmra.mxu1 %v5359_v41 }
 0x1ce   : > { %3122 = vmatmul.bf16.gmra.mxu2 %v5645_v61 }
 0x1cf   : > { %v5653_v62 = vpop.f32.mrf.mxu3 }
 0x1d0   : > { %6957 = vst [vmem:[#allocation22_spill] sm:$0xff] %v5653_v62 }
 0x1d1   : > { %v3083_v2 = vpop.f32.mrf.mxu2  ;;  %v1787_v5 = vpop.f32.mrf.mxu0 }
 0x1d2   : > { %v3084_v4 = vadd.f32 %v3083_v2, %v2435_v52  ;;  %v2436_v9 = vpop.f32.mrf.mxu1  ;;  %v1788_v13 = vadd.f32 %v5310_v56, %v1787_v5 }
 0x1d4   : > { %3669 = vst [vmem:[%s5329_s27 + $0x120] sm:$0xff] %v3084_v4  ;;  %v2437_v17 = vadd.f32 %v2436_v9, %v1788_v13 }
 0x1d7   : > { %v5657_v40 = vpop.f32.mrf.mxu3 }
 0x1d8   : > { %6958 = vst [vmem:[#allocation23_spill] sm:$0xff] %v5657_v40 }
 0x1d9   : > { %v3085_v24 = vpop.f32.mrf.mxu2  ;;  %v1790_v41 = vpop.f32.mrf.mxu0 }
 0x1da   : > { %v3086_v27 = vadd.f32 %v3085_v24, %v2437_v17  ;;  %v1791_v62 = vadd.f32 %v5310_v56, %v1790_v41  ;;  %v2439_v14 = vpop.f32.mrf.mxu1  ;;  %v5681_v41 = vld [vmem:[%s5213_s17 + $0x1e0] sm:$0xff] }
 0x1dc   : > { %3670 = vst [vmem:[%s5329_s27 + $0x128] sm:$0xff] %v3086_v27  ;;  %1829 = vmatmul.bf16.gmra.mxu0 %v5374_v6  ;;  %2309 = vmatmul.bf16.gmra.mxu3 %v5660_v60  ;;  %v2440_v52 = vadd.f32 %v2439_v14, %v1791_v62  ;;  %v5678_v14 = vld [vmem:[%s5213_s17 + $0x3e0] sm:$0xff] }
 0x1dd   : > { %2478 = vmatmul.bf16.gmra.mxu1 %v5377_v7 }
 0x1de   : > { %3127 = vmatmul.bf16.gmra.mxu2 %v5663_v15 }
 0x1df   : > { %v5671_v2 = vpop.f32.mrf.mxu3 }
 0x1e0   : > { %6959 = vst [vmem:[#allocation24_spill] sm:$0xff] %v5671_v2 }
 0x1e1   : > { %v3088_v4 = vpop.f32.mrf.mxu2  ;;  %v1792_v9 = vpop.f32.mrf.mxu0 }
 0x1e2   : > { %v3089_v5 = vadd.f32 %v3088_v4, %v2440_v52  ;;  %v2441_v13 = vpop.f32.mrf.mxu1  ;;  %v1793_v17 = vadd.f32 %v5310_v56, %v1792_v9 }
 0x1e4   : > { %3671 = vst [vmem:[%s5329_s27 + $0x130] sm:$0xff] %v3089_v5  ;;  %v2442_v24 = vadd.f32 %v2441_v13, %v1793_v17 }
 0x1e7   : > { %v5675_v6 = vpop.f32.mrf.mxu3 }
 0x1e8   : > { %6960 = vst [vmem:[#allocation25_spill] sm:$0xff] %v5675_v6 }
 0x1e9   : > { %v3090_v27 = vpop.f32.mrf.mxu2  ;;  %v1795_v7 = vpop.f32.mrf.mxu0 }
 0x1ea   : > { %v3091_v62 = vadd.f32 %v3090_v27, %v2442_v24  ;;  %v1796_v2 = vadd.f32 %v5310_v56, %v1795_v7  ;;  %v2444_v40 = vpop.f32.mrf.mxu1  ;;  %v5699_v7 = vld [vmem:[%s5213_s17 + $0x1e8] sm:$0xff] }
 0x1ec   : > { %3672 = vst [vmem:[%s5329_s27 + $0x138] sm:$0xff] %v3091_v62  ;;  %1834 = vmatmul.bf16.gmra.mxu0 %v5392_v33  ;;  %2314 = vmatmul.bf16.gmra.mxu3 %v5678_v14  ;;  %v2445_v52 = vadd.f32 %v2444_v40, %v1796_v2  ;;  %v5696_v40 = vld [vmem:[%s5213_s17 + $0x3e8] sm:$0xff] }
 0x1ed   : > { %2483 = vmatmul.bf16.gmra.mxu1 %v5395_v36 }
 0x1ee   : > { %3132 = vmatmul.bf16.gmra.mxu2 %v5681_v41 }
 0x1ef   : > { %v5689_v4 = vpop.f32.mrf.mxu3 }
 0x1f0   : > { %6961 = vst [vmem:[#allocation26_spill] sm:$0xff] %v5689_v4 }
 0x1f1   : > { %v3093_v5 = vpop.f32.mrf.mxu2  ;;  %v1797_v13 = vpop.f32.mrf.mxu0 }
 0x1f2   : > { %v3094_v9 = vadd.f32 %v3093_v5, %v2445_v52  ;;  %v2446_v17 = vpop.f32.mrf.mxu1  ;;  %v1798_v24 = vadd.f32 %v5310_v56, %v1797_v13 }
 0x1f4   : > { %3673 = vst [vmem:[%s5329_s27 + $0x140] sm:$0xff] %v3094_v9  ;;  %v2447_v27 = vadd.f32 %v2446_v17, %v1798_v24 }
 0x1f7   : > { %v5693_v33 = vpop.f32.mrf.mxu3 }
 0x1f8   : > { %6962 = vst [vmem:[#allocation27_spill] sm:$0xff] %v5693_v33 }
 0x1f9   : > { %v3095_v62 = vpop.f32.mrf.mxu2  ;;  %v1800_v36 = vpop.f32.mrf.mxu0 }
 0x1fa   : > { %v3096_v2 = vadd.f32 %v3095_v62, %v2447_v27  ;;  %v1801_v4 = vadd.f32 %v5310_v56, %v1800_v36  ;;  %v2449_v6 = vpop.f32.mrf.mxu1  ;;  %v5717_v36 = vld [vmem:[%s5213_s17 + $0x1f0] sm:$0xff] }
 0x1fc   : > { %3674 = vst [vmem:[%s5329_s27 + $0x148] sm:$0xff] %v3096_v2  ;;  %1839 = vmatmul.bf16.gmra.mxu0 %v5410_v10  ;;  %2319 = vmatmul.bf16.gmra.mxu3 %v5696_v40  ;;  %v2450_v52 = vadd.f32 %v2449_v6, %v1801_v4  ;;  %v5714_v6 = vld [vmem:[%s5213_s17 + $0x3f0] sm:$0xff] }
 0x1fd   : > { %2488 = vmatmul.bf16.gmra.mxu1 %v5413_v11 }
 0x1fe   : > { %3137 = vmatmul.bf16.gmra.mxu2 %v5699_v7 }
 0x1ff   : > { %v5707_v5 = vpop.f32.mrf.mxu3 }
 0x200   : > { %6963 = vst [vmem:[#allocation28_spill] sm:$0xff] %v5707_v5 }
 0x201   : > { %v3098_v9 = vpop.f32.mrf.mxu2  ;;  %v1802_v17 = vpop.f32.mrf.mxu0 }
 0x202   : > { %v3099_v13 = vadd.f32 %v3098_v9, %v2450_v52  ;;  %v2451_v24 = vpop.f32.mrf.mxu1  ;;  %v1803_v27 = vadd.f32 %v5310_v56, %v1802_v17 }
 0x204   : > { %3675 = vst [vmem:[%s5329_s27 + $0x150] sm:$0xff] %v3099_v13  ;;  %v2452_v62 = vadd.f32 %v2451_v24, %v1803_v27 }
 0x207   : > { %v5711_v10 = vpop.f32.mrf.mxu3 }
 0x208   : > { %6964 = vst [vmem:[#allocation29_spill] sm:$0xff] %v5711_v10  ;;  %v4958_v10 = vld [vmem:[%s5213_s17 + $0x100] sm:$0xff] }
 0x209   : > { %v3100_v2 = vpop.f32.mrf.mxu2  ;;  %v1805_v11 = vpop.f32.mrf.mxu0 }
 0x20a   : > { %v3101_v4 = vadd.f32 %v3100_v2, %v2452_v62  ;;  %v1806_v5 = vadd.f32 %v5310_v56, %v1805_v11  ;;  %v2454_v33 = vpop.f32.mrf.mxu1  ;;  %v5737_v62 = vld [vmem:[%s5213_s17 + $0x3f8] sm:$0xff] }
 0x20b   : > { %v5740_v11 = vld [vmem:[%s5213_s17 + $0x1f8] sm:$0xff] }
 0x20c   : > { %3676 = vst [vmem:[%s5329_s27 + $0x158] sm:$0xff] %v3101_v4  ;;  %1844 = vmatmul.bf16.gmra.mxu0 %v5428_v57  ;;  %2324 = vmatmul.bf16.gmra.mxu3 %v5714_v6  ;;  %v2455_v52 = vadd.f32 %v2454_v33, %v1806_v5  ;;  %v5731_v57 = vld [vmem:[%s6933_s2] ss:$0 sm:$0xff] }
 0x20d   : > { %2493 = vmatmul.bf16.gmra.mxu1 %v5431_v58 }
 0x20e   : > { %3142 = vmatmul.bf16.gmra.mxu2 %v5717_v36 }
 0x20f   : > { %v5725_v9 = vpop.f32.mrf.mxu3 }
 0x210   : > { %6965 = vst [vmem:[#allocation30_spill] sm:$0xff] %v5725_v9 }
 0x211   : > { %v3103_v13 = vpop.f32.mrf.mxu2  ;;  %v1807_v24 = vpop.f32.mrf.mxu0 }
 0x212   : > { %v3104_v17 = vadd.f32 %v3103_v13, %v2455_v52  ;;  %v2456_v56 = vpop.f32.mrf.mxu1  ;;  %v1808_v33 = vadd.f32 %v5731_v57, %v1807_v24 }
 0x214   : > { %3677 = vst [vmem:[%s5329_s27 + $0x160] sm:$0xff] %v3104_v17  ;;  %v2457_v5 = vadd.f32 %v2456_v56, %v1808_v33 }
 0x217   : > { %v5734_v58 = vpop.f32.mrf.mxu3 }
 0x218   : > { %6966 = vst [vmem:[#allocation31_spill] sm:$0xff] %v5734_v58 }
 0x219   : > { %v3105_v27 = vpop.f32.mrf.mxu2  ;;  %v1810_v4 = vpop.f32.mrf.mxu0 }
 0x21a   : > { %v3106_v2 = vadd.f32 %v3105_v27, %v2457_v5  ;;  %v1811_v52 = vadd.f32 %v5731_v57, %v1810_v4  ;;  %v2459_v13 = vpop.f32.mrf.mxu1 }
 0x21c   : > { %3678 = vst [vmem:[%s5329_s27 + $0x168] sm:$0xff] %v3106_v2  ;;  %1849 = vmatmul.bf16.gmra.mxu0 %v5446_v37  ;;  %2329 = vmatmul.bf16.gmra.mxu3 %v5737_v62  ;;  %v2460_v17 = vadd.f32 %v2459_v13, %v1811_v52 }
 0x21d   : > { %2498 = vmatmul.bf16.gmra.mxu1 %v5449_v44  ;;  %v5755_v44 = vld [vmem:[%s5213_s17 + $0x200] sm:$0xff] }
 0x21e   : > { %3147 = vmatmul.bf16.gmra.mxu2 %v5740_v11 }
 0x21f   : > { %v5748_v24 = vpop.f32.mrf.mxu3 }
 0x220   : > { %6967 = vst [vmem:[#allocation32_spill] sm:$0xff] %v5748_v24 }
 0x221   : > { %v3108_v56 = vpop.f32.mrf.mxu2  ;;  %v1812_v5 = vpop.f32.mrf.mxu0 }
 0x222   : > { %v3109_v33 = vadd.f32 %v3108_v56, %v2460_v17  ;;  %v2461_v27 = vpop.f32.mrf.mxu1  ;;  %v1813_v2 = vadd.f32 %v5731_v57, %v1812_v5 }
 0x224   : > { %3679 = vst [vmem:[%s5329_s27 + $0x170] sm:$0xff] %v3109_v33  ;;  %v2462_v37 = vadd.f32 %v2461_v27, %v1813_v2 }
 0x227   : > { %v5752_v4 = vpop.f32.mrf.mxu3 }
 0x229   : > { %v3110_v58 = vpop.f32.mrf.mxu2  ;;  %v1815_v13 = vpop.f32.mrf.mxu0 }
 0x22a   : > { %v3111_v52 = vadd.f32 %v3110_v58, %v2462_v37  ;;  %v1816_v9 = vadd.f32 %v5731_v57, %v1815_v13  ;;  %v2464_v24 = vpop.f32.mrf.mxu1 }
 0x22c   : > { %3680 = vst [vmem:[%s5329_s27 + $0x178] sm:$0xff] %v3111_v52  ;;  %1854 = vmatmul.bf16.gmra.mxu0 %v4958_v10  ;;  %2823 = vmatmul.bf16.vlgmr.msrb.gmra.mxu3 %v5462_v21  ;;  %v2465_v17 = vadd.f32 %v2464_v24, %v1816_v9 }
 0x22d   : > { %2503 = vmatmul.bf16.gmra.mxu1 %v5465_v25  ;;  %v5770_v25 = vld [vmem:[%s5213_s17 + $0x208] sm:$0xff] }
 0x22e   : > { %3152 = vmatmul.bf16.gmra.mxu2 %v5755_v44 }
 0x22f   : > { %v5763_v58 = vpop.f32.mrf.mxu3 }
 0x230   : > { %6968 = vst [vmem:[#allocation33_spill] sm:$0xff] %v5763_v58  ;;  %v4959_v58 = vld [vmem:[%s5213_s17 + $0x108] sm:$0xff] }
 0x231   : > { %v3113_v56 = vpop.f32.mrf.mxu2  ;;  %v1817_v5 = vpop.f32.mrf.mxu0 }
 0x232   : > { %v3114_v33 = vadd.f32 %v3113_v56, %v2465_v17  ;;  %v2466_v27 = vpop.f32.mrf.mxu1  ;;  %v1818_v2 = vadd.f32 %v5731_v57, %v1817_v5 }
 0x234   : > { %3681 = vst [vmem:[%s5329_s27 + $0x180] sm:$0xff] %v3114_v33  ;;  %v2467_v10 = vadd.f32 %v2466_v27, %v1818_v2 }
 0x237   : > { %v5767_v37 = vpop.f32.mrf.mxu3 }
 0x239   : > { %v3115_v21 = vpop.f32.mrf.mxu2  ;;  %v1820_v24 = vpop.f32.mrf.mxu0 }
 0x23a   : > { %v3116_v9 = vadd.f32 %v3115_v21, %v2467_v10  ;;  %v1821_v52 = vadd.f32 %v5731_v57, %v1820_v24  ;;  %v2469_v13 = vpop.f32.mrf.mxu1 }
 0x23c   : > { %3682 = vst [vmem:[%s5329_s27 + $0x188] sm:$0xff] %v3116_v9  ;;  %1859 = vmatmul.bf16.gmra.mxu0 %v4959_v58  ;;  %2828 = vmatmul.bf16.gmra.mxu3 %v5480_v23  ;;  %v2470_v17 = vadd.f32 %v2469_v13, %v1821_v52 }
 0x23d   : > { %2508 = vmatmul.bf16.gmra.mxu1 %v5483_v29  ;;  %v5785_v29 = vld [vmem:[%s5213_s17 + $0x210] sm:$0xff] }
 0x23e   : > { %3157 = vmatmul.bf16.gmra.mxu2 %v5770_v25 }
 0x23f   : > { %v5778_v56 = vpop.f32.mrf.mxu3 }
 0x240   : > { %6969 = vst [vmem:[#allocation34_spill] sm:$0xff] %v5778_v56  ;;  %v4960_v56 = vld [vmem:[%s5213_s17 + $0x110] sm:$0xff] }
 0x241   : > { %v3118_v33 = vpop.f32.mrf.mxu2  ;;  %v1822_v27 = vpop.f32.mrf.mxu0 }
 0x242   : > { %v3119_v5 = vadd.f32 %v3118_v33, %v2470_v17  ;;  %v2471_v2 = vpop.f32.mrf.mxu1  ;;  %v1823_v10 = vadd.f32 %v5731_v57, %v1822_v27 }
 0x244   : > { %3683 = vst [vmem:[%s5329_s27 + $0x190] sm:$0xff] %v3119_v5  ;;  %v2472_v58 = vadd.f32 %v2471_v2, %v1823_v10 }
 0x247   : > { %v5782_v21 = vpop.f32.mrf.mxu3 }
 0x249   : > { %v3120_v23 = vpop.f32.mrf.mxu2  ;;  %v1825_v24 = vpop.f32.mrf.mxu0 }
 0x24a   : > { %v3121_v9 = vadd.f32 %v3120_v23, %v2472_v58  ;;  %v1826_v52 = vadd.f32 %v5731_v57, %v1825_v24  ;;  %v2474_v13 = vpop.f32.mrf.mxu1 }
 0x24c   : > { %3684 = vst [vmem:[%s5329_s27 + $0x198] sm:$0xff] %v3121_v9  ;;  %1864 = vmatmul.bf16.gmra.mxu0 %v4960_v56  ;;  %2833 = vmatmul.bf16.gmra.mxu3 %v5498_v53  ;;  %v2475_v17 = vadd.f32 %v2474_v13, %v1826_v52 }
 0x24d   : > { %2513 = vmatmul.bf16.gmra.mxu1 %v5501_v45  ;;  %v5800_v45 = vld [vmem:[%s5213_s17 + $0x218] sm:$0xff] }
 0x24e   : > { %3162 = vmatmul.bf16.gmra.mxu2 %v5785_v29 }
 0x24f   : > { %v5793_v33 = vpop.f32.mrf.mxu3 }
 0x250   : > { %6970 = vst [vmem:[#allocation35_spill] sm:$0xff] %v5793_v33  ;;  %v4961_v33 = vld [vmem:[%s5213_s17 + $0x118] sm:$0xff] }
 0x251   : > { %v3123_v5 = vpop.f32.mrf.mxu2  ;;  %v1827_v2 = vpop.f32.mrf.mxu0 }
 0x252   : > { %v3124_v27 = vadd.f32 %v3123_v5, %v2475_v17  ;;  %v2476_v10 = vpop.f32.mrf.mxu1  ;;  %v1828_v58 = vadd.f32 %v5731_v57, %v1827_v2 }
 0x254   : > { %3685 = vst [vmem:[%s5329_s27 + $0x1a0] sm:$0xff] %v3124_v27  ;;  %v2477_v56 = vadd.f32 %v2476_v10, %v1828_v58 }
 0x257   : > { %v5797_v23 = vpop.f32.mrf.mxu3 }
 0x259   : > { %v3125_v53 = vpop.f32.mrf.mxu2  ;;  %v1830_v24 = vpop.f32.mrf.mxu0 }
 0x25a   : > { %v3126_v9 = vadd.f32 %v3125_v53, %v2477_v56  ;;  %v1831_v52 = vadd.f32 %v5731_v57, %v1830_v24  ;;  %v2479_v13 = vpop.f32.mrf.mxu1 }
 0x25c   : > { %3686 = vst [vmem:[%s5329_s27 + $0x1a8] sm:$0xff] %v3126_v9  ;;  %1869 = vmatmul.bf16.gmra.mxu0 %v4961_v33  ;;  %2838 = vmatmul.bf16.gmra.mxu3 %v5516_v26  ;;  %v2480_v17 = vadd.f32 %v2479_v13, %v1831_v52 }
 0x25d   : > { %2518 = vmatmul.bf16.gmra.mxu1 %v5519_v31  ;;  %v5815_v31 = vld [vmem:[%s5213_s17 + $0x220] sm:$0xff] }
 0x25e   : > { %3167 = vmatmul.bf16.gmra.mxu2 %v5800_v45 }
 0x25f   : > { %v5808_v5 = vpop.f32.mrf.mxu3 }
 0x260   : > { %6971 = vst [vmem:[#allocation36_spill] sm:$0xff] %v5808_v5  ;;  %v4962_v5 = vld [vmem:[%s5213_s17 + $0x120] sm:$0xff] }
 0x261   : > { %v3128_v27 = vpop.f32.mrf.mxu2  ;;  %v1832_v10 = vpop.f32.mrf.mxu0 }
 0x262   : > { %v3129_v2 = vadd.f32 %v3128_v27, %v2480_v17  ;;  %v2481_v58 = vpop.f32.mrf.mxu1  ;;  %v1833_v56 = vadd.f32 %v5731_v57, %v1832_v10 }
 0x264   : > { %3687 = vst [vmem:[%s5329_s27 + $0x1b0] sm:$0xff] %v3129_v2  ;;  %v2482_v33 = vadd.f32 %v2481_v58, %v1833_v56 }
 0x267   : > { %v5812_v53 = vpop.f32.mrf.mxu3 }
 0x269   : > { %v3130_v26 = vpop.f32.mrf.mxu2  ;;  %v1835_v24 = vpop.f32.mrf.mxu0 }
 0x26a   : > { %v3131_v9 = vadd.f32 %v3130_v26, %v2482_v33  ;;  %v1836_v52 = vadd.f32 %v5731_v57, %v1835_v24  ;;  %v2484_v13 = vpop.f32.mrf.mxu1 }
 0x26c   : > { %3688 = vst [vmem:[%s5329_s27 + $0x1b8] sm:$0xff] %v3131_v9  ;;  %1874 = vmatmul.bf16.gmra.mxu0 %v4962_v5  ;;  %2843 = vmatmul.bf16.gmra.mxu3 %v5534_v30  ;;  %v2485_v17 = vadd.f32 %v2484_v13, %v1836_v52 }
 0x26d   : > { %2523 = vmatmul.bf16.gmra.mxu1 %v5537_v35  ;;  %v5830_v35 = vld [vmem:[%s5213_s17 + $0x228] sm:$0xff] }
 0x26e   : > { %3172 = vmatmul.bf16.gmra.mxu2 %v5815_v31 }
 0x26f   : > { %v5823_v27 = vpop.f32.mrf.mxu3 }
 0x270   : > { %6972 = vst [vmem:[#allocation37_spill] sm:$0xff] %v5823_v27  ;;  %v4963_v27 = vld [vmem:[%s5213_s17 + $0x128] sm:$0xff] }
 0x271   : > { %v3133_v2 = vpop.f32.mrf.mxu2  ;;  %v1837_v58 = vpop.f32.mrf.mxu0 }
 0x272   : > { %v3134_v10 = vadd.f32 %v3133_v2, %v2485_v17  ;;  %v2486_v56 = vpop.f32.mrf.mxu1  ;;  %v1838_v33 = vadd.f32 %v5731_v57, %v1837_v58 }
 0x274   : > { %3689 = vst [vmem:[%s5329_s27 + $0x1c0] sm:$0xff] %v3134_v10  ;;  %v2487_v5 = vadd.f32 %v2486_v56, %v1838_v33 }
 0x277   : > { %v5827_v26 = vpop.f32.mrf.mxu3 }
 0x279   : > { %v3135_v30 = vpop.f32.mrf.mxu2  ;;  %v1840_v24 = vpop.f32.mrf.mxu0 }
 0x27a   : > { %v3136_v9 = vadd.f32 %v3135_v30, %v2487_v5  ;;  %v1841_v52 = vadd.f32 %v5731_v57, %v1840_v24  ;;  %v2489_v13 = vpop.f32.mrf.mxu1 }
 0x27c   : > { %3690 = vst [vmem:[%s5329_s27 + $0x1c8] sm:$0xff] %v3136_v9  ;;  %1879 = vmatmul.bf16.gmra.mxu0 %v4963_v27  ;;  %2848 = vmatmul.bf16.gmra.mxu3 %v5552_v34  ;;  %v2490_v17 = vadd.f32 %v2489_v13, %v1841_v52 }
 0x27d   : > { %2528 = vmatmul.bf16.gmra.mxu1 %v5555_v39  ;;  %v5845_v39 = vld [vmem:[%s5213_s17 + $0x230] sm:$0xff] }
 0x27e   : > { %3177 = vmatmul.bf16.gmra.mxu2 %v5830_v35 }
 0x27f   : > { %v5838_v2 = vpop.f32.mrf.mxu3 }
 0x280   : > { %6973 = vst [vmem:[#allocation38_spill] sm:$0xff] %v5838_v2  ;;  %v4964_v2 = vld [vmem:[%s5213_s17 + $0x130] sm:$0xff] }
 0x281   : > { %v3138_v10 = vpop.f32.mrf.mxu2  ;;  %v1842_v56 = vpop.f32.mrf.mxu0 }
 0x282   : > { %v3139_v58 = vadd.f32 %v3138_v10, %v2490_v17  ;;  %v2491_v33 = vpop.f32.mrf.mxu1  ;;  %v1843_v5 = vadd.f32 %v5731_v57, %v1842_v56 }
 0x284   : > { %3691 = vst [vmem:[%s5329_s27 + $0x1d0] sm:$0xff] %v3139_v58  ;;  %v2492_v27 = vadd.f32 %v2491_v33, %v1843_v5 }
 0x287   : > { %v5842_v30 = vpop.f32.mrf.mxu3 }
 0x289   : > { %v3140_v34 = vpop.f32.mrf.mxu2  ;;  %v1845_v24 = vpop.f32.mrf.mxu0 }
 0x28a   : > { %v3141_v9 = vadd.f32 %v3140_v34, %v2492_v27  ;;  %v1846_v52 = vadd.f32 %v5731_v57, %v1845_v24  ;;  %v2494_v13 = vpop.f32.mrf.mxu1 }
 0x28c   : > { %3692 = vst [vmem:[%s5329_s27 + $0x1d8] sm:$0xff] %v3141_v9  ;;  %1884 = vmatmul.bf16.gmra.mxu0 %v4964_v2  ;;  %2853 = vmatmul.bf16.gmra.mxu3 %v5570_v38  ;;  %v2495_v17 = vadd.f32 %v2494_v13, %v1846_v52 }
 0x28d   : > { %2533 = vmatmul.bf16.gmra.mxu1 %v5573_v43  ;;  %v5860_v43 = vld [vmem:[%s5213_s17 + $0x238] sm:$0xff] }
 0x28e   : > { %3182 = vmatmul.bf16.gmra.mxu2 %v5845_v39 }
 0x28f   : > { %v5853_v10 = vpop.f32.mrf.mxu3 }
 0x290   : > { %6974 = vst [vmem:[#allocation39_spill] sm:$0xff] %v5853_v10  ;;  %v4965_v10 = vld [vmem:[%s5213_s17 + $0x138] sm:$0xff] }
 0x291   : > { %v3143_v58 = vpop.f32.mrf.mxu2  ;;  %v1847_v33 = vpop.f32.mrf.mxu0 }
 0x292   : > { %v3144_v56 = vadd.f32 %v3143_v58, %v2495_v17  ;;  %v2496_v5 = vpop.f32.mrf.mxu1  ;;  %v1848_v27 = vadd.f32 %v5731_v57, %v1847_v33 }
 0x294   : > { %3693 = vst [vmem:[%s5329_s27 + $0x1e0] sm:$0xff] %v3144_v56  ;;  %v2497_v2 = vadd.f32 %v2496_v5, %v1848_v27 }
 0x297   : > { %v5857_v34 = vpop.f32.mrf.mxu3 }
 0x299   : > { %v3145_v38 = vpop.f32.mrf.mxu2  ;;  %v1850_v24 = vpop.f32.mrf.mxu0 }
 0x29a   : > { %v3146_v9 = vadd.f32 %v3145_v38, %v2497_v2  ;;  %v1851_v52 = vadd.f32 %v5731_v57, %v1850_v24  ;;  %v2499_v13 = vpop.f32.mrf.mxu1 }
 0x29c   : > { %3694 = vst [vmem:[%s5329_s27 + $0x1e8] sm:$0xff] %v3146_v9  ;;  %1889 = vmatmul.bf16.gmra.mxu0 %v4965_v10  ;;  %2858 = vmatmul.bf16.gmra.mxu3 %v5588_v42  ;;  %v2500_v17 = vadd.f32 %v2499_v13, %v1851_v52 }
 0x29d   : > { %2538 = vmatmul.bf16.gmra.mxu1 %v5591_v47  ;;  %v5875_v47 = vld [vmem:[%s5213_s17 + $0x240] sm:$0xff] }
 0x29e   : > { %3187 = vmatmul.bf16.gmra.mxu2 %v5860_v43 }
 0x29f   : > { %v5868_v58 = vpop.f32.mrf.mxu3 }
 0x2a0   : > { %6975 = vst [vmem:[#allocation40_spill] sm:$0xff] %v5868_v58  ;;  %v4966_v58 = vld [vmem:[%s5213_s17 + $0x140] sm:$0xff] }
 0x2a1   : > { %v3148_v56 = vpop.f32.mrf.mxu2  ;;  %v1852_v5 = vpop.f32.mrf.mxu0 }
 0x2a2   : > { %v3149_v33 = vadd.f32 %v3148_v56, %v2500_v17  ;;  %v2501_v27 = vpop.f32.mrf.mxu1  ;;  %v1853_v2 = vadd.f32 %v5731_v57, %v1852_v5  ;;  %v2176_v56 = vadd.f32 %v5731_v57, %v5324_v1 }
 0x2a4   : > { %3695 = vst [vmem:[%s5329_s27 + $0x1f0] sm:$0xff] %v3149_v33  ;;  %v2502_v10 = vadd.f32 %v2501_v27, %v1853_v2 }
 0x2a7   : > { %v5872_v38 = vpop.f32.mrf.mxu3 }
 0x2a9   : > { %v3150_v42 = vpop.f32.mrf.mxu2  ;;  %v1855_v24 = vpop.f32.mrf.mxu0 }
 0x2aa   : > { %v3151_v9 = vadd.f32 %v3150_v42, %v2502_v10  ;;  %v1856_v52 = vadd.f32 %v5731_v57, %v1855_v24  ;;  %v2504_v13 = vpop.f32.mrf.mxu1 }
 0x2ac   : > { %3696 = vst [vmem:[%s5329_s27 + $0x1f8] sm:$0xff] %v3151_v9  ;;  %1894 = vmatmul.bf16.gmra.mxu0 %v4966_v58  ;;  %2863 = vmatmul.bf16.gmra.mxu3 %v5606_v46  ;;  %v2505_v17 = vadd.f32 %v2504_v13, %v1856_v52 }
 0x2ad   : > { %2543 = vmatmul.bf16.gmra.mxu1 %v5609_v51  ;;  %v2178_v51 = vadd.f32 %v5731_v57, %v5333_v8  ;;  %v2181_v8 = vadd.f32 %v5731_v57, %v5347_v19 }
 0x2ae   : > { %3192 = vmatmul.bf16.gmra.mxu2 %v5875_v47 }
 0x2af   : > { %v2824_v33 = vpop.f32.mrf.mxu3 }
 0x2b0   : > { %v5885_v5 = vadd.f32 %v2824_v33, %v2176_v56  ;;  %v5894_v56 = vld [vmem:[%s5213_s17 + $0x248] sm:$0xff] }
 0x2b1   : > { %v3153_v27 = vpop.f32.mrf.mxu2  ;;  %v1857_v10 = vpop.f32.mrf.mxu0 }
 0x2b2   : > { %v3154_v2 = vadd.f32 %v3153_v27, %v2505_v17  ;;  %v2506_v58 = vpop.f32.mrf.mxu1  ;;  %v1858_v46 = vadd.f32 %v5731_v57, %v1857_v10  ;;  %v4967_v27 = vld [vmem:[%s5213_s17 + $0x148] sm:$0xff] }
 0x2b4   : > { %3697 = vst [vmem:[%s5329_s27 + $0x200] sm:$0xff] %v3154_v2  ;;  %v2507_v42 = vadd.f32 %v2506_v58, %v1858_v46 }
 0x2b7   : > { %v2826_v9 = vpop.f32.mrf.mxu3 }
 0x2b8   : > { %v5891_v24 = vadd.f32 %v2826_v9, %v2178_v51 }
 0x2b9   : > { %v3155_v1 = vpop.f32.mrf.mxu2  ;;  %v1860_v13 = vpop.f32.mrf.mxu0 }
 0x2ba   : > { %v3156_v52 = vadd.f32 %v3155_v1, %v2507_v42  ;;  %v1861_v17 = vadd.f32 %v5731_v57, %v1860_v13  ;;  %v2509_v33 = vpop.f32.mrf.mxu1 }
 0x2bc   : > { %3698 = vst [vmem:[%s5329_s27 + $0x208] sm:$0xff] %v3156_v52  ;;  %1899 = vmatmul.bf16.gmra.mxu0 %v4967_v27  ;;  %2868 = vmatmul.bf16.gmra.mxu3 %v5624_v50  ;;  %v2510_v2 = vadd.f32 %v2509_v33, %v1861_v17  ;;  %v5913_v27 = vld [vmem:[%s5213_s17 + $0x250] sm:$0xff] }
 0x2bd   : > { %2548 = vmatmul.bf16.gmra.mxu1 %v5627_v55  ;;  %v2183_v55 = vadd.f32 %v5731_v57, %v5351_v28  ;;  %v2186_v28 = vadd.f32 %v5731_v57, %v5365_v49 }
 0x2be   : > { %3197 = vmatmul.bf16.gmra.mxu2 %v5894_v56 }
 0x2bf   : > { %v2829_v10 = vpop.f32.mrf.mxu3 }
 0x2c0   : > { %v5904_v58 = vadd.f32 %v2829_v10, %v2181_v8  ;;  %v4968_v10 = vld [vmem:[%s5213_s17 + $0x150] sm:$0xff] }
 0x2c1   : > { %v3158_v46 = vpop.f32.mrf.mxu2  ;;  %v1862_v42 = vpop.f32.mrf.mxu0 }
 0x2c2   : > { %v3159_v51 = vadd.f32 %v3158_v46, %v2510_v2  ;;  %v2511_v9 = vpop.f32.mrf.mxu1  ;;  %v1863_v50 = vadd.f32 %v5731_v57, %v1862_v42 }
 0x2c4   : > { %3699 = vst [vmem:[%s5329_s27 + $0x210] sm:$0xff] %v3159_v51  ;;  %v2512_v1 = vadd.f32 %v2511_v9, %v1863_v50 }
 0x2c7   : > { %v2831_v52 = vpop.f32.mrf.mxu3 }
 0x2c8   : > { %v5910_v13 = vadd.f32 %v2831_v52, %v2183_v55 }
 0x2c9   : > { %v3160_v19 = vpop.f32.mrf.mxu2  ;;  %v1865_v33 = vpop.f32.mrf.mxu0 }
 0x2ca   : > { %v3161_v17 = vadd.f32 %v3160_v19, %v2512_v1  ;;  %v1866_v2 = vadd.f32 %v5731_v57, %v1865_v33  ;;  %v2514_v8 = vpop.f32.mrf.mxu1 }
 0x2cc   : > { %3700 = vst [vmem:[%s5329_s27 + $0x218] sm:$0xff] %v3161_v17  ;;  %1904 = vmatmul.bf16.gmra.mxu0 %v4968_v10  ;;  %2873 = vmatmul.bf16.gmra.mxu3 %v5642_v54  ;;  %v2515_v46 = vadd.f32 %v2514_v8, %v1866_v2  ;;  %v5932_v8 = vld [vmem:[%s5213_s17 + $0x258] sm:$0xff] }
 0x2cd   : > { %2553 = vmatmul.bf16.gmra.mxu1 %v5645_v61  ;;  %v2188_v61 = vadd.f32 %v5731_v57, %v5369_v63  ;;  %v2191_v63 = vadd.f32 %v5731_v57, %v5383_v12 }
 0x2ce   : > { %3202 = vmatmul.bf16.gmra.mxu2 %v5913_v27 }
 0x2cf   : > { %v2834_v51 = vpop.f32.mrf.mxu3 }
 0x2d0   : > { %v5923_v42 = vadd.f32 %v2834_v51, %v2186_v28  ;;  %v4969_v28 = vld [vmem:[%s5213_s17 + $0x158] sm:$0xff] }
 0x2d1   : > { %v3163_v9 = vpop.f32.mrf.mxu2  ;;  %v1867_v55 = vpop.f32.mrf.mxu0 }
 0x2d2   : > { %v3164_v50 = vadd.f32 %v3163_v9, %v2515_v46  ;;  %v2516_v1 = vpop.f32.mrf.mxu1  ;;  %v1868_v54 = vadd.f32 %v5731_v57, %v1867_v55 }
 0x2d4   : > { %3701 = vst [vmem:[%s5329_s27 + $0x220] sm:$0xff] %v3164_v50  ;;  %v2517_v52 = vadd.f32 %v2516_v1, %v1868_v54 }
 0x2d7   : > { %v2836_v19 = vpop.f32.mrf.mxu3 }
 0x2d8   : > { %v5929_v17 = vadd.f32 %v2836_v19, %v2188_v61 }
 0x2d9   : > { %v3165_v49 = vpop.f32.mrf.mxu2  ;;  %v1870_v2 = vpop.f32.mrf.mxu0 }
 0x2da   : > { %v3166_v33 = vadd.f32 %v3165_v49, %v2517_v52  ;;  %v1871_v10 = vadd.f32 %v5731_v57, %v1870_v2  ;;  %v2519_v46 = vpop.f32.mrf.mxu1 }
 0x2dc   : > { %3702 = vst [vmem:[%s5329_s27 + $0x228] sm:$0xff] %v3166_v33  ;;  %1909 = vmatmul.bf16.gmra.mxu0 %v4969_v28  ;;  %2878 = vmatmul.bf16.gmra.mxu3 %v5660_v60  ;;  %v2520_v51 = vadd.f32 %v2519_v46, %v1871_v10  ;;  %v5951_v10 = vld [vmem:[%s5213_s17 + $0x260] sm:$0xff] }
 0x2dd   : > { %2558 = vmatmul.bf16.gmra.mxu1 %v5663_v15  ;;  %v2193_v15 = vadd.f32 %v5731_v57, %v5387_v22  ;;  %v2196_v22 = vadd.f32 %v5731_v57, %v5401_v48 }
 0x2de   : > { %3207 = vmatmul.bf16.gmra.mxu2 %v5932_v8 }
 0x2df   : > { %v2839_v9 = vpop.f32.mrf.mxu3 }
 0x2e0   : > { %v5942_v50 = vadd.f32 %v2839_v9, %v2191_v63 }
 0x2e1   : > { %v3168_v55 = vpop.f32.mrf.mxu2  ;;  %v1872_v54 = vpop.f32.mrf.mxu0 }
 0x2e2   : > { %v3169_v1 = vadd.f32 %v3168_v55, %v2520_v51  ;;  %v2521_v61 = vpop.f32.mrf.mxu1  ;;  %v1873_v60 = vadd.f32 %v5731_v57, %v1872_v54  ;;  %v4970_v51 = vld [vmem:[%s5213_s17 + $0x160] sm:$0xff] }
 0x2e4   : > { %3703 = vst [vmem:[%s5329_s27 + $0x230] sm:$0xff] %v3169_v1  ;;  %v2522_v52 = vadd.f32 %v2521_v61, %v1873_v60 }
 0x2e7   : > { %v2841_v19 = vpop.f32.mrf.mxu3 }
 0x2e8   : > { %v5948_v49 = vadd.f32 %v2841_v19, %v2193_v15 }
 0x2e9   : > { %v3170_v12 = vpop.f32.mrf.mxu2  ;;  %v1875_v2 = vpop.f32.mrf.mxu0 }
 0x2ea   : > { %v3171_v33 = vadd.f32 %v3170_v12, %v2522_v52  ;;  %v1876_v46 = vadd.f32 %v5731_v57, %v1875_v2  ;;  %v2524_v28 = vpop.f32.mrf.mxu1  ;;  %v5970_v2 = vld [vmem:[%s5213_s17 + $0x268] sm:$0xff] }
 0x2ec   : > { %3704 = vst [vmem:[%s5329_s27 + $0x238] sm:$0xff] %v3171_v33  ;;  %1914 = vmatmul.bf16.gmra.mxu0 %v4970_v51  ;;  %2883 = vmatmul.bf16.gmra.mxu3 %v5678_v14  ;;  %v2525_v63 = vadd.f32 %v2524_v28, %v1876_v46  ;;  %v4971_v51 = vld [vmem:[%s5213_s17 + $0x168] sm:$0xff] }
 0x2ed   : > { %2563 = vmatmul.bf16.gmra.mxu1 %v5681_v41  ;;  %v2198_v41 = vadd.f32 %v5731_v57, %v5405_v0  ;;  %v2201_v0 = vadd.f32 %v5731_v57, %v5419_v18 }
 0x2ee   : > { %3212 = vmatmul.bf16.gmra.mxu2 %v5951_v10 }
 0x2ef   : > { %v2844_v9 = vpop.f32.mrf.mxu3 }
 0x2f0   : > { %v5961_v55 = vadd.f32 %v2844_v9, %v2196_v22 }
 0x2f1   : > { %v3173_v1 = vpop.f32.mrf.mxu2  ;;  %v1877_v61 = vpop.f32.mrf.mxu0 }
 0x2f2   : > { %v3174_v54 = vadd.f32 %v3173_v1, %v2525_v63  ;;  %v2526_v60 = vpop.f32.mrf.mxu1  ;;  %v1878_v14 = vadd.f32 %v5731_v57, %v1877_v61 }
 0x2f4   : > { %3705 = vst [vmem:[%s5329_s27 + $0x240] sm:$0xff] %v3174_v54  ;;  %v2527_v15 = vadd.f32 %v2526_v60, %v1878_v14 }
 0x2f7   : > { %v2846_v52 = vpop.f32.mrf.mxu3 }
 0x2f8   : > { %v5967_v19 = vadd.f32 %v2846_v52, %v2198_v41 }
 0x2f9   : > { %v3175_v48 = vpop.f32.mrf.mxu2  ;;  %v1880_v33 = vpop.f32.mrf.mxu0 }
 0x2fa   : > { %6976 = vst [vmem:[#allocation41_spill] sm:$0xff] %v5967_v19  ;;  %v3176_v12 = vadd.f32 %v3175_v48, %v2527_v15  ;;  %v1881_v46 = vadd.f32 %v5731_v57, %v1880_v33  ;;  %v2529_v28 = vpop.f32.mrf.mxu1  ;;  %v6318_v19 = vld [vmem:[%s5213_s17 + $0x468] sm:$0xff] }
 0x2fc   : > { %3706 = vst [vmem:[%s5329_s27 + $0x248] sm:$0xff] %v3176_v12  ;;  %1919 = vmatmul.bf16.gmra.mxu0 %v4971_v51  ;;  %2888 = vmatmul.bf16.gmra.mxu3 %v5696_v40  ;;  %v2530_v63 = vadd.f32 %v2529_v28, %v1881_v46  ;;  %v5989_v12 = vld [vmem:[%s5213_s17 + $0x270] sm:$0xff] }
 0x2fd   : > { %2568 = vmatmul.bf16.gmra.mxu1 %v5699_v7  ;;  %v2203_v7 = vadd.f32 %v5731_v57, %v5423_v32  ;;  %v4972_v28 = vld [vmem:[%s5213_s17 + $0x170] sm:$0xff]  ;;  %v2206_v32 = vadd.f32 %v5731_v57, %v5437_v3 }
 0x2fe   : > { %3217 = vmatmul.bf16.gmra.mxu2 %v5970_v2 }
 0x2ff   : > { %v2849_v22 = vpop.f32.mrf.mxu3 }
 0x300   : > { %v5980_v9 = vadd.f32 %v2849_v22, %v2201_v0 }
 0x301   : > { %v3178_v1 = vpop.f32.mrf.mxu2  ;;  %v1882_v61 = vpop.f32.mrf.mxu0 }
 0x302   : > { %6977 = vst [vmem:[#allocation42_spill] sm:$0xff] %v5980_v9  ;;  %v3179_v54 = vadd.f32 %v3178_v1, %v2530_v63  ;;  %v2531_v60 = vpop.f32.mrf.mxu1  ;;  %v1883_v40 = vadd.f32 %v5731_v57, %v1882_v61  ;;  %v6296_v9 = vld [vmem:[%s5213_s17 + $0x460] sm:$0xff] }
 0x304   : > { %3707 = vst [vmem:[%s5329_s27 + $0x250] sm:$0xff] %v3179_v54  ;;  %v2532_v14 = vadd.f32 %v2531_v60, %v1883_v40 }
 0x307   : > { %v2851_v41 = vpop.f32.mrf.mxu3 }
 0x308   : > { %v5986_v15 = vadd.f32 %v2851_v41, %v2203_v7 }
 0x309   : > { %v3180_v18 = vpop.f32.mrf.mxu2  ;;  %v1885_v48 = vpop.f32.mrf.mxu0 }
 0x30a   : > { %6978 = vst [vmem:[#allocation43_spill] sm:$0xff] %v5986_v15  ;;  %v3181_v52 = vadd.f32 %v3180_v18, %v2532_v14  ;;  %v1886_v33 = vadd.f32 %v5731_v57, %v1885_v48  ;;  %v2534_v46 = vpop.f32.mrf.mxu1  ;;  %v6008_v18 = vld [vmem:[%s5213_s17 + $0x278] sm:$0xff] }
 0x30b   : > { %v6274_v15 = vld [vmem:[%s5213_s17 + $0x458] sm:$0xff] }
 0x30c   : > { %3708 = vst [vmem:[%s5329_s27 + $0x258] sm:$0xff] %v3181_v52  ;;  %1924 = vmatmul.bf16.gmra.mxu0 %v4972_v28  ;;  %2893 = vmatmul.bf16.gmra.mxu3 %v5714_v6  ;;  %v2535_v51 = vadd.f32 %v2534_v46, %v1886_v33  ;;  %v4973_v33 = vld [vmem:[%s5213_s17 + $0x178] sm:$0xff] }
 0x30d   : > { %2573 = vmatmul.bf16.gmra.mxu1 %v5717_v36  ;;  %v2208_v36 = vadd.f32 %v5731_v57, %v5441_v20  ;;  %v2211_v20 = vadd.f32 %v5731_v57, %v5455_v59 }
 0x30e   : > { %3222 = vmatmul.bf16.gmra.mxu2 %v5989_v12 }
 0x30f   : > { %v2854_v63 = vpop.f32.mrf.mxu3 }
 0x310   : > { %v5999_v0 = vadd.f32 %v2854_v63, %v2206_v32 }
 0x311   : > { %v3183_v22 = vpop.f32.mrf.mxu2  ;;  %v1887_v54 = vpop.f32.mrf.mxu0 }
 0x312   : > { %6979 = vst [vmem:[#allocation44_spill] sm:$0xff] %v5999_v0  ;;  %v3184_v1 = vadd.f32 %v3183_v22, %v2535_v51  ;;  %v2536_v61 = vpop.f32.mrf.mxu1  ;;  %v1888_v6 = vadd.f32 %v5731_v57, %v1887_v54  ;;  %v6252_v0 = vld [vmem:[%s5213_s17 + $0x450] sm:$0xff] }
 0x314   : > { %3709 = vst [vmem:[%s5329_s27 + $0x260] sm:$0xff] %v3184_v1  ;;  %v2537_v60 = vadd.f32 %v2536_v61, %v1888_v6 }
 0x317   : > { %v2856_v40 = vpop.f32.mrf.mxu3 }
 0x318   : > { %v6005_v7 = vadd.f32 %v2856_v40, %v2208_v36  ;;  %v6027_v36 = vld [vmem:[%s5213_s17 + $0x400] sm:$0xff] }
 0x319   : > { %v3185_v3 = vpop.f32.mrf.mxu2  ;;  %v1890_v41 = vpop.f32.mrf.mxu0 }
 0x31a   : > { %6980 = vst [vmem:[#allocation45_spill] sm:$0xff] %v6005_v7  ;;  %v3186_v14 = vadd.f32 %v3185_v3, %v2537_v60  ;;  %v1891_v52 = vadd.f32 %v5731_v57, %v1890_v41  ;;  %v2539_v48 = vpop.f32.mrf.mxu1  ;;  %v6030_v3 = vld [vmem:[%s5213_s17 + $0x280] sm:$0xff]  ;;  %v6230_v7 = vld [vmem:[%s5213_s17 + $0x448] sm:$0xff] }
 0x31c   : > { %3710 = vst [vmem:[%s5329_s27 + $0x268] sm:$0xff] %v3186_v14  ;;  %1929 = vmatmul.bf16.gmra.mxu0 %v4973_v33  ;;  %2898 = vmatmul.bf16.gmra.mxu3 %v5737_v62  ;;  %v2540_v46 = vadd.f32 %v2539_v48, %v1891_v52  ;;  %v4974_v52 = vld [vmem:[%s5213_s17 + $0x180] sm:$0xff] }
 0x31d   : > { %2578 = vmatmul.bf16.gmra.mxu1 %v5740_v11  ;;  %v2213_v11 = vadd.f32 %v5731_v57, %v5459_v16  ;;  %v6983_v48 = vld [vmem:[#allocation2_spill] sm:$0xff] }
 0x31e   : > { %3227 = vmatmul.bf16.gmra.mxu2 %v6008_v18  ;;  %v2216_v33 = vadd.f32 %v5731_v57, %v6983_v48  ;;  %v4975_v48 = vld [vmem:[%s5213_s17 + $0x188] sm:$0xff] }
 0x31f   : > { %v2859_v28 = vpop.f32.mrf.mxu3 }
 0x320   : > { %v6018_v51 = vadd.f32 %v2859_v28, %v2211_v20 }
 0x321   : > { %v3188_v32 = vpop.f32.mrf.mxu2  ;;  %v1892_v22 = vpop.f32.mrf.mxu0 }
 0x322   : > { %6981 = vst [vmem:[#allocation46_spill] sm:$0xff] %v6018_v51  ;;  %v3189_v63 = vadd.f32 %v3188_v32, %v2540_v46  ;;  %v2541_v1 = vpop.f32.mrf.mxu1  ;;  %v1893_v62 = vadd.f32 %v5731_v57, %v1892_v22  ;;  %v6208_v51 = vld [vmem:[%s5213_s17 + $0x440] sm:$0xff] }
 0x324   : > { %3711 = vst [vmem:[%s5329_s27 + $0x270] sm:$0xff] %v3189_v63  ;;  %v2542_v54 = vadd.f32 %v2541_v1, %v1893_v62 }
 0x327   : > { %v2861_v61 = vpop.f32.mrf.mxu3 }
 0x328   : > { %v6024_v6 = vadd.f32 %v2861_v61, %v2213_v11 }
 0x329   : > { %v3190_v59 = vpop.f32.mrf.mxu2  ;;  %v1895_v40 = vpop.f32.mrf.mxu0 }
 0x32a   : > { %6982 = vst [vmem:[#allocation47_spill] sm:$0xff] %v6024_v6  ;;  %v3191_v60 = vadd.f32 %v3190_v59, %v2542_v54  ;;  %v1896_v14 = vadd.f32 %v5731_v57, %v1895_v40  ;;  %v2544_v41 = vpop.f32.mrf.mxu1  ;;  %v6186_v6 = vld [vmem:[%s5213_s17 + $0x438] sm:$0xff] }
 0x32c   : > { %3712 = vst [vmem:[%s5329_s27 + $0x278] sm:$0xff] %v3191_v60  ;;  %1934 = vmatmul.bf16.gmra.mxu0 %v4974_v52  ;;  %2903 = vmatmul.bf16.gmra.mxu3 %v6027_v36  ;;  %v2545_v16 = vadd.f32 %v2544_v41, %v1896_v14  ;;  %v6049_v60 = vld [vmem:[%s5213_s17 + $0x408] sm:$0xff] }
 0x32d   : > { %2583 = vmatmul.bf16.gmra.mxu1 %v5755_v44  ;;  %v6985_v44 = vld [vmem:[#allocation3_spill] sm:$0xff] }
 0x32e   : > { %3232 = vmatmul.bf16.gmra.mxu2 %v6030_v3  ;;  %v2218_v62 = vadd.f32 %v5731_v57, %v6985_v44  ;;  %v6052_v41 = vld [vmem:[%s5213_s17 + $0x288] sm:$0xff] }
 0x32f   : > { %v2864_v46 = vpop.f32.mrf.mxu3 }
 0x330   : > { %v6040_v20 = vadd.f32 %v2864_v46, %v2216_v33  ;;  %v6987_v46 = vld [vmem:[#allocation4_spill] sm:$0xff] }
 0x331   : > { %v3193_v28 = vpop.f32.mrf.mxu2  ;;  %v1897_v63 = vpop.f32.mrf.mxu0 }
 0x332   : > { %6984 = vst [vmem:[#allocation2_spill] sm:$0xff] %v6040_v20  ;;  %v3194_v32 = vadd.f32 %v3193_v28, %v2545_v16  ;;  %v2546_v22 = vpop.f32.mrf.mxu1  ;;  %v1898_v1 = vadd.f32 %v5731_v57, %v1897_v63  ;;  %v2221_v28 = vadd.f32 %v5731_v57, %v6987_v46  ;;  %v6164_v20 = vld [vmem:[%s5213_s17 + $0x430] sm:$0xff] }
 0x334   : > { %3713 = vst [vmem:[%s5329_s27 + $0x280] sm:$0xff] %v3194_v32  ;;  %v2547_v11 = vadd.f32 %v2546_v22, %v1898_v1 }
 0x337   : > { %v2866_v54 = vpop.f32.mrf.mxu3 }
 0x338   : > { %v6046_v61 = vadd.f32 %v2866_v54, %v2218_v62 }
 0x339   : > { %v3195_v59 = vpop.f32.mrf.mxu2  ;;  %v1900_v14 = vpop.f32.mrf.mxu0 }
 0x33a   : > { %6986 = vst [vmem:[#allocation3_spill] sm:$0xff] %v6046_v61  ;;  %v3196_v40 = vadd.f32 %v3195_v59, %v2547_v11  ;;  %v1901_v52 = vadd.f32 %v5731_v57, %v1900_v14  ;;  %v2549_v16 = vpop.f32.mrf.mxu1 }
 0x33c   : > { %3714 = vst [vmem:[%s5329_s27 + $0x288] sm:$0xff] %v3196_v40  ;;  %1939 = vmatmul.bf16.gmra.mxu0 %v4975_v48  ;;  %2908 = vmatmul.bf16.gmra.mxu3 %v6049_v60  ;;  %v2550_v33 = vadd.f32 %v2549_v16, %v1901_v52  ;;  %v6071_v16 = vld [vmem:[%s5213_s17 + $0x410] sm:$0xff] }
 0x33d   : > { %2588 = vmatmul.bf16.gmra.mxu1 %v5770_v25  ;;  %v6989_v25 = vld [vmem:[#allocation5_spill] sm:$0xff] }
 0x33e   : > { %3237 = vmatmul.bf16.gmra.mxu2 %v6052_v41  ;;  %v2223_v54 = vadd.f32 %v5731_v57, %v6989_v25 }
 0x33f   : > { %v2869_v32 = vpop.f32.mrf.mxu3 }
 0x340   : > { %v6062_v63 = vadd.f32 %v2869_v32, %v2221_v28 }
 0x341   : > { %v3198_v22 = vpop.f32.mrf.mxu2  ;;  %v1902_v44 = vpop.f32.mrf.mxu0 }
 0x342   : > { %6988 = vst [vmem:[#allocation4_spill] sm:$0xff] %v6062_v63  ;;  %v3199_v1 = vadd.f32 %v3198_v22, %v2550_v33  ;;  %v2551_v62 = vpop.f32.mrf.mxu1  ;;  %v1903_v11 = vadd.f32 %v5731_v57, %v1902_v44  ;;  %v6074_v33 = vld [vmem:[%s5213_s17 + $0x290] sm:$0xff]  ;;  %v6991_v44 = vld [vmem:[#allocation6_spill] sm:$0xff] }
 0x343   : > { %v4976_v22 = vld [vmem:[%s5213_s17 + $0x190] sm:$0xff]  ;;  %v6115_v63 = vld [vmem:[%s5213_s17 + $0x420] sm:$0xff] }
 0x344   : > { %3715 = vst [vmem:[%s5329_s27 + $0x290] sm:$0xff] %v3199_v1  ;;  %v2552_v59 = vadd.f32 %v2551_v62, %v1903_v11  ;;  %v2226_v62 = vadd.f32 %v5731_v57, %v6991_v44 }
 0x347   : > { %v2871_v40 = vpop.f32.mrf.mxu3 }
 0x348   : > { %v6068_v14 = vadd.f32 %v2871_v40, %v2223_v54 }
 0x349   : > { %v3200_v52 = vpop.f32.mrf.mxu2  ;;  %v1905_v46 = vpop.f32.mrf.mxu0 }
 0x34a   : > { %6990 = vst [vmem:[#allocation5_spill] sm:$0xff] %v6068_v14  ;;  %v3201_v48 = vadd.f32 %v3200_v52, %v2552_v59  ;;  %v1906_v28 = vadd.f32 %v5731_v57, %v1905_v46  ;;  %v2554_v32 = vpop.f32.mrf.mxu1  ;;  %v6093_v14 = vld [vmem:[%s5213_s17 + $0x418] sm:$0xff] }
 0x34c   : > { %3716 = vst [vmem:[%s5329_s27 + $0x298] sm:$0xff] %v3201_v48  ;;  %1944 = vmatmul.bf16.gmra.mxu0 %v4976_v22  ;;  %2913 = vmatmul.bf16.gmra.mxu3 %v6071_v16  ;;  %v2555_v1 = vadd.f32 %v2554_v32, %v1906_v28 }
 0x34d   : > { %2593 = vmatmul.bf16.gmra.mxu1 %v5785_v29  ;;  %v6993_v29 = vld [vmem:[#allocation7_spill] sm:$0xff] }
 0x34e   : > { %3242 = vmatmul.bf16.gmra.mxu2 %v6074_v33  ;;  %v2228_v46 = vadd.f32 %v5731_v57, %v6993_v29 }
 0x34f   : > { %v2874_v11 = vpop.f32.mrf.mxu3 }
 0x350   : > { %v6084_v25 = vadd.f32 %v2874_v11, %v2226_v62 }
 0x351   : > { %v3203_v54 = vpop.f32.mrf.mxu2  ;;  %v1907_v40 = vpop.f32.mrf.mxu0 }
 0x352   : > { %6992 = vst [vmem:[#allocation6_spill] sm:$0xff] %v6084_v25  ;;  %v3204_v59 = vadd.f32 %v3203_v54, %v2555_v1  ;;  %v2556_v52 = vpop.f32.mrf.mxu1  ;;  %v1908_v48 = vadd.f32 %v5731_v57, %v1907_v40  ;;  %v6096_v1 = vld [vmem:[%s5213_s17 + $0x298] sm:$0xff] }
 0x353   : > { %v4977_v40 = vld [vmem:[%s5213_s17 + $0x198] sm:$0xff] }
 0x354   : > { %3717 = vst [vmem:[%s5329_s27 + $0x2a0] sm:$0xff] %v3204_v59  ;;  %v2557_v28 = vadd.f32 %v2556_v52, %v1908_v48  ;;  %v6995_v48 = vld [vmem:[#allocation8_spill] sm:$0xff] }
 0x355   : > { %v2231_v29 = vadd.f32 %v5731_v57, %v6995_v48 }
 0x357   : > { %v2876_v32 = vpop.f32.mrf.mxu3 }
 0x358   : > { %v6090_v22 = vadd.f32 %v2876_v32, %v2228_v46 }
 0x359   : > { %v3205_v44 = vpop.f32.mrf.mxu2  ;;  %v1910_v11 = vpop.f32.mrf.mxu0 }
 0x35a   : > { %6994 = vst [vmem:[#allocation7_spill] sm:$0xff] %v6090_v22  ;;  %v3206_v62 = vadd.f32 %v3205_v44, %v2557_v28  ;;  %v1911_v54 = vadd.f32 %v5731_v57, %v1910_v11  ;;  %v2559_v59 = vpop.f32.mrf.mxu1 }
 0x35c   : > { %3718 = vst [vmem:[%s5329_s27 + $0x2a8] sm:$0xff] %v3206_v62  ;;  %1949 = vmatmul.bf16.gmra.mxu0 %v4977_v40  ;;  %2918 = vmatmul.bf16.gmra.mxu3 %v6093_v14  ;;  %v2560_v52 = vadd.f32 %v2559_v59, %v1911_v54 }
 0x35d   : > { %2598 = vmatmul.bf16.gmra.mxu1 %v5800_v45  ;;  %v6997_v45 = vld [vmem:[#allocation9_spill] sm:$0xff] }
 0x35e   : > { %3247 = vmatmul.bf16.gmra.mxu2 %v6096_v1  ;;  %v2233_v59 = vadd.f32 %v5731_v57, %v6997_v45 }
 0x35f   : > { %v2879_v46 = vpop.f32.mrf.mxu3 }
 0x360   : > { %v6106_v28 = vadd.f32 %v2879_v46, %v2231_v29 }
 0x361   : > { %v3208_v32 = vpop.f32.mrf.mxu2  ;;  %v1912_v62 = vpop.f32.mrf.mxu0 }
 0x362   : > { %6996 = vst [vmem:[#allocation8_spill] sm:$0xff] %v6106_v28  ;;  %v3209_v44 = vadd.f32 %v3208_v32, %v2560_v52  ;;  %v2561_v11 = vpop.f32.mrf.mxu1  ;;  %v1913_v54 = vadd.f32 %v5731_v57, %v1912_v62  ;;  %v6118_v52 = vld [vmem:[%s5213_s17 + $0x2a0] sm:$0xff] }
 0x363   : > { %v4978_v62 = vld [vmem:[%s5213_s17 + $0x1a0] sm:$0xff] }
 0x364   : > { %3719 = vst [vmem:[%s5329_s27 + $0x2b0] sm:$0xff] %v3209_v44  ;;  %v2562_v40 = vadd.f32 %v2561_v11, %v1913_v54 }
 0x367   : > { %v2881_v22 = vpop.f32.mrf.mxu3 }
 0x368   : > { %v6112_v25 = vadd.f32 %v2881_v22, %v2233_v59  ;;  %v6999_v22 = vld [vmem:[#allocation10_spill] sm:$0xff] }
 0x369   : > { %v3210_v48 = vpop.f32.mrf.mxu2  ;;  %v1915_v46 = vpop.f32.mrf.mxu0  ;;  %v2236_v54 = vadd.f32 %v5731_v57, %v6999_v22 }
 0x36a   : > { %6998 = vst [vmem:[#allocation9_spill] sm:$0xff] %v6112_v25  ;;  %v3211_v29 = vadd.f32 %v3210_v48, %v2562_v40  ;;  %v1916_v32 = vadd.f32 %v5731_v57, %v1915_v46  ;;  %v2564_v44 = vpop.f32.mrf.mxu1 }
 0x36c   : > { %3720 = vst [vmem:[%s5329_s27 + $0x2b8] sm:$0xff] %v3211_v29  ;;  %1954 = vmatmul.bf16.gmra.mxu0 %v4978_v62  ;;  %2923 = vmatmul.bf16.gmra.mxu3 %v6115_v63  ;;  %v2565_v11 = vadd.f32 %v2564_v44, %v1916_v32  ;;  %v7001_v44 = vld [vmem:[#allocation11_spill] sm:$0xff] }
 0x36d   : > { %2603 = vmatmul.bf16.gmra.mxu1 %v5815_v31  ;;  %v6134_v31 = vld [vmem:[%s6933_s2] ss:$0 sm:$0xff] }
 0x36e   : > { %3252 = vmatmul.bf16.gmra.mxu2 %v6118_v52  ;;  %v2238_v57 = vadd.f32 %v6134_v31, %v7001_v44 }
 0x36f   : > { %v2884_v45 = vpop.f32.mrf.mxu3 }
 0x370   : > { %v6128_v59 = vadd.f32 %v2884_v45, %v2236_v54  ;;  %v6142_v45 = vld [vmem:[%s5213_s17 + $0x428] sm:$0xff] }
 0x371   : > { %v3213_v40 = vpop.f32.mrf.mxu2  ;;  %v1917_v29 = vpop.f32.mrf.mxu0 }
 0x372   : > { %7000 = vst [vmem:[#allocation10_spill] sm:$0xff] %v6128_v59  ;;  %v3214_v48 = vadd.f32 %v3213_v40, %v2565_v11  ;;  %v2566_v46 = vpop.f32.mrf.mxu1  ;;  %v1918_v32 = vadd.f32 %v6134_v31, %v1917_v29  ;;  %v4980_v29 = vld [vmem:[%s5213_s17 + $0x1a8] sm:$0xff] }
 0x374   : > { %3721 = vst [vmem:[%s5329_s27 + $0x2c0] sm:$0xff] %v3214_v48  ;;  %v2567_v62 = vadd.f32 %v2566_v46, %v1918_v32  ;;  %v6145_v48 = vld [vmem:[%s5213_s17 + $0x2a8] sm:$0xff]  ;;  %v7003_v32 = vld [vmem:[#allocation12_spill] sm:$0xff] }
 0x375   : > { %v2241_v44 = vadd.f32 %v6134_v31, %v7003_v32 }
 0x377   : > { %v2886_v22 = vpop.f32.mrf.mxu3 }
 0x378   : > { %v6139_v54 = vadd.f32 %v2886_v22, %v2238_v57 }
 0x379   : > { %v3215_v11 = vpop.f32.mrf.mxu2  ;;  %v1920_v59 = vpop.f32.mrf.mxu0 }
 0x37a   : > { %7002 = vst [vmem:[#allocation11_spill] sm:$0xff] %v6139_v54  ;;  %v3216_v40 = vadd.f32 %v3215_v11, %v2567_v62  ;;  %v1921_v25 = vadd.f32 %v6134_v31, %v1920_v59  ;;  %v2569_v28 = vpop.f32.mrf.mxu1 }
 0x37c   : > { %3722 = vst [vmem:[%s5329_s27 + $0x2c8] sm:$0xff] %v3216_v40  ;;  %1959 = vmatmul.bf16.gmra.mxu0 %v4980_v29  ;;  %2928 = vmatmul.bf16.gmra.mxu3 %v6142_v45  ;;  %v2570_v46 = vadd.f32 %v2569_v28, %v1921_v25 }
 0x37d   : > { %2608 = vmatmul.bf16.gmra.mxu1 %v5830_v35  ;;  %v7005_v35 = vld [vmem:[#allocation13_spill] sm:$0xff] }
 0x37e   : > { %3257 = vmatmul.bf16.gmra.mxu2 %v6145_v48  ;;  %v2243_v28 = vadd.f32 %v6134_v31, %v7005_v35 }
 0x37f   : > { %v2889_v57 = vpop.f32.mrf.mxu3 }
 0x380   : > { %v6155_v62 = vadd.f32 %v2889_v57, %v2241_v44 }
 0x381   : > { %v3218_v59 = vpop.f32.mrf.mxu2  ;;  %v1922_v11 = vpop.f32.mrf.mxu0 }
 0x382   : > { %7004 = vst [vmem:[#allocation12_spill] sm:$0xff] %v6155_v62  ;;  %v3219_v22 = vadd.f32 %v3218_v59, %v2570_v46  ;;  %v2571_v40 = vpop.f32.mrf.mxu1  ;;  %v1923_v25 = vadd.f32 %v6134_v31, %v1922_v11  ;;  %v6167_v46 = vld [vmem:[%s5213_s17 + $0x2b0] sm:$0xff] }
 0x383   : > { %v4981_v11 = vld [vmem:[%s5213_s17 + $0x1b0] sm:$0xff] }
 0x384   : > { %3723 = vst [vmem:[%s5329_s27 + $0x2d0] sm:$0xff] %v3219_v22  ;;  %v2572_v29 = vadd.f32 %v2571_v40, %v1923_v25 }
 0x387   : > { %v2891_v54 = vpop.f32.mrf.mxu3 }
 0x388   : > { %v6161_v61 = vadd.f32 %v2891_v54, %v2243_v28  ;;  %v7007_v54 = vld [vmem:[#allocation14_spill] sm:$0xff] }
 0x389   : > { %v3220_v32 = vpop.f32.mrf.mxu2  ;;  %v1925_v57 = vpop.f32.mrf.mxu0  ;;  %v2246_v25 = vadd.f32 %v6134_v31, %v7007_v54 }
 0x38a   : > { %7006 = vst [vmem:[#allocation13_spill] sm:$0xff] %v6161_v61  ;;  %v3221_v44 = vadd.f32 %v3220_v32, %v2572_v29  ;;  %v1926_v59 = vadd.f32 %v6134_v31, %v1925_v57  ;;  %v2574_v22 = vpop.f32.mrf.mxu1 }
 0x38c   : > { %3724 = vst [vmem:[%s5329_s27 + $0x2d8] sm:$0xff] %v3221_v44  ;;  %1964 = vmatmul.bf16.gmra.mxu0 %v4981_v11  ;;  %2933 = vmatmul.bf16.gmra.mxu3 %v6164_v20  ;;  %v2575_v40 = vadd.f32 %v2574_v22, %v1926_v59 }
 0x38d   : > { %2613 = vmatmul.bf16.gmra.mxu1 %v5845_v39  ;;  %v7009_v39 = vld [vmem:[#allocation15_spill] sm:$0xff] }
 0x38e   : > { %3262 = vmatmul.bf16.gmra.mxu2 %v6167_v46  ;;  %v2248_v22 = vadd.f32 %v6134_v31, %v7009_v39 }
 0x38f   : > { %v2894_v35 = vpop.f32.mrf.mxu3 }
 0x390   : > { %v6177_v28 = vadd.f32 %v2894_v35, %v2246_v25 }
 0x391   : > { %v3223_v29 = vpop.f32.mrf.mxu2  ;;  %v1927_v44 = vpop.f32.mrf.mxu0 }
 0x392   : > { %7008 = vst [vmem:[#allocation14_spill] sm:$0xff] %v6177_v28  ;;  %v3224_v32 = vadd.f32 %v3223_v29, %v2575_v40  ;;  %v2576_v57 = vpop.f32.mrf.mxu1  ;;  %v1928_v59 = vadd.f32 %v6134_v31, %v1927_v44  ;;  %v6189_v40 = vld [vmem:[%s5213_s17 + $0x2b8] sm:$0xff] }
 0x393   : > { %v4982_v44 = vld [vmem:[%s5213_s17 + $0x1b8] sm:$0xff] }
 0x394   : > { %3725 = vst [vmem:[%s5329_s27 + $0x2e0] sm:$0xff] %v3224_v32  ;;  %v2577_v11 = vadd.f32 %v2576_v57, %v1928_v59 }
 0x397   : > { %v2896_v61 = vpop.f32.mrf.mxu3 }
 0x398   : > { %v6183_v62 = vadd.f32 %v2896_v61, %v2248_v22  ;;  %v7011_v61 = vld [vmem:[#allocation16_spill] sm:$0xff] }
 0x399   : > { %v3225_v54 = vpop.f32.mrf.mxu2  ;;  %v1930_v35 = vpop.f32.mrf.mxu0  ;;  %v2251_v59 = vadd.f32 %v6134_v31, %v7011_v61 }
 0x39a   : > { %7010 = vst [vmem:[#allocation15_spill] sm:$0xff] %v6183_v62  ;;  %v3226_v25 = vadd.f32 %v3225_v54, %v2577_v11  ;;  %v1931_v29 = vadd.f32 %v6134_v31, %v1930_v35  ;;  %v2579_v32 = vpop.f32.mrf.mxu1 }
 0x39c   : > { %3726 = vst [vmem:[%s5329_s27 + $0x2e8] sm:$0xff] %v3226_v25  ;;  %1969 = vmatmul.bf16.gmra.mxu0 %v4982_v44  ;;  %2938 = vmatmul.bf16.gmra.mxu3 %v6186_v6  ;;  %v2580_v57 = vadd.f32 %v2579_v32, %v1931_v29 }
 0x39d   : > { %2618 = vmatmul.bf16.gmra.mxu1 %v5860_v43  ;;  %v7013_v43 = vld [vmem:[#allocation17_spill] sm:$0xff] }
 0x39e   : > { %3267 = vmatmul.bf16.gmra.mxu2 %v6189_v40  ;;  %v2253_v32 = vadd.f32 %v6134_v31, %v7013_v43 }
 0x39f   : > { %v2899_v39 = vpop.f32.mrf.mxu3 }
 0x3a0   : > { %v6199_v22 = vadd.f32 %v2899_v39, %v2251_v59 }
 0x3a1   : > { %v3228_v11 = vpop.f32.mrf.mxu2  ;;  %v1932_v25 = vpop.f32.mrf.mxu0 }
 0x3a2   : > { %7012 = vst [vmem:[#allocation16_spill] sm:$0xff] %v6199_v22  ;;  %v3229_v54 = vadd.f32 %v3228_v11, %v2580_v57  ;;  %v2581_v35 = vpop.f32.mrf.mxu1  ;;  %v1933_v29 = vadd.f32 %v6134_v31, %v1932_v25  ;;  %v6211_v57 = vld [vmem:[%s5213_s17 + $0x2c0] sm:$0xff] }
 0x3a3   : > { %v4983_v25 = vld [vmem:[%s5213_s17 + $0x1c0] sm:$0xff] }
 0x3a4   : > { %3727 = vst [vmem:[%s5329_s27 + $0x2f0] sm:$0xff] %v3229_v54  ;;  %v2582_v44 = vadd.f32 %v2581_v35, %v1933_v29 }
 0x3a7   : > { %v2901_v62 = vpop.f32.mrf.mxu3 }
 0x3a8   : > { %v6205_v28 = vadd.f32 %v2901_v62, %v2253_v32  ;;  %v7015_v62 = vld [vmem:[#allocation18_spill] sm:$0xff] }
 0x3a9   : > { %v3230_v61 = vpop.f32.mrf.mxu2  ;;  %v1935_v39 = vpop.f32.mrf.mxu0  ;;  %v2256_v29 = vadd.f32 %v6134_v31, %v7015_v62 }
 0x3aa   : > { %7014 = vst [vmem:[#allocation17_spill] sm:$0xff] %v6205_v28  ;;  %v3231_v59 = vadd.f32 %v3230_v61, %v2582_v44  ;;  %v1936_v11 = vadd.f32 %v6134_v31, %v1935_v39  ;;  %v2584_v54 = vpop.f32.mrf.mxu1 }
 0x3ac   : > { %3728 = vst [vmem:[%s5329_s27 + $0x2f8] sm:$0xff] %v3231_v59  ;;  %1974 = vmatmul.bf16.gmra.mxu0 %v4983_v25  ;;  %2943 = vmatmul.bf16.gmra.mxu3 %v6208_v51  ;;  %v2585_v35 = vadd.f32 %v2584_v54, %v1936_v11 }
 0x3ad   : > { %2623 = vmatmul.bf16.gmra.mxu1 %v5875_v47  ;;  %v7017_v47 = vld [vmem:[#allocation19_spill] sm:$0xff] }
 0x3ae   : > { %3272 = vmatmul.bf16.gmra.mxu2 %v6211_v57  ;;  %v2258_v54 = vadd.f32 %v6134_v31, %v7017_v47 }
 0x3af   : > { %v2904_v43 = vpop.f32.mrf.mxu3 }
 0x3b0   : > { %v6221_v32 = vadd.f32 %v2904_v43, %v2256_v29 }
 0x3b1   : > { %v3233_v44 = vpop.f32.mrf.mxu2  ;;  %v1937_v59 = vpop.f32.mrf.mxu0 }
 0x3b2   : > { %7016 = vst [vmem:[#allocation18_spill] sm:$0xff] %v6221_v32  ;;  %v3234_v61 = vadd.f32 %v3233_v44, %v2585_v35  ;;  %v2586_v39 = vpop.f32.mrf.mxu1  ;;  %v1938_v11 = vadd.f32 %v6134_v31, %v1937_v59  ;;  %v6233_v35 = vld [vmem:[%s5213_s17 + $0x2c8] sm:$0xff] }
 0x3b3   : > { %v4984_v59 = vld [vmem:[%s5213_s17 + $0x1c8] sm:$0xff] }
 0x3b4   : > { %3729 = vst [vmem:[%s5329_s27 + $0x300] sm:$0xff] %v3234_v61  ;;  %v2587_v25 = vadd.f32 %v2586_v39, %v1938_v11 }
 0x3b7   : > { %v2906_v28 = vpop.f32.mrf.mxu3 }
 0x3b8   : > { %v6227_v22 = vadd.f32 %v2906_v28, %v2258_v54  ;;  %v7019_v28 = vld [vmem:[#allocation20_spill] sm:$0xff] }
 0x3b9   : > { %v3235_v62 = vpop.f32.mrf.mxu2  ;;  %v1940_v43 = vpop.f32.mrf.mxu0  ;;  %v2261_v11 = vadd.f32 %v6134_v31, %v7019_v28 }
 0x3ba   : > { %7018 = vst [vmem:[#allocation19_spill] sm:$0xff] %v6227_v22  ;;  %v3236_v29 = vadd.f32 %v3235_v62, %v2587_v25  ;;  %v1941_v44 = vadd.f32 %v6134_v31, %v1940_v43  ;;  %v2589_v61 = vpop.f32.mrf.mxu1 }
 0x3bc   : > { %3730 = vst [vmem:[%s5329_s27 + $0x308] sm:$0xff] %v3236_v29  ;;  %1979 = vmatmul.bf16.gmra.mxu0 %v4984_v59  ;;  %2948 = vmatmul.bf16.gmra.mxu3 %v6230_v7  ;;  %v2590_v39 = vadd.f32 %v2589_v61, %v1941_v44 }
 0x3bd   : > { %2628 = vmatmul.bf16.gmra.mxu1 %v5894_v56  ;;  %v7021_v56 = vld [vmem:[#allocation21_spill] sm:$0xff] }
 0x3be   : > { %3277 = vmatmul.bf16.gmra.mxu2 %v6233_v35  ;;  %v2263_v61 = vadd.f32 %v6134_v31, %v7021_v56 }
 0x3bf   : > { %v2909_v47 = vpop.f32.mrf.mxu3 }
 0x3c0   : > { %v6243_v54 = vadd.f32 %v2909_v47, %v2261_v11 }
 0x3c1   : > { %v3238_v25 = vpop.f32.mrf.mxu2  ;;  %v1942_v29 = vpop.f32.mrf.mxu0 }
 0x3c2   : > { %7020 = vst [vmem:[#allocation20_spill] sm:$0xff] %v6243_v54  ;;  %v3239_v62 = vadd.f32 %v3238_v25, %v2590_v39  ;;  %v2591_v43 = vpop.f32.mrf.mxu1  ;;  %v1943_v44 = vadd.f32 %v6134_v31, %v1942_v29  ;;  %v6255_v39 = vld [vmem:[%s5213_s17 + $0x2d0] sm:$0xff] }
 0x3c3   : > { %v4985_v29 = vld [vmem:[%s5213_s17 + $0x1d0] sm:$0xff] }
 0x3c4   : > { %3731 = vst [vmem:[%s5329_s27 + $0x310] sm:$0xff] %v3239_v62  ;;  %v2592_v59 = vadd.f32 %v2591_v43, %v1943_v44 }
 0x3c7   : > { %v2911_v22 = vpop.f32.mrf.mxu3 }
 0x3c8   : > { %v6249_v32 = vadd.f32 %v2911_v22, %v2263_v61  ;;  %v7023_v22 = vld [vmem:[#allocation22_spill] sm:$0xff] }
 0x3c9   : > { %v3240_v28 = vpop.f32.mrf.mxu2  ;;  %v1945_v47 = vpop.f32.mrf.mxu0  ;;  %v2266_v44 = vadd.f32 %v6134_v31, %v7023_v22 }
 0x3ca   : > { %7022 = vst [vmem:[#allocation21_spill] sm:$0xff] %v6249_v32  ;;  %v3241_v11 = vadd.f32 %v3240_v28, %v2592_v59  ;;  %v1946_v25 = vadd.f32 %v6134_v31, %v1945_v47  ;;  %v2594_v62 = vpop.f32.mrf.mxu1 }
 0x3cc   : > { %3732 = vst [vmem:[%s5329_s27 + $0x318] sm:$0xff] %v3241_v11  ;;  %1984 = vmatmul.bf16.gmra.mxu0 %v4985_v29  ;;  %2953 = vmatmul.bf16.gmra.mxu3 %v6252_v0  ;;  %v2595_v43 = vadd.f32 %v2594_v62, %v1946_v25 }
 0x3cd   : > { %2633 = vmatmul.bf16.gmra.mxu1 %v5913_v27  ;;  %v7025_v27 = vld [vmem:[#allocation23_spill] sm:$0xff] }
 0x3ce   : > { %3282 = vmatmul.bf16.gmra.mxu2 %v6255_v39  ;;  %v2268_v62 = vadd.f32 %v6134_v31, %v7025_v27 }
 0x3cf   : > { %v2914_v56 = vpop.f32.mrf.mxu3 }
 0x3d0   : > { %v6265_v61 = vadd.f32 %v2914_v56, %v2266_v44 }
 0x3d1   : > { %v3243_v59 = vpop.f32.mrf.mxu2  ;;  %v1947_v11 = vpop.f32.mrf.mxu0 }
 0x3d2   : > { %7024 = vst [vmem:[#allocation22_spill] sm:$0xff] %v6265_v61  ;;  %v3244_v28 = vadd.f32 %v3243_v59, %v2595_v43  ;;  %v2596_v47 = vpop.f32.mrf.mxu1  ;;  %v1948_v25 = vadd.f32 %v6134_v31, %v1947_v11  ;;  %v6277_v43 = vld [vmem:[%s5213_s17 + $0x2d8] sm:$0xff] }
 0x3d3   : > { %v4986_v11 = vld [vmem:[%s5213_s17 + $0x1d8] sm:$0xff] }
 0x3d4   : > { %3733 = vst [vmem:[%s5329_s27 + $0x320] sm:$0xff] %v3244_v28  ;;  %v2597_v29 = vadd.f32 %v2596_v47, %v1948_v25 }
 0x3d7   : > { %v2916_v32 = vpop.f32.mrf.mxu3 }
 0x3d8   : > { %v6271_v54 = vadd.f32 %v2916_v32, %v2268_v62  ;;  %v7027_v32 = vld [vmem:[#allocation24_spill] sm:$0xff] }
 0x3d9   : > { %v3245_v22 = vpop.f32.mrf.mxu2  ;;  %v1950_v56 = vpop.f32.mrf.mxu0  ;;  %v2271_v25 = vadd.f32 %v6134_v31, %v7027_v32 }
 0x3da   : > { %7026 = vst [vmem:[#allocation23_spill] sm:$0xff] %v6271_v54  ;;  %v3246_v44 = vadd.f32 %v3245_v22, %v2597_v29  ;;  %v1951_v59 = vadd.f32 %v6134_v31, %v1950_v56  ;;  %v2599_v28 = vpop.f32.mrf.mxu1 }
 0x3dc   : > { %3734 = vst [vmem:[%s5329_s27 + $0x328] sm:$0xff] %v3246_v44  ;;  %1989 = vmatmul.bf16.gmra.mxu0 %v4986_v11  ;;  %2958 = vmatmul.bf16.gmra.mxu3 %v6274_v15  ;;  %v2600_v47 = vadd.f32 %v2599_v28, %v1951_v59 }
 0x3dd   : > { %2638 = vmatmul.bf16.gmra.mxu1 %v5932_v8  ;;  %v7029_v8 = vld [vmem:[#allocation25_spill] sm:$0xff] }
 0x3de   : > { %3287 = vmatmul.bf16.gmra.mxu2 %v6277_v43  ;;  %v2273_v28 = vadd.f32 %v6134_v31, %v7029_v8 }
 0x3df   : > { %v2919_v27 = vpop.f32.mrf.mxu3 }
 0x3e0   : > { %v6287_v62 = vadd.f32 %v2919_v27, %v2271_v25 }
 0x3e1   : > { %v3248_v29 = vpop.f32.mrf.mxu2  ;;  %v1952_v44 = vpop.f32.mrf.mxu0 }
 0x3e2   : > { %7028 = vst [vmem:[#allocation24_spill] sm:$0xff] %v6287_v62  ;;  %v3249_v22 = vadd.f32 %v3248_v29, %v2600_v47  ;;  %v2601_v56 = vpop.f32.mrf.mxu1  ;;  %v1953_v59 = vadd.f32 %v6134_v31, %v1952_v44  ;;  %v6299_v47 = vld [vmem:[%s5213_s17 + $0x2e0] sm:$0xff] }
 0x3e3   : > { %v4987_v44 = vld [vmem:[%s5213_s17 + $0x1e0] sm:$0xff] }
 0x3e4   : > { %3735 = vst [vmem:[%s5329_s27 + $0x330] sm:$0xff] %v3249_v22  ;;  %v2602_v11 = vadd.f32 %v2601_v56, %v1953_v59 }
 0x3e7   : > { %v2921_v54 = vpop.f32.mrf.mxu3 }
 0x3e8   : > { %v6293_v61 = vadd.f32 %v2921_v54, %v2273_v28  ;;  %v7031_v54 = vld [vmem:[#allocation26_spill] sm:$0xff] }
 0x3e9   : > { %v3250_v32 = vpop.f32.mrf.mxu2  ;;  %v1955_v27 = vpop.f32.mrf.mxu0  ;;  %v2276_v59 = vadd.f32 %v6134_v31, %v7031_v54 }
 0x3ea   : > { %7030 = vst [vmem:[#allocation25_spill] sm:$0xff] %v6293_v61  ;;  %v3251_v25 = vadd.f32 %v3250_v32, %v2602_v11  ;;  %v1956_v29 = vadd.f32 %v6134_v31, %v1955_v27  ;;  %v2604_v22 = vpop.f32.mrf.mxu1 }
 0x3ec   : > { %3736 = vst [vmem:[%s5329_s27 + $0x338] sm:$0xff] %v3251_v25  ;;  %1994 = vmatmul.bf16.gmra.mxu0 %v4987_v44  ;;  %2963 = vmatmul.bf16.gmra.mxu3 %v6296_v9  ;;  %v2605_v56 = vadd.f32 %v2604_v22, %v1956_v29 }
 0x3ed   : > { %2643 = vmatmul.bf16.gmra.mxu1 %v5951_v10  ;;  %v7033_v10 = vld [vmem:[#allocation27_spill] sm:$0xff] }
 0x3ee   : > { %3292 = vmatmul.bf16.gmra.mxu2 %v6299_v47  ;;  %v2278_v22 = vadd.f32 %v6134_v31, %v7033_v10 }
 0x3ef   : > { %v2924_v8 = vpop.f32.mrf.mxu3 }
 0x3f0   : > { %v6309_v28 = vadd.f32 %v2924_v8, %v2276_v59 }
 0x3f1   : > { %v3253_v11 = vpop.f32.mrf.mxu2  ;;  %v1957_v25 = vpop.f32.mrf.mxu0 }
 0x3f2   : > { %7032 = vst [vmem:[#allocation26_spill] sm:$0xff] %v6309_v28  ;;  %v3254_v32 = vadd.f32 %v3253_v11, %v2605_v56  ;;  %v2606_v27 = vpop.f32.mrf.mxu1  ;;  %v1958_v29 = vadd.f32 %v6134_v31, %v1957_v25  ;;  %v6321_v56 = vld [vmem:[%s5213_s17 + $0x2e8] sm:$0xff] }
 0x3f3   : > { %7035 = vst [vmem:[#allocation48_spill] sm:$0xff] %v6321_v56  ;;  %v4988_v25 = vld [vmem:[%s5213_s17 + $0x1e8] sm:$0xff] }
 0x3f4   : > { %3737 = vst [vmem:[%s5329_s27 + $0x340] sm:$0xff] %v3254_v32  ;;  %v2607_v44 = vadd.f32 %v2606_v27, %v1958_v29 }
 0x3f7   : > { %v2926_v61 = vpop.f32.mrf.mxu3 }
 0x3f8   : > { %v6315_v62 = vadd.f32 %v2926_v61, %v2278_v22  ;;  %v7036_v61 = vld [vmem:[#allocation28_spill] sm:$0xff] }
 0x3f9   : > { %v3255_v54 = vpop.f32.mrf.mxu2  ;;  %v1960_v8 = vpop.f32.mrf.mxu0  ;;  %v2281_v29 = vadd.f32 %v6134_v31, %v7036_v61 }
 0x3fa   : > { %7034 = vst [vmem:[#allocation27_spill] sm:$0xff] %v6315_v62  ;;  %v3256_v59 = vadd.f32 %v3255_v54, %v2607_v44  ;;  %v1961_v11 = vadd.f32 %v6134_v31, %v1960_v8  ;;  %v2609_v32 = vpop.f32.mrf.mxu1 }
 0x3fc   : > { %3738 = vst [vmem:[%s5329_s27 + $0x348] sm:$0xff] %v3256_v59  ;;  %1999 = vmatmul.bf16.gmra.mxu0 %v4988_v25  ;;  %2968 = vmatmul.bf16.gmra.mxu3 %v6318_v19  ;;  %v2610_v27 = vadd.f32 %v2609_v32, %v1961_v11 }
 0x3fd   : > { %2648 = vmatmul.bf16.gmra.mxu1 %v5970_v2  ;;  %v7038_v2 = vld [vmem:[#allocation29_spill] sm:$0xff] }
 0x3fe   : > { %3297 = vmatmul.bf16.gmra.mxu2 %v6321_v56  ;;  %v2283_v32 = vadd.f32 %v6134_v31, %v7038_v2  ;;  %v6340_v56 = vld [vmem:[%s5213_s17 + $0x470] sm:$0xff] }
 0x3ff   : > { %v2929_v10 = vpop.f32.mrf.mxu3 }
 0x400   : > { %v6331_v22 = vadd.f32 %v2929_v10, %v2281_v29 }
 0x401   : > { %v3258_v44 = vpop.f32.mrf.mxu2  ;;  %v1962_v59 = vpop.f32.mrf.mxu0 }
 0x402   : > { %7037 = vst [vmem:[#allocation28_spill] sm:$0xff] %v6331_v22  ;;  %v3259_v54 = vadd.f32 %v3258_v44, %v2610_v27  ;;  %v2611_v8 = vpop.f32.mrf.mxu1  ;;  %v1963_v11 = vadd.f32 %v6134_v31, %v1962_v59  ;;  %v6343_v27 = vld [vmem:[%s5213_s17 + $0x2f0] sm:$0xff] }
 0x403   : > { %7040 = vst [vmem:[#allocation49_spill] sm:$0xff] %v6343_v27  ;;  %v4989_v59 = vld [vmem:[%s5213_s17 + $0x1f0] sm:$0xff] }
 0x404   : > { %3739 = vst [vmem:[%s5329_s27 + $0x350] sm:$0xff] %v3259_v54  ;;  %v2612_v25 = vadd.f32 %v2611_v8, %v1963_v11 }
 0x407   : > { %v2931_v62 = vpop.f32.mrf.mxu3 }
 0x408   : > { %v6337_v28 = vadd.f32 %v2931_v62, %v2283_v32  ;;  %v7041_v62 = vld [vmem:[#allocation30_spill] sm:$0xff] }
 0x409   : > { %v3260_v61 = vpop.f32.mrf.mxu2  ;;  %v1965_v10 = vpop.f32.mrf.mxu0  ;;  %v2286_v11 = vadd.f32 %v6134_v31, %v7041_v62 }
 0x40a   : > { %7039 = vst [vmem:[#allocation29_spill] sm:$0xff] %v6337_v28  ;;  %v3261_v29 = vadd.f32 %v3260_v61, %v2612_v25  ;;  %v1966_v44 = vadd.f32 %v6134_v31, %v1965_v10  ;;  %v2614_v54 = vpop.f32.mrf.mxu1 }
 0x40c   : > { %3740 = vst [vmem:[%s5329_s27 + $0x358] sm:$0xff] %v3261_v29  ;;  %2004 = vmatmul.bf16.gmra.mxu0 %v4989_v59  ;;  %2973 = vmatmul.bf16.gmra.mxu3 %v6340_v56  ;;  %v2615_v8 = vadd.f32 %v2614_v54, %v1966_v44 }
 0x40d   : > { %2653 = vmatmul.bf16.gmra.mxu1 %v5989_v12  ;;  %v7043_v12 = vld [vmem:[#allocation31_spill] sm:$0xff] }
 0x40e   : > { %3302 = vmatmul.bf16.gmra.mxu2 %v6343_v27  ;;  %v2288_v54 = vadd.f32 %v6134_v31, %v7043_v12  ;;  %v6362_v27 = vld [vmem:[%s5213_s17 + $0x478] sm:$0xff] }
 0x40f   : > { %v2934_v2 = vpop.f32.mrf.mxu3 }
 0x410   : > { %v6353_v32 = vadd.f32 %v2934_v2, %v2286_v11 }
 0x411   : > { %v3263_v25 = vpop.f32.mrf.mxu2  ;;  %v1967_v29 = vpop.f32.mrf.mxu0 }
 0x412   : > { %7042 = vst [vmem:[#allocation30_spill] sm:$0xff] %v6353_v32  ;;  %v3264_v61 = vadd.f32 %v3263_v25, %v2615_v8  ;;  %v2616_v10 = vpop.f32.mrf.mxu1  ;;  %v1968_v44 = vadd.f32 %v6134_v31, %v1967_v29  ;;  %v6365_v8 = vld [vmem:[%s5213_s17 + $0x2f8] sm:$0xff] }
 0x413   : > { %v4990_v29 = vld [vmem:[%s5213_s17 + $0x1f8] sm:$0xff] }
 0x414   : > { %3741 = vst [vmem:[%s5329_s27 + $0x360] sm:$0xff] %v3264_v61  ;;  %v2617_v59 = vadd.f32 %v2616_v10, %v1968_v44 }
 0x417   : > { %v2936_v28 = vpop.f32.mrf.mxu3 }
 0x418   : > { %v6359_v22 = vadd.f32 %v2936_v28, %v2288_v54  ;;  %v7045_v28 = vld [vmem:[#allocation32_spill] sm:$0xff] }
 0x419   : > { %v3265_v62 = vpop.f32.mrf.mxu2  ;;  %v1970_v2 = vpop.f32.mrf.mxu0  ;;  %v2291_v44 = vadd.f32 %v6134_v31, %v7045_v28 }
 0x41a   : > { %7044 = vst [vmem:[#allocation31_spill] sm:$0xff] %v6359_v22  ;;  %v3266_v11 = vadd.f32 %v3265_v62, %v2617_v59  ;;  %v1971_v25 = vadd.f32 %v6134_v31, %v1970_v2  ;;  %v2619_v61 = vpop.f32.mrf.mxu1 }
 0x41c   : > { %3742 = vst [vmem:[%s5329_s27 + $0x368] sm:$0xff] %v3266_v11  ;;  %2009 = vmatmul.bf16.gmra.mxu0 %v4990_v29  ;;  %2978 = vmatmul.bf16.gmra.mxu3 %v6362_v27  ;;  %v2620_v10 = vadd.f32 %v2619_v61, %v1971_v25 }
 0x41d   : > { %2658 = vmatmul.bf16.gmra.mxu1 %v6008_v18  ;;  %v2293_v18 = vadd.f32 %v6134_v31, %v5752_v4  ;;  %v6389_v4 = vld [vmem:[%s5213_s17 + $0x300] sm:$0xff] }
 0x41e   : > { %3307 = vmatmul.bf16.gmra.mxu2 %v6365_v8 }
 0x41f   : > { %v2939_v12 = vpop.f32.mrf.mxu3 }
 0x420   : > { %v6375_v54 = vadd.f32 %v2939_v12, %v2291_v44 }
 0x421   : > { %v3268_v59 = vpop.f32.mrf.mxu2  ;;  %v1972_v11 = vpop.f32.mrf.mxu0 }
 0x422   : > { %7046 = vst [vmem:[#allocation32_spill] sm:$0xff] %v6375_v54  ;;  %v3269_v62 = vadd.f32 %v3268_v59, %v2620_v10  ;;  %v2621_v2 = vpop.f32.mrf.mxu1  ;;  %v1973_v29 = vadd.f32 %v6134_v31, %v1972_v11  ;;  %v4991_v10 = vld [vmem:[%s5213_s17 + $0x200] sm:$0xff] }
 0x424   : > { %3743 = vst [vmem:[%s5329_s27 + $0x370] sm:$0xff] %v3269_v62  ;;  %v2622_v25 = vadd.f32 %v2621_v2, %v1973_v29  ;;  %v7047_v62 = vld [vmem:[#allocation33_spill] sm:$0xff] }
 0x425   : > { %v2296_v11 = vadd.f32 %v6134_v31, %v7047_v62 }
 0x427   : > { %v2941_v61 = vpop.f32.mrf.mxu3 }
 0x428   : > { %v6381_v22 = vadd.f32 %v2941_v61, %v2293_v18 }
 0x429   : > { %v3270_v28 = vpop.f32.mrf.mxu2  ;;  %v1975_v12 = vpop.f32.mrf.mxu0 }
 0x42a   : > { %v3271_v44 = vadd.f32 %v3270_v28, %v2622_v25  ;;  %v1976_v54 = vadd.f32 %v6134_v31, %v1975_v12  ;;  %v2624_v32 = vpop.f32.mrf.mxu1 }
 0x42c   : > { %3744 = vst [vmem:[%s5329_s27 + $0x378] sm:$0xff] %v3271_v44  ;;  %2014 = vmatmul.bf16.gmra.mxu0 %v4991_v10  ;;  %3472 = vmatmul.bf16.vlgmr.msra.gmra.mxu3 %v6027_v36  ;;  %v2625_v59 = vadd.f32 %v2624_v32, %v1976_v54 }
 0x42d   : > { %2663 = vmatmul.bf16.gmra.mxu1 %v6030_v3  ;;  %v2298_v3 = vadd.f32 %v6134_v31, %v5767_v37  ;;  %v6408_v37 = vld [vmem:[%s5213_s17 + $0x308] sm:$0xff] }
 0x42e   : > { %3312 = vmatmul.bf16.gmra.mxu2 %v6389_v4 }
 0x42f   : > { %v2944_v2 = vpop.f32.mrf.mxu3 }
 0x430   : > { %v6394_v29 = vadd.f32 %v2944_v2, %v2296_v11 }
 0x431   : > { %v3273_v18 = vpop.f32.mrf.mxu2  ;;  %v1977_v61 = vpop.f32.mrf.mxu0 }
 0x432   : > { %v3274_v25 = vadd.f32 %v3273_v18, %v2625_v59  ;;  %v2626_v28 = vpop.f32.mrf.mxu1  ;;  %v1978_v36 = vadd.f32 %v6134_v31, %v1977_v61  ;;  %v4993_v59 = vld [vmem:[%s5213_s17 + $0x208] sm:$0xff] }
 0x434   : > { %3745 = vst [vmem:[%s5329_s27 + $0x380] sm:$0xff] %v3274_v25  ;;  %v2627_v32 = vadd.f32 %v2626_v28, %v1978_v36  ;;  %v7048_v25 = vld [vmem:[#allocation34_spill] sm:$0xff] }
 0x435   : > { %v2301_v61 = vadd.f32 %v6134_v31, %v7048_v25 }
 0x437   : > { %v2946_v54 = vpop.f32.mrf.mxu3 }
 0x438   : > { %v6400_v44 = vadd.f32 %v2946_v54, %v2298_v3 }
 0x439   : > { %v3275_v12 = vpop.f32.mrf.mxu2  ;;  %v1980_v62 = vpop.f32.mrf.mxu0 }
 0x43a   : > { %v3276_v10 = vadd.f32 %v3275_v12, %v2627_v32  ;;  %v1981_v11 = vadd.f32 %v6134_v31, %v1980_v62  ;;  %v2629_v2 = vpop.f32.mrf.mxu1 }
 0x43c   : > { %3746 = vst [vmem:[%s5329_s27 + $0x388] sm:$0xff] %v3276_v10  ;;  %2019 = vmatmul.bf16.gmra.mxu0 %v4993_v59  ;;  %3477 = vmatmul.bf16.gmra.mxu3 %v6049_v60  ;;  %v2630_v18 = vadd.f32 %v2629_v2, %v1981_v11 }
 0x43d   : > { %2668 = vmatmul.bf16.gmra.mxu1 %v6052_v41  ;;  %v2303_v41 = vadd.f32 %v6134_v31, %v5782_v21  ;;  %v6427_v21 = vld [vmem:[%s5213_s17 + $0x310] sm:$0xff] }
 0x43e   : > { %3317 = vmatmul.bf16.gmra.mxu2 %v6408_v37 }
 0x43f   : > { %v2949_v28 = vpop.f32.mrf.mxu3 }
 0x440   : > { %v6413_v36 = vadd.f32 %v2949_v28, %v2301_v61 }
 0x441   : > { %v3278_v3 = vpop.f32.mrf.mxu2  ;;  %v1982_v54 = vpop.f32.mrf.mxu0 }
 0x442   : > { %v3279_v32 = vadd.f32 %v3278_v3, %v2630_v18  ;;  %v2631_v12 = vpop.f32.mrf.mxu1  ;;  %v1983_v60 = vadd.f32 %v6134_v31, %v1982_v54  ;;  %v4995_v18 = vld [vmem:[%s5213_s17 + $0x210] sm:$0xff] }
 0x444   : > { %3747 = vst [vmem:[%s5329_s27 + $0x390] sm:$0xff] %v3279_v32  ;;  %v2632_v10 = vadd.f32 %v2631_v12, %v1983_v60  ;;  %v7049_v32 = vld [vmem:[#allocation35_spill] sm:$0xff] }
 0x445   : > { %v2306_v54 = vadd.f32 %v6134_v31, %v7049_v32 }
 0x447   : > { %v2951_v62 = vpop.f32.mrf.mxu3 }
 0x448   : > { %v6419_v11 = vadd.f32 %v2951_v62, %v2303_v41 }
 0x449   : > { %v3280_v2 = vpop.f32.mrf.mxu2  ;;  %v1985_v25 = vpop.f32.mrf.mxu0 }
 0x44a   : > { %v3281_v59 = vadd.f32 %v3280_v2, %v2632_v10  ;;  %v1986_v61 = vadd.f32 %v6134_v31, %v1985_v25  ;;  %v2634_v28 = vpop.f32.mrf.mxu1 }
 0x44c   : > { %3748 = vst [vmem:[%s5329_s27 + $0x398] sm:$0xff] %v3281_v59  ;;  %2024 = vmatmul.bf16.gmra.mxu0 %v4995_v18  ;;  %3482 = vmatmul.bf16.gmra.mxu3 %v6071_v16  ;;  %v2635_v3 = vadd.f32 %v2634_v28, %v1986_v61 }
 0x44d   : > { %2673 = vmatmul.bf16.gmra.mxu1 %v6074_v33  ;;  %v2308_v33 = vadd.f32 %v6134_v31, %v5797_v23  ;;  %v6446_v23 = vld [vmem:[%s5213_s17 + $0x318] sm:$0xff] }
 0x44e   : > { %3322 = vmatmul.bf16.gmra.mxu2 %v6427_v21 }
 0x44f   : > { %v2954_v12 = vpop.f32.mrf.mxu3 }
 0x450   : > { %v6432_v60 = vadd.f32 %v2954_v12, %v2306_v54 }
 0x451   : > { %v3283_v41 = vpop.f32.mrf.mxu2  ;;  %v1987_v62 = vpop.f32.mrf.mxu0 }
 0x452   : > { %v3284_v10 = vadd.f32 %v3283_v41, %v2635_v3  ;;  %v2636_v2 = vpop.f32.mrf.mxu1  ;;  %v1988_v16 = vadd.f32 %v6134_v31, %v1987_v62  ;;  %v4997_v3 = vld [vmem:[%s5213_s17 + $0x218] sm:$0xff] }
 0x454   : > { %3749 = vst [vmem:[%s5329_s27 + $0x3a0] sm:$0xff] %v3284_v10  ;;  %v2637_v59 = vadd.f32 %v2636_v2, %v1988_v16  ;;  %v7050_v10 = vld [vmem:[#allocation36_spill] sm:$0xff] }
 0x455   : > { %v2311_v62 = vadd.f32 %v6134_v31, %v7050_v10 }
 0x457   : > { %v2956_v25 = vpop.f32.mrf.mxu3 }
 0x458   : > { %v6438_v61 = vadd.f32 %v2956_v25, %v2308_v33 }
 0x459   : > { %v3285_v28 = vpop.f32.mrf.mxu2  ;;  %v1990_v32 = vpop.f32.mrf.mxu0 }
 0x45a   : > { %v3286_v18 = vadd.f32 %v3285_v28, %v2637_v59  ;;  %v1991_v54 = vadd.f32 %v6134_v31, %v1990_v32  ;;  %v2639_v12 = vpop.f32.mrf.mxu1 }
 0x45c   : > { %3750 = vst [vmem:[%s5329_s27 + $0x3a8] sm:$0xff] %v3286_v18  ;;  %2029 = vmatmul.bf16.gmra.mxu0 %v4997_v3  ;;  %3487 = vmatmul.bf16.gmra.mxu3 %v6093_v14  ;;  %v2640_v41 = vadd.f32 %v2639_v12, %v1991_v54 }
 0x45d   : > { %2678 = vmatmul.bf16.gmra.mxu1 %v6096_v1  ;;  %v2313_v1 = vadd.f32 %v6134_v31, %v5812_v53  ;;  %v6465_v53 = vld [vmem:[%s5213_s17 + $0x320] sm:$0xff] }
 0x45e   : > { %3327 = vmatmul.bf16.gmra.mxu2 %v6446_v23 }
 0x45f   : > { %v2959_v2 = vpop.f32.mrf.mxu3 }
 0x460   : > { %v6451_v16 = vadd.f32 %v2959_v2, %v2311_v62 }
 0x461   : > { %v3288_v33 = vpop.f32.mrf.mxu2  ;;  %v1992_v25 = vpop.f32.mrf.mxu0 }
 0x462   : > { %v3289_v59 = vadd.f32 %v3288_v33, %v2640_v41  ;;  %v2641_v28 = vpop.f32.mrf.mxu1  ;;  %v1993_v14 = vadd.f32 %v6134_v31, %v1992_v25  ;;  %v4999_v41 = vld [vmem:[%s5213_s17 + $0x220] sm:$0xff] }
 0x464   : > { %3751 = vst [vmem:[%s5329_s27 + $0x3b0] sm:$0xff] %v3289_v59  ;;  %v2642_v18 = vadd.f32 %v2641_v28, %v1993_v14  ;;  %v7051_v59 = vld [vmem:[#allocation37_spill] sm:$0xff] }
 0x465   : > { %v2316_v25 = vadd.f32 %v6134_v31, %v7051_v59 }
 0x467   : > { %v2961_v32 = vpop.f32.mrf.mxu3 }
 0x468   : > { %v6457_v54 = vadd.f32 %v2961_v32, %v2313_v1 }
 0x469   : > { %v3290_v12 = vpop.f32.mrf.mxu2  ;;  %v1995_v10 = vpop.f32.mrf.mxu0 }
 0x46a   : > { %v3291_v3 = vadd.f32 %v3290_v12, %v2642_v18  ;;  %v1996_v62 = vadd.f32 %v6134_v31, %v1995_v10  ;;  %v2644_v2 = vpop.f32.mrf.mxu1 }
 0x46c   : > { %3752 = vst [vmem:[%s5329_s27 + $0x3b8] sm:$0xff] %v3291_v3  ;;  %2034 = vmatmul.bf16.gmra.mxu0 %v4999_v41  ;;  %3492 = vmatmul.bf16.gmra.mxu3 %v6115_v63  ;;  %v2645_v33 = vadd.f32 %v2644_v2, %v1996_v62 }
 0x46d   : > { %2683 = vmatmul.bf16.gmra.mxu1 %v6118_v52  ;;  %v2318_v52 = vadd.f32 %v6134_v31, %v5827_v26  ;;  %v6484_v26 = vld [vmem:[%s5213_s17 + $0x328] sm:$0xff] }
 0x46e   : > { %3332 = vmatmul.bf16.gmra.mxu2 %v6465_v53 }
 0x46f   : > { %v2964_v28 = vpop.f32.mrf.mxu3 }
 0x470   : > { %v6470_v14 = vadd.f32 %v2964_v28, %v2316_v25 }
 0x471   : > { %v3293_v1 = vpop.f32.mrf.mxu2  ;;  %v1997_v32 = vpop.f32.mrf.mxu0 }
 0x472   : > { %v3294_v18 = vadd.f32 %v3293_v1, %v2645_v33  ;;  %v2646_v12 = vpop.f32.mrf.mxu1  ;;  %v1998_v63 = vadd.f32 %v6134_v31, %v1997_v32  ;;  %v5001_v33 = vld [vmem:[%s5213_s17 + $0x228] sm:$0xff] }
 0x474   : > { %3753 = vst [vmem:[%s5329_s27 + $0x3c0] sm:$0xff] %v3294_v18  ;;  %v2647_v3 = vadd.f32 %v2646_v12, %v1998_v63  ;;  %v7052_v18 = vld [vmem:[#allocation38_spill] sm:$0xff] }
 0x475   : > { %v2321_v32 = vadd.f32 %v6134_v31, %v7052_v18 }
 0x477   : > { %v2966_v10 = vpop.f32.mrf.mxu3 }
 0x478   : > { %v6476_v62 = vadd.f32 %v2966_v10, %v2318_v52 }
 0x479   : > { %v3295_v2 = vpop.f32.mrf.mxu2  ;;  %v2000_v59 = vpop.f32.mrf.mxu0 }
 0x47a   : > { %v3296_v41 = vadd.f32 %v3295_v2, %v2647_v3  ;;  %v2001_v25 = vadd.f32 %v6134_v31, %v2000_v59  ;;  %v2649_v28 = vpop.f32.mrf.mxu1 }
 0x47c   : > { %3754 = vst [vmem:[%s5329_s27 + $0x3c8] sm:$0xff] %v3296_v41  ;;  %2039 = vmatmul.bf16.gmra.mxu0 %v5001_v33  ;;  %3497 = vmatmul.bf16.gmra.mxu3 %v6142_v45  ;;  %v2650_v1 = vadd.f32 %v2649_v28, %v2001_v25 }
 0x47d   : > { %2688 = vmatmul.bf16.gmra.mxu1 %v6145_v48  ;;  %v2323_v48 = vadd.f32 %v6134_v31, %v5842_v30  ;;  %v6503_v30 = vld [vmem:[%s5213_s17 + $0x330] sm:$0xff] }
 0x47e   : > { %3337 = vmatmul.bf16.gmra.mxu2 %v6484_v26 }
 0x47f   : > { %v2969_v12 = vpop.f32.mrf.mxu3 }
 0x480   : > { %v6489_v63 = vadd.f32 %v2969_v12, %v2321_v32 }
 0x481   : > { %v3298_v52 = vpop.f32.mrf.mxu2  ;;  %v2002_v10 = vpop.f32.mrf.mxu0 }
 0x482   : > { %v3299_v3 = vadd.f32 %v3298_v52, %v2650_v1  ;;  %v2651_v2 = vpop.f32.mrf.mxu1  ;;  %v2003_v45 = vadd.f32 %v6134_v31, %v2002_v10  ;;  %v5003_v1 = vld [vmem:[%s5213_s17 + $0x230] sm:$0xff] }
 0x484   : > { %3755 = vst [vmem:[%s5329_s27 + $0x3d0] sm:$0xff] %v3299_v3  ;;  %v2652_v41 = vadd.f32 %v2651_v2, %v2003_v45  ;;  %v7053_v3 = vld [vmem:[#allocation39_spill] sm:$0xff] }
 0x485   : > { %v2326_v10 = vadd.f32 %v6134_v31, %v7053_v3 }
 0x487   : > { %v2971_v59 = vpop.f32.mrf.mxu3 }
 0x488   : > { %v6495_v25 = vadd.f32 %v2971_v59, %v2323_v48 }
 0x489   : > { %v3300_v28 = vpop.f32.mrf.mxu2  ;;  %v2005_v18 = vpop.f32.mrf.mxu0 }
 0x48a   : > { %v3301_v33 = vadd.f32 %v3300_v28, %v2652_v41  ;;  %v2006_v32 = vadd.f32 %v6134_v31, %v2005_v18  ;;  %v2654_v12 = vpop.f32.mrf.mxu1 }
 0x48c   : > { %3756 = vst [vmem:[%s5329_s27 + $0x3d8] sm:$0xff] %v3301_v33  ;;  %2044 = vmatmul.bf16.gmra.mxu0 %v5003_v1  ;;  %3502 = vmatmul.bf16.gmra.mxu3 %v6164_v20  ;;  %v2655_v52 = vadd.f32 %v2654_v12, %v2006_v32 }
 0x48d   : > { %2693 = vmatmul.bf16.gmra.mxu1 %v6167_v46  ;;  %v2328_v46 = vadd.f32 %v6134_v31, %v5857_v34  ;;  %v6522_v34 = vld [vmem:[%s5213_s17 + $0x338] sm:$0xff] }
 0x48e   : > { %3342 = vmatmul.bf16.gmra.mxu2 %v6503_v30 }
 0x48f   : > { %v2974_v2 = vpop.f32.mrf.mxu3 }
 0x490   : > { %v6508_v45 = vadd.f32 %v2974_v2, %v2326_v10 }
 0x491   : > { %v3303_v48 = vpop.f32.mrf.mxu2  ;;  %v2007_v59 = vpop.f32.mrf.mxu0 }
 0x492   : > { %v3304_v41 = vadd.f32 %v3303_v48, %v2655_v52  ;;  %v2656_v28 = vpop.f32.mrf.mxu1  ;;  %v2008_v20 = vadd.f32 %v6134_v31, %v2007_v59  ;;  %v5005_v52 = vld [vmem:[%s5213_s17 + $0x238] sm:$0xff] }
 0x494   : > { %3757 = vst [vmem:[%s5329_s27 + $0x3e0] sm:$0xff] %v3304_v41  ;;  %v2657_v33 = vadd.f32 %v2656_v28, %v2008_v20  ;;  %v7054_v41 = vld [vmem:[#allocation40_spill] sm:$0xff] }
 0x495   : > { %v2331_v59 = vadd.f32 %v6134_v31, %v7054_v41 }
 0x497   : > { %v2976_v18 = vpop.f32.mrf.mxu3 }
 0x498   : > { %v6514_v32 = vadd.f32 %v2976_v18, %v2328_v46 }
 0x499   : > { %v3305_v12 = vpop.f32.mrf.mxu2  ;;  %v2010_v3 = vpop.f32.mrf.mxu0 }
 0x49a   : > { %v3306_v1 = vadd.f32 %v3305_v12, %v2657_v33  ;;  %v2011_v10 = vadd.f32 %v6134_v31, %v2010_v3  ;;  %v2659_v2 = vpop.f32.mrf.mxu1 }
 0x49c   : > { %3758 = vst [vmem:[%s5329_s27 + $0x3e8] sm:$0xff] %v3306_v1  ;;  %2049 = vmatmul.bf16.gmra.mxu0 %v5005_v52  ;;  %3507 = vmatmul.bf16.gmra.mxu3 %v6186_v6  ;;  %v2660_v48 = vadd.f32 %v2659_v2, %v2011_v10 }
 0x49d   : > { %2698 = vmatmul.bf16.gmra.mxu1 %v6189_v40  ;;  %v2333_v40 = vadd.f32 %v6134_v31, %v5872_v38  ;;  %v6541_v38 = vld [vmem:[%s5213_s17 + $0x340] sm:$0xff] }
 0x49e   : > { %3347 = vmatmul.bf16.gmra.mxu2 %v6522_v34 }
 0x49f   : > { %v2979_v28 = vpop.f32.mrf.mxu3 }
 0x4a0   : > { %v6527_v20 = vadd.f32 %v2979_v28, %v2331_v59  ;;  %v5007_v28 = vld [vmem:[%s5213_s17 + $0x240] sm:$0xff] }
 0x4a1   : > { %v3308_v46 = vpop.f32.mrf.mxu2  ;;  %v2012_v18 = vpop.f32.mrf.mxu0 }
 0x4a2   : > { %v3309_v33 = vadd.f32 %v3308_v46, %v2660_v48  ;;  %v2661_v12 = vpop.f32.mrf.mxu1  ;;  %v2013_v6 = vadd.f32 %v6134_v31, %v2012_v18 }
 0x4a4   : > { %3759 = vst [vmem:[%s5329_s27 + $0x3f0] sm:$0xff] %v3309_v33  ;;  %v2662_v1 = vadd.f32 %v2661_v12, %v2013_v6 }
 0x4a7   : > { %v2981_v3 = vpop.f32.mrf.mxu3 }
 0x4a8   : > { %v6533_v10 = vadd.f32 %v2981_v3, %v2333_v40 }
 0x4a9   : > { %v3310_v2 = vpop.f32.mrf.mxu2  ;;  %v2015_v41 = vpop.f32.mrf.mxu0 }
 0x4aa   : > { %v3311_v52 = vadd.f32 %v3310_v2, %v2662_v1  ;;  %v2016_v59 = vadd.f32 %v6134_v31, %v2015_v41  ;;  %v2664_v48 = vpop.f32.mrf.mxu1 }
 0x4ac   : > { %3760 = vst [vmem:[%s5329_s27 + $0x3f8] sm:$0xff] %v3311_v52  ;;  %2054 = vmatmul.bf16.gmra.mxu0 %v5007_v28  ;;  %3512 = vmatmul.bf16.gmra.mxu3 %v6208_v51  ;;  %v2665_v46 = vadd.f32 %v2664_v48, %v2016_v59  ;;  %v5009_v28 = vld [vmem:[%s5213_s17 + $0x248] sm:$0xff] }
 0x4ad   : > { %2703 = vmatmul.bf16.gmra.mxu1 %v6211_v57 }
 0x4ae   : > { %3352 = vmatmul.bf16.gmra.mxu2 %v6541_v38 }
 0x4af   : > { %v3473_v33 = vpop.f32.mrf.mxu3 }
 0x4b0   : > { %v3474_v12 = vadd.f32 %v3473_v33, %v5885_v5  ;;  %v6556_v33 = vld [vmem:[%s5213_s17 + $0x348] sm:$0xff] }
 0x4b1   : > { %v3313_v18 = vpop.f32.mrf.mxu2  ;;  %v2017_v40 = vpop.f32.mrf.mxu0 }
 0x4b2   : > { %v3314_v6 = vadd.f32 %v3313_v18, %v2665_v46  ;;  %3825 = vst [vmem:[%s5329_s27 + $0x600] sm:$0xff] %v3474_v12  ;;  %v2666_v1 = vpop.f32.mrf.mxu1  ;;  %v2018_v51 = vadd.f32 %v6134_v31, %v2017_v40 }
 0x4b4   : > { %3761 = vst [vmem:[%s5329_s27 + $0x400] sm:$0xff] %v3314_v6  ;;  %v2667_v57 = vadd.f32 %v2666_v1, %v2018_v51 }
 0x4b7   : > { %v3475_v3 = vpop.f32.mrf.mxu3 }
 0x4b8   : > { %v3476_v52 = vadd.f32 %v3475_v3, %v5891_v24 }
 0x4b9   : > { %v3315_v2 = vpop.f32.mrf.mxu2  ;;  %v2020_v59 = vpop.f32.mrf.mxu0 }
 0x4ba   : > { %v3316_v41 = vadd.f32 %v3315_v2, %v2667_v57  ;;  %3826 = vst [vmem:[%s5329_s27 + $0x608] sm:$0xff] %v3476_v52  ;;  %v2021_v5 = vadd.f32 %v6134_v31, %v2020_v59  ;;  %v2669_v48 = vpop.f32.mrf.mxu1  ;;  %v5012_v59 = vld [vmem:[%s5213_s17 + $0x250] sm:$0xff] }
 0x4bc   : > { %3762 = vst [vmem:[%s5329_s27 + $0x408] sm:$0xff] %v3316_v41  ;;  %2059 = vmatmul.bf16.gmra.mxu0 %v5009_v28  ;;  %3517 = vmatmul.bf16.gmra.mxu3 %v6230_v7  ;;  %v2670_v46 = vadd.f32 %v2669_v48, %v2021_v5  ;;  %v6565_v7 = vld [vmem:[%s6933_s2] ss:$0 sm:$0xff]  ;;  %v6576_v48 = vld [vmem:[%s5213_s17 + $0x350] sm:$0xff] }
 0x4bd   : > { %2708 = vmatmul.bf16.gmra.mxu1 %v6233_v35 }
 0x4be   : > { %3357 = vmatmul.bf16.gmra.mxu2 %v6556_v33 }
 0x4bf   : > { %v3478_v24 = vpop.f32.mrf.mxu3 }
 0x4c0   : > { %v3479_v12 = vadd.f32 %v3478_v24, %v5904_v58 }
 0x4c1   : > { %v3318_v18 = vpop.f32.mrf.mxu2  ;;  %v2022_v6 = vpop.f32.mrf.mxu0 }
 0x4c2   : > { %v3319_v31 = vadd.f32 %v3318_v18, %v2670_v46  ;;  %3827 = vst [vmem:[%s5329_s27 + $0x610] sm:$0xff] %v3479_v12  ;;  %v2671_v40 = vpop.f32.mrf.mxu1  ;;  %v2023_v35 = vadd.f32 %v6565_v7, %v2022_v6 }
 0x4c4   : > { %3763 = vst [vmem:[%s5329_s27 + $0x410] sm:$0xff] %v3319_v31  ;;  %v2672_v1 = vadd.f32 %v2671_v40, %v2023_v35 }
 0x4c7   : > { %v3480_v51 = vpop.f32.mrf.mxu3 }
 0x4c8   : > { %v3481_v58 = vadd.f32 %v3480_v51, %v5910_v13 }
 0x4c9   : > { %v3320_v57 = vpop.f32.mrf.mxu2  ;;  %v2025_v2 = vpop.f32.mrf.mxu0 }
 0x4ca   : > { %v3321_v3 = vadd.f32 %v3320_v57, %v2672_v1  ;;  %3828 = vst [vmem:[%s5329_s27 + $0x618] sm:$0xff] %v3481_v58  ;;  %v2026_v52 = vadd.f32 %v6565_v7, %v2025_v2  ;;  %v2674_v41 = vpop.f32.mrf.mxu1  ;;  %v5014_v57 = vld [vmem:[%s5213_s17 + $0x258] sm:$0xff] }
 0x4cc   : > { %3764 = vst [vmem:[%s5329_s27 + $0x418] sm:$0xff] %v3321_v3  ;;  %2064 = vmatmul.bf16.gmra.mxu0 %v5012_v59  ;;  %3522 = vmatmul.bf16.gmra.mxu3 %v6252_v0  ;;  %v2675_v5 = vadd.f32 %v2674_v41, %v2026_v52  ;;  %v6591_v3 = vld [vmem:[%s5213_s17 + $0x358] sm:$0xff] }
 0x4cd   : > { %2713 = vmatmul.bf16.gmra.mxu1 %v6255_v39 }
 0x4ce   : > { %3362 = vmatmul.bf16.gmra.mxu2 %v6576_v48 }
 0x4cf   : > { %v3483_v13 = vpop.f32.mrf.mxu3 }
 0x4d0   : > { %v3484_v46 = vadd.f32 %v3483_v13, %v5923_v42 }
 0x4d1   : > { %v3323_v28 = vpop.f32.mrf.mxu2  ;;  %v2027_v18 = vpop.f32.mrf.mxu0 }
 0x4d2   : > { %v3324_v24 = vadd.f32 %v3323_v28, %v2675_v5  ;;  %3829 = vst [vmem:[%s5329_s27 + $0x620] sm:$0xff] %v3484_v46  ;;  %v2676_v12 = vpop.f32.mrf.mxu1  ;;  %v2028_v0 = vadd.f32 %v6565_v7, %v2027_v18 }
 0x4d4   : > { %3765 = vst [vmem:[%s5329_s27 + $0x420] sm:$0xff] %v3324_v24  ;;  %v2677_v39 = vadd.f32 %v2676_v12, %v2028_v0  ;;  %v5016_v0 = vld [vmem:[%s5213_s17 + $0x260] sm:$0xff] }
 0x4d7   : > { %v3485_v31 = vpop.f32.mrf.mxu3 }
 0x4d8   : > { %v3486_v40 = vadd.f32 %v3485_v31, %v5929_v17  ;;  %v6606_v31 = vld [vmem:[%s5213_s17 + $0x360] sm:$0xff] }
 0x4d9   : > { %v3325_v6 = vpop.f32.mrf.mxu2  ;;  %v2030_v1 = vpop.f32.mrf.mxu0 }
 0x4da   : > { %v3326_v35 = vadd.f32 %v3325_v6, %v2677_v39  ;;  %3830 = vst [vmem:[%s5329_s27 + $0x628] sm:$0xff] %v3486_v40  ;;  %v2031_v42 = vadd.f32 %v6565_v7, %v2030_v1  ;;  %v2679_v51 = vpop.f32.mrf.mxu1 }
 0x4dc   : > { %3766 = vst [vmem:[%s5329_s27 + $0x428] sm:$0xff] %v3326_v35  ;;  %2069 = vmatmul.bf16.gmra.mxu0 %v5014_v57  ;;  %3527 = vmatmul.bf16.gmra.mxu3 %v6274_v15  ;;  %v2680_v58 = vadd.f32 %v2679_v51, %v2031_v42 }
 0x4dd   : > { %2718 = vmatmul.bf16.gmra.mxu1 %v6277_v43 }
 0x4de   : > { %3367 = vmatmul.bf16.gmra.mxu2 %v6591_v3 }
 0x4df   : > { %v3488_v17 = vpop.f32.mrf.mxu3 }
 0x4e0   : > { %v3489_v52 = vadd.f32 %v3488_v17, %v5942_v50 }
 0x4e1   : > { %v3328_v2 = vpop.f32.mrf.mxu2  ;;  %v2032_v59 = vpop.f32.mrf.mxu0 }
 0x4e2   : > { %v3329_v41 = vadd.f32 %v3328_v2, %v2680_v58  ;;  %3831 = vst [vmem:[%s5329_s27 + $0x630] sm:$0xff] %v3489_v52  ;;  %v2681_v5 = vpop.f32.mrf.mxu1  ;;  %v2033_v15 = vadd.f32 %v6565_v7, %v2032_v59  ;;  %v7055_v58 = vld [vmem:[#allocation41_spill] sm:$0xff]  ;;  %v5018_v59 = vld [vmem:[%s5213_s17 + $0x268] sm:$0xff] }
 0x4e4   : > { %3767 = vst [vmem:[%s5329_s27 + $0x430] sm:$0xff] %v3329_v41  ;;  %v2682_v43 = vadd.f32 %v2681_v5, %v2033_v15  ;;  %v7056_v15 = vld [vmem:[#allocation48_spill] sm:$0xff] }
 0x4e7   : > { %v3490_v13 = vpop.f32.mrf.mxu3 }
 0x4e8   : > { %v3491_v46 = vadd.f32 %v3490_v13, %v5948_v49 }
 0x4e9   : > { %v3330_v28 = vpop.f32.mrf.mxu2  ;;  %v2035_v18 = vpop.f32.mrf.mxu0 }
 0x4ea   : > { %v3331_v24 = vadd.f32 %v3330_v28, %v2682_v43  ;;  %3832 = vst [vmem:[%s5329_s27 + $0x638] sm:$0xff] %v3491_v46  ;;  %v2036_v50 = vadd.f32 %v6565_v7, %v2035_v18  ;;  %v2684_v12 = vpop.f32.mrf.mxu1  ;;  %v6621_v43 = vld [vmem:[%s5213_s17 + $0x368] sm:$0xff]  ;;  %v7057_v46 = vld [vmem:[#allocation42_spill] sm:$0xff] }
 0x4ec   : > { %3768 = vst [vmem:[%s5329_s27 + $0x438] sm:$0xff] %v3331_v24  ;;  %2074 = vmatmul.bf16.gmra.mxu0 %v5016_v0  ;;  %3532 = vmatmul.bf16.gmra.mxu3 %v6296_v9  ;;  %v2685_v39 = vadd.f32 %v2684_v12, %v2036_v50 }
 0x4ed   : > { %2723 = vmatmul.bf16.gmra.mxu1 %v6299_v47 }
 0x4ee   : > { %3372 = vmatmul.bf16.gmra.mxu2 %v6606_v31 }
 0x4ef   : > { %v3493_v49 = vpop.f32.mrf.mxu3 }
 0x4f0   : > { %v3494_v40 = vadd.f32 %v3493_v49, %v5961_v55 }
 0x4f1   : > { %v3333_v6 = vpop.f32.mrf.mxu2  ;;  %v2037_v1 = vpop.f32.mrf.mxu0 }
 0x4f2   : > { %v3334_v35 = vadd.f32 %v3333_v6, %v2685_v39  ;;  %3833 = vst [vmem:[%s5329_s27 + $0x640] sm:$0xff] %v3494_v40  ;;  %v2686_v42 = vpop.f32.mrf.mxu1  ;;  %v2038_v9 = vadd.f32 %v6565_v7, %v2037_v1  ;;  %v7058_v6 = vld [vmem:[#allocation43_spill] sm:$0xff] }
 0x4f4   : > { %3769 = vst [vmem:[%s5329_s27 + $0x440] sm:$0xff] %v3334_v35  ;;  %v2687_v47 = vadd.f32 %v2686_v42, %v2038_v9 }
 0x4f7   : > { %v3495_v51 = vpop.f32.mrf.mxu3 }
 0x4f8   : > { %v3496_v17 = vadd.f32 %v3495_v51, %v7055_v58  ;;  %v6636_v58 = vld [vmem:[%s5213_s17 + $0x370] sm:$0xff] }
 0x4f9   : > { %v3335_v57 = vpop.f32.mrf.mxu2  ;;  %v2040_v52 = vpop.f32.mrf.mxu0 }
 0x4fa   : > { %v3336_v2 = vadd.f32 %v3335_v57, %v2687_v47  ;;  %3834 = vst [vmem:[%s5329_s27 + $0x648] sm:$0xff] %v3496_v17  ;;  %v2041_v55 = vadd.f32 %v6565_v7, %v2040_v52  ;;  %v2689_v41 = vpop.f32.mrf.mxu1  ;;  %v5020_v47 = vld [vmem:[%s5213_s17 + $0x270] sm:$0xff]  ;;  %v7059_v57 = vld [vmem:[#allocation49_spill] sm:$0xff] }
 0x4fb   : > { %v7060_v52 = vld [vmem:[#allocation44_spill] sm:$0xff] }
 0x4fc   : > { %3770 = vst [vmem:[%s5329_s27 + $0x448] sm:$0xff] %v3336_v2  ;;  %2079 = vmatmul.bf16.gmra.mxu0 %v5018_v59  ;;  %3537 = vmatmul.bf16.gmra.mxu3 %v6318_v19  ;;  %v2690_v5 = vadd.f32 %v2689_v41, %v2041_v55 }
 0x4fd   : > { %2728 = vmatmul.bf16.gmra.mxu1 %v7056_v15 }
 0x4fe   : > { %3377 = vmatmul.bf16.gmra.mxu2 %v6621_v43 }
 0x4ff   : > { %v3498_v13 = vpop.f32.mrf.mxu3 }
 0x500   : > { %v3499_v24 = vadd.f32 %v3498_v13, %v7057_v46  ;;  %v7061_v46 = vld [vmem:[#allocation45_spill] sm:$0xff] }
 0x501   : > { %v3338_v28 = vpop.f32.mrf.mxu2  ;;  %v2042_v50 = vpop.f32.mrf.mxu0 }
 0x502   : > { %v3339_v18 = vadd.f32 %v3338_v28, %v2690_v5  ;;  %3835 = vst [vmem:[%s5329_s27 + $0x650] sm:$0xff] %v3499_v24  ;;  %v2691_v12 = vpop.f32.mrf.mxu1  ;;  %v2043_v19 = vadd.f32 %v6565_v7, %v2042_v50 }
 0x504   : > { %3771 = vst [vmem:[%s5329_s27 + $0x450] sm:$0xff] %v3339_v18  ;;  %v2692_v0 = vadd.f32 %v2691_v12, %v2043_v19 }
 0x507   : > { %v3500_v39 = vpop.f32.mrf.mxu3 }
 0x508   : > { %v3501_v40 = vadd.f32 %v3500_v39, %v7058_v6 }
 0x509   : > { %v3340_v49 = vpop.f32.mrf.mxu2  ;;  %v2045_v1 = vpop.f32.mrf.mxu0 }
 0x50a   : > { %v3341_v35 = vadd.f32 %v3340_v49, %v2692_v0  ;;  %3836 = vst [vmem:[%s5329_s27 + $0x658] sm:$0xff] %v3501_v40  ;;  %v2046_v42 = vadd.f32 %v6565_v7, %v2045_v1  ;;  %v2694_v9 = vpop.f32.mrf.mxu1  ;;  %v5022_v0 = vld [vmem:[%s5213_s17 + $0x278] sm:$0xff] }
 0x50b   : > { %v6651_v49 = vld [vmem:[%s5213_s17 + $0x378] sm:$0xff] }
 0x50c   : > { %3772 = vst [vmem:[%s5329_s27 + $0x458] sm:$0xff] %v3341_v35  ;;  %2084 = vmatmul.bf16.gmra.mxu0 %v5020_v47  ;;  %3542 = vmatmul.bf16.gmra.mxu3 %v6340_v56  ;;  %v2695_v51 = vadd.f32 %v2694_v9, %v2046_v42  ;;  %v7062_v35 = vld [vmem:[#allocation46_spill] sm:$0xff] }
 0x50d   : > { %2733 = vmatmul.bf16.gmra.mxu1 %v7059_v57 }
 0x50e   : > { %3382 = vmatmul.bf16.gmra.mxu2 %v6636_v58 }
 0x50f   : > { %v3503_v17 = vpop.f32.mrf.mxu3 }
 0x510   : > { %v3504_v55 = vadd.f32 %v3503_v17, %v7060_v52  ;;  %v7063_v17 = vld [vmem:[#allocation47_spill] sm:$0xff]  ;;  %v4867_v52 = vld [vmem:[%s5213_s17 + $0x480] sm:$0xff] }
 0x511   : > { %v3343_v2 = vpop.f32.mrf.mxu2  ;;  %v2047_v59 = vpop.f32.mrf.mxu0 }
 0x512   : > { %v3344_v41 = vadd.f32 %v3343_v2, %v2695_v51  ;;  %3837 = vst [vmem:[%s5329_s27 + $0x660] sm:$0xff] %v3504_v55  ;;  %v2696_v5 = vpop.f32.mrf.mxu1  ;;  %v2048_v56 = vadd.f32 %v6565_v7, %v2047_v59 }
 0x514   : > { %3773 = vst [vmem:[%s5329_s27 + $0x460] sm:$0xff] %v3344_v41  ;;  %v2697_v15 = vadd.f32 %v2696_v5, %v2048_v56  ;;  %v5024_v56 = vld [vmem:[%s5213_s17 + $0x280] sm:$0xff] }
 0x517   : > { %v3505_v13 = vpop.f32.mrf.mxu3 }
 0x518   : > { %v3506_v24 = vadd.f32 %v3505_v13, %v7061_v46  ;;  %v5025_v13 = vld [vmem:[%s5213_s17 + $0x380] sm:$0xff] }
 0x519   : > { %v3345_v28 = vpop.f32.mrf.mxu2  ;;  %v2050_v50 = vpop.f32.mrf.mxu0 }
 0x51a   : > { %v3346_v18 = vadd.f32 %v3345_v28, %v2697_v15  ;;  %3838 = vst [vmem:[%s5329_s27 + $0x668] sm:$0xff] %v3506_v24  ;;  %v2051_v12 = vadd.f32 %v6565_v7, %v2050_v50  ;;  %v2699_v19 = vpop.f32.mrf.mxu1  ;;  %v7064_v24 = vld [vmem:[#allocation2_spill] sm:$0xff] }
 0x51c   : > { %3774 = vst [vmem:[%s5329_s27 + $0x468] sm:$0xff] %v3346_v18  ;;  %2089 = vmatmul.bf16.gmra.mxu0 %v5022_v0  ;;  %3547 = vmatmul.bf16.gmra.mxu3 %v6362_v27  ;;  %v2700_v39 = vadd.f32 %v2699_v19, %v2051_v12 }
 0x51d   : > { %2738 = vmatmul.bf16.gmra.mxu1 %v6365_v8 }
 0x51e   : > { %3387 = vmatmul.bf16.gmra.mxu2 %v6651_v49 }
 0x51f   : > { %v3508_v6 = vpop.f32.mrf.mxu3 }
 0x520   : > { %v3509_v1 = vadd.f32 %v3508_v6, %v7062_v35 }
 0x521   : > { %v3348_v40 = vpop.f32.mrf.mxu2  ;;  %v2052_v9 = vpop.f32.mrf.mxu0 }
 0x522   : > { %v3349_v42 = vadd.f32 %v3348_v40, %v2700_v39  ;;  %3839 = vst [vmem:[%s5329_s27 + $0x670] sm:$0xff] %v3509_v1  ;;  %v2701_v47 = vpop.f32.mrf.mxu1  ;;  %v2053_v27 = vadd.f32 %v6565_v7, %v2052_v9  ;;  %v7065_v40 = vld [vmem:[#allocation3_spill] sm:$0xff] }
 0x523   : > { %v4868_v1 = vld [vmem:[%s5213_s17 + $0x488] sm:$0xff] }
 0x524   : > { %3775 = vst [vmem:[%s5329_s27 + $0x470] sm:$0xff] %v3349_v42  ;;  %v2702_v8 = vadd.f32 %v2701_v47, %v2053_v27 }
 0x527   : > { %v3510_v51 = vpop.f32.mrf.mxu3 }
 0x528   : > { %v3511_v2 = vadd.f32 %v3510_v51, %v7063_v17 }
 0x529   : > { %v3350_v57 = vpop.f32.mrf.mxu2  ;;  %v2055_v41 = vpop.f32.mrf.mxu0 }
 0x52a   : > { %v3351_v55 = vadd.f32 %v3350_v57, %v2702_v8  ;;  %3840 = vst [vmem:[%s5329_s27 + $0x678] sm:$0xff] %v3511_v2  ;;  %v2056_v59 = vadd.f32 %v6565_v7, %v2055_v41  ;;  %v2704_v5 = vpop.f32.mrf.mxu1  ;;  %v5026_v8 = vld [vmem:[%s5213_s17 + $0x288] sm:$0xff] }
 0x52b   : > { %v5027_v57 = vld [vmem:[%s5213_s17 + $0x388] sm:$0xff] }
 0x52c   : > { %3776 = vst [vmem:[%s5329_s27 + $0x478] sm:$0xff] %v3351_v55  ;;  %2094 = vmatmul.bf16.gmra.mxu0 %v5024_v56  ;;  %3552 = vmatmul.bf16.gmra.mxu3 %v4867_v52  ;;  %v2705_v15 = vadd.f32 %v2704_v5, %v2056_v59  ;;  %v7066_v52 = vld [vmem:[#allocation4_spill] sm:$0xff] }
 0x52d   : > { %2743 = vmatmul.bf16.gmra.mxu1 %v6389_v4 }
 0x52e   : > { %3392 = vmatmul.bf16.gmra.mxu2 %v5025_v13 }
 0x52f   : > { %v3513_v28 = vpop.f32.mrf.mxu3 }
 0x530   : > { %v3514_v18 = vadd.f32 %v3513_v28, %v7064_v24  ;;  %v7067_v28 = vld [vmem:[#allocation5_spill] sm:$0xff]  ;;  %v4869_v24 = vld [vmem:[%s5213_s17 + $0x490] sm:$0xff] }
 0x531   : > { %v3353_v46 = vpop.f32.mrf.mxu2  ;;  %v2057_v12 = vpop.f32.mrf.mxu0 }
 0x532   : > { %v3354_v50 = vadd.f32 %v3353_v46, %v2705_v15  ;;  %3841 = vst [vmem:[%s5329_s27 + $0x680] sm:$0xff] %v3514_v18  ;;  %v2706_v19 = vpop.f32.mrf.mxu1  ;;  %v2058_v0 = vadd.f32 %v6565_v7, %v2057_v12 }
 0x534   : > { %3777 = vst [vmem:[%s5329_s27 + $0x480] sm:$0xff] %v3354_v50  ;;  %v2707_v39 = vadd.f32 %v2706_v19, %v2058_v0  ;;  %v5028_v0 = vld [vmem:[%s5213_s17 + $0x290] sm:$0xff] }
 0x537   : > { %v3515_v4 = vpop.f32.mrf.mxu3 }
 0x538   : > { %v3516_v35 = vadd.f32 %v3515_v4, %v7065_v40  ;;  %v5029_v4 = vld [vmem:[%s5213_s17 + $0x390] sm:$0xff] }
 0x539   : > { %v3355_v6 = vpop.f32.mrf.mxu2  ;;  %v2060_v9 = vpop.f32.mrf.mxu0 }
 0x53a   : > { %v3356_v42 = vadd.f32 %v3355_v6, %v2707_v39  ;;  %3842 = vst [vmem:[%s5329_s27 + $0x688] sm:$0xff] %v3516_v35  ;;  %v2061_v47 = vadd.f32 %v6565_v7, %v2060_v9  ;;  %v2709_v27 = vpop.f32.mrf.mxu1  ;;  %v7068_v35 = vld [vmem:[#allocation6_spill] sm:$0xff] }
 0x53c   : > { %3778 = vst [vmem:[%s5329_s27 + $0x488] sm:$0xff] %v3356_v42  ;;  %2099 = vmatmul.bf16.gmra.mxu0 %v5026_v8  ;;  %3557 = vmatmul.bf16.gmra.mxu3 %v4868_v1  ;;  %v2710_v51 = vadd.f32 %v2709_v27, %v2061_v47 }
 0x53d   : > { %2748 = vmatmul.bf16.gmra.mxu1 %v6408_v37 }
 0x53e   : > { %3397 = vmatmul.bf16.gmra.mxu2 %v5027_v57  ;;  %v7069_v57 = vld [vmem:[#allocation7_spill] sm:$0xff] }
 0x53f   : > { %v3518_v17 = vpop.f32.mrf.mxu3 }
 0x540   : > { %v3519_v55 = vadd.f32 %v3518_v17, %v7066_v52 }
 0x541   : > { %v3358_v2 = vpop.f32.mrf.mxu2  ;;  %v2062_v59 = vpop.f32.mrf.mxu0 }
 0x542   : > { %v3359_v41 = vadd.f32 %v3358_v2, %v2710_v51  ;;  %3843 = vst [vmem:[%s5329_s27 + $0x690] sm:$0xff] %v3519_v55  ;;  %v2711_v5 = vpop.f32.mrf.mxu1  ;;  %v2063_v56 = vadd.f32 %v6565_v7, %v2062_v59  ;;  %v4870_v2 = vld [vmem:[%s5213_s17 + $0x498] sm:$0xff] }
 0x544   : > { %3779 = vst [vmem:[%s5329_s27 + $0x490] sm:$0xff] %v3359_v41  ;;  %v2712_v15 = vadd.f32 %v2711_v5, %v2063_v56  ;;  %v5030_v5 = vld [vmem:[%s5213_s17 + $0x298] sm:$0xff] }
 0x547   : > { %v3520_v37 = vpop.f32.mrf.mxu3 }
 0x548   : > { %v3521_v46 = vadd.f32 %v3520_v37, %v7067_v28  ;;  %v7070_v28 = vld [vmem:[#allocation8_spill] sm:$0xff] }
 0x549   : > { %v3360_v13 = vpop.f32.mrf.mxu2  ;;  %v2065_v50 = vpop.f32.mrf.mxu0 }
 0x54a   : > { %v3361_v18 = vadd.f32 %v3360_v13, %v2712_v15  ;;  %3844 = vst [vmem:[%s5329_s27 + $0x698] sm:$0xff] %v3521_v46  ;;  %v2066_v12 = vadd.f32 %v6565_v7, %v2065_v50  ;;  %v2714_v19 = vpop.f32.mrf.mxu1  ;;  %v5031_v15 = vld [vmem:[%s5213_s17 + $0x398] sm:$0xff] }
 0x54c   : > { %3780 = vst [vmem:[%s5329_s27 + $0x498] sm:$0xff] %v3361_v18  ;;  %2104 = vmatmul.bf16.gmra.mxu0 %v5028_v0  ;;  %3562 = vmatmul.bf16.gmra.mxu3 %v4869_v24  ;;  %v2715_v39 = vadd.f32 %v2714_v19, %v2066_v12 }
 0x54d   : > { %2753 = vmatmul.bf16.gmra.mxu1 %v6427_v21 }
 0x54e   : > { %3402 = vmatmul.bf16.gmra.mxu2 %v5029_v4 }
 0x54f   : > { %v3523_v6 = vpop.f32.mrf.mxu3 }
 0x550   : > { %v3524_v1 = vadd.f32 %v3523_v6, %v7068_v35  ;;  %v4871_v6 = vld [vmem:[%s5213_s17 + $0x4a0] sm:$0xff] }
 0x551   : > { %v3363_v40 = vpop.f32.mrf.mxu2  ;;  %v2067_v9 = vpop.f32.mrf.mxu0 }
 0x552   : > { %v3364_v42 = vadd.f32 %v3363_v40, %v2715_v39  ;;  %3845 = vst [vmem:[%s5329_s27 + $0x6a0] sm:$0xff] %v3524_v1  ;;  %v2716_v47 = vpop.f32.mrf.mxu1  ;;  %v2068_v27 = vadd.f32 %v6565_v7, %v2067_v9  ;;  %v7071_v39 = vld [vmem:[#allocation9_spill] sm:$0xff]  ;;  %v5032_v9 = vld [vmem:[%s5213_s17 + $0x2a0] sm:$0xff] }
 0x554   : > { %3781 = vst [vmem:[%s5329_s27 + $0x4a0] sm:$0xff] %v3364_v42  ;;  %v2717_v8 = vadd.f32 %v2716_v47, %v2068_v27  ;;  %v5033_v27 = vld [vmem:[%s5213_s17 + $0x3a0] sm:$0xff] }
 0x557   : > { %v3525_v21 = vpop.f32.mrf.mxu3 }
 0x558   : > { %v3526_v17 = vadd.f32 %v3525_v21, %v7069_v57 }
 0x559   : > { %v3365_v51 = vpop.f32.mrf.mxu2  ;;  %v2070_v55 = vpop.f32.mrf.mxu0 }
 0x55a   : > { %v3366_v52 = vadd.f32 %v3365_v51, %v2717_v8  ;;  %3846 = vst [vmem:[%s5329_s27 + $0x6a8] sm:$0xff] %v3526_v17  ;;  %v2071_v41 = vadd.f32 %v6565_v7, %v2070_v55  ;;  %v2719_v59 = vpop.f32.mrf.mxu1  ;;  %v7072_v51 = vld [vmem:[#allocation10_spill] sm:$0xff] }
 0x55c   : > { %3782 = vst [vmem:[%s5329_s27 + $0x4a8] sm:$0xff] %v3366_v52  ;;  %2109 = vmatmul.bf16.gmra.mxu0 %v5030_v5  ;;  %3567 = vmatmul.bf16.gmra.mxu3 %v4870_v2  ;;  %v2720_v56 = vadd.f32 %v2719_v59, %v2071_v41  ;;  %v7073_v5 = vld [vmem:[#allocation11_spill] sm:$0xff] }
 0x55d   : > { %2758 = vmatmul.bf16.gmra.mxu1 %v6446_v23 }
 0x55e   : > { %3407 = vmatmul.bf16.gmra.mxu2 %v5031_v15  ;;  %v4872_v15 = vld [vmem:[%s5213_s17 + $0x4a8] sm:$0xff] }
 0x55f   : > { %v3528_v37 = vpop.f32.mrf.mxu3 }
 0x560   : > { %v3529_v46 = vadd.f32 %v3528_v37, %v7070_v28 }
 0x561   : > { %v3368_v13 = vpop.f32.mrf.mxu2  ;;  %v2072_v18 = vpop.f32.mrf.mxu0 }
 0x562   : > { %v3369_v24 = vadd.f32 %v3368_v13, %v2720_v56  ;;  %3847 = vst [vmem:[%s5329_s27 + $0x6b0] sm:$0xff] %v3529_v46  ;;  %v2721_v50 = vpop.f32.mrf.mxu1  ;;  %v2073_v12 = vadd.f32 %v6565_v7, %v2072_v18 }
 0x564   : > { %3783 = vst [vmem:[%s5329_s27 + $0x4b0] sm:$0xff] %v3369_v24  ;;  %v2722_v19 = vadd.f32 %v2721_v50, %v2073_v12  ;;  %v5034_v24 = vld [vmem:[%s5213_s17 + $0x2a8] sm:$0xff] }
 0x565   : > { %v5035_v50 = vld [vmem:[%s5213_s17 + $0x3a8] sm:$0xff] }
 0x567   : > { %v3530_v23 = vpop.f32.mrf.mxu3 }
 0x568   : > { %v3531_v4 = vadd.f32 %v3530_v23, %v7071_v39  ;;  %v7074_v23 = vld [vmem:[#allocation12_spill] sm:$0xff] }
 0x569   : > { %v3370_v0 = vpop.f32.mrf.mxu2  ;;  %v2075_v35 = vpop.f32.mrf.mxu0 }
 0x56a   : > { %v3371_v40 = vadd.f32 %v3370_v0, %v2722_v19  ;;  %3848 = vst [vmem:[%s5329_s27 + $0x6b8] sm:$0xff] %v3531_v4  ;;  %v2076_v1 = vadd.f32 %v6565_v7, %v2075_v35  ;;  %v2724_v42 = vpop.f32.mrf.mxu1 }
 0x56c   : > { %3784 = vst [vmem:[%s5329_s27 + $0x4b8] sm:$0xff] %v3371_v40  ;;  %2114 = vmatmul.bf16.gmra.mxu0 %v5032_v9  ;;  %3572 = vmatmul.bf16.gmra.mxu3 %v4871_v6  ;;  %v2725_v47 = vadd.f32 %v2724_v42, %v2076_v1  ;;  %v7075_v42 = vld [vmem:[#allocation13_spill] sm:$0xff] }
 0x56d   : > { %2763 = vmatmul.bf16.gmra.mxu1 %v6465_v53 }
 0x56e   : > { %3412 = vmatmul.bf16.gmra.mxu2 %v5033_v27 }
 0x56f   : > { %v3533_v8 = vpop.f32.mrf.mxu3 }
 0x570   : > { %v3534_v57 = vadd.f32 %v3533_v8, %v7072_v51 }
 0x571   : > { %v3373_v21 = vpop.f32.mrf.mxu2  ;;  %v2077_v2 = vpop.f32.mrf.mxu0 }
 0x572   : > { %v3374_v17 = vadd.f32 %v3373_v21, %v2725_v47  ;;  %3849 = vst [vmem:[%s5329_s27 + $0x6c0] sm:$0xff] %v3534_v57  ;;  %v2726_v52 = vpop.f32.mrf.mxu1  ;;  %v2078_v55 = vadd.f32 %v6565_v7, %v2077_v2  ;;  %v4873_v47 = vld [vmem:[%s5213_s17 + $0x4b0] sm:$0xff] }
 0x573   : > { %v5036_v57 = vld [vmem:[%s5213_s17 + $0x2b0] sm:$0xff] }
 0x574   : > { %3785 = vst [vmem:[%s5329_s27 + $0x4c0] sm:$0xff] %v3374_v17  ;;  %v2727_v41 = vadd.f32 %v2726_v52, %v2078_v55  ;;  %v5037_v2 = vld [vmem:[%s5213_s17 + $0x3b0] sm:$0xff] }
 0x577   : > { %v3535_v53 = vpop.f32.mrf.mxu3 }
 0x578   : > { %v3536_v56 = vadd.f32 %v3535_v53, %v7073_v5 }
 0x579   : > { %v3375_v59 = vpop.f32.mrf.mxu2  ;;  %v2080_v13 = vpop.f32.mrf.mxu0 }
 0x57a   : > { %v3376_v37 = vadd.f32 %v3375_v59, %v2727_v41  ;;  %3850 = vst [vmem:[%s5329_s27 + $0x6c8] sm:$0xff] %v3536_v56  ;;  %v2081_v28 = vadd.f32 %v6565_v7, %v2080_v13  ;;  %v2729_v46 = vpop.f32.mrf.mxu1  ;;  %v7076_v41 = vld [vmem:[#allocation14_spill] sm:$0xff] }
 0x57c   : > { %3786 = vst [vmem:[%s5329_s27 + $0x4c8] sm:$0xff] %v3376_v37  ;;  %2119 = vmatmul.bf16.gmra.mxu0 %v5034_v24  ;;  %3577 = vmatmul.bf16.gmra.mxu3 %v4872_v15  ;;  %v2730_v18 = vadd.f32 %v2729_v46, %v2081_v28  ;;  %v7077_v28 = vld [vmem:[#allocation15_spill] sm:$0xff]  ;;  %v4874_v24 = vld [vmem:[%s5213_s17 + $0x4b8] sm:$0xff] }
 0x57d   : > { %2768 = vmatmul.bf16.gmra.mxu1 %v6484_v26 }
 0x57e   : > { %3417 = vmatmul.bf16.gmra.mxu2 %v5035_v50 }
 0x57f   : > { %v3538_v12 = vpop.f32.mrf.mxu3 }
 0x580   : > { %v3539_v0 = vadd.f32 %v3538_v12, %v7074_v23  ;;  %v5038_v23 = vld [vmem:[%s5213_s17 + $0x2b8] sm:$0xff] }
 0x581   : > { %v3378_v19 = vpop.f32.mrf.mxu2  ;;  %v2082_v4 = vpop.f32.mrf.mxu0 }
 0x582   : > { %v3379_v39 = vadd.f32 %v3378_v19, %v2730_v18  ;;  %3851 = vst [vmem:[%s5329_s27 + $0x6d0] sm:$0xff] %v3539_v0  ;;  %v2731_v6 = vpop.f32.mrf.mxu1  ;;  %v2083_v40 = vadd.f32 %v6565_v7, %v2082_v4 }
 0x584   : > { %3787 = vst [vmem:[%s5329_s27 + $0x4d0] sm:$0xff] %v3379_v39  ;;  %v2732_v35 = vadd.f32 %v2731_v6, %v2083_v40  ;;  %v5039_v39 = vld [vmem:[%s5213_s17 + $0x3b8] sm:$0xff]  ;;  %v7078_v40 = vld [vmem:[#allocation16_spill] sm:$0xff] }
 0x587   : > { %v3540_v26 = vpop.f32.mrf.mxu3 }
 0x588   : > { %v3541_v9 = vadd.f32 %v3540_v26, %v7075_v42 }
 0x589   : > { %v3380_v1 = vpop.f32.mrf.mxu2  ;;  %v2085_v8 = vpop.f32.mrf.mxu0 }
 0x58a   : > { %v3381_v27 = vadd.f32 %v3380_v1, %v2732_v35  ;;  %3852 = vst [vmem:[%s5329_s27 + $0x6d8] sm:$0xff] %v3541_v9  ;;  %v2086_v21 = vadd.f32 %v6565_v7, %v2085_v8  ;;  %v2734_v51 = vpop.f32.mrf.mxu1  ;;  %v7079_v8 = vld [vmem:[#allocation17_spill] sm:$0xff] }
 0x58c   : > { %3788 = vst [vmem:[%s5329_s27 + $0x4d8] sm:$0xff] %v3381_v27  ;;  %2124 = vmatmul.bf16.gmra.mxu0 %v5036_v57  ;;  %3582 = vmatmul.bf16.gmra.mxu3 %v4873_v47  ;;  %v2735_v17 = vadd.f32 %v2734_v51, %v2086_v21  ;;  %v4875_v51 = vld [vmem:[%s5213_s17 + $0x4c0] sm:$0xff] }
 0x58d   : > { %2773 = vmatmul.bf16.gmra.mxu1 %v6503_v30 }
 0x58e   : > { %3422 = vmatmul.bf16.gmra.mxu2 %v5037_v2 }
 0x58f   : > { %v3543_v52 = vpop.f32.mrf.mxu3 }
 0x590   : > { %v3544_v53 = vadd.f32 %v3543_v52, %v7076_v41 }
 0x591   : > { %v3383_v55 = vpop.f32.mrf.mxu2  ;;  %v2087_v5 = vpop.f32.mrf.mxu0 }
 0x592   : > { %v3384_v59 = vadd.f32 %v3383_v55, %v2735_v17  ;;  %3853 = vst [vmem:[%s5329_s27 + $0x6e0] sm:$0xff] %v3544_v53  ;;  %v2736_v56 = vpop.f32.mrf.mxu1  ;;  %v2088_v15 = vadd.f32 %v6565_v7, %v2087_v5  ;;  %v5040_v55 = vld [vmem:[%s5213_s17 + $0x2c0] sm:$0xff] }
 0x593   : > { %v5041_v53 = vld [vmem:[%s5213_s17 + $0x3c0] sm:$0xff] }
 0x594   : > { %3789 = vst [vmem:[%s5329_s27 + $0x4e0] sm:$0xff] %v3384_v59  ;;  %v2737_v37 = vadd.f32 %v2736_v56, %v2088_v15  ;;  %v7080_v56 = vld [vmem:[#allocation18_spill] sm:$0xff] }
 0x597   : > { %v3545_v30 = vpop.f32.mrf.mxu3 }
 0x598   : > { %v3546_v46 = vadd.f32 %v3545_v30, %v7077_v28 }
 0x599   : > { %v3385_v13 = vpop.f32.mrf.mxu2  ;;  %v2090_v50 = vpop.f32.mrf.mxu0 }
 0x59a   : > { %v3386_v18 = vadd.f32 %v3385_v13, %v2737_v37  ;;  %3854 = vst [vmem:[%s5329_s27 + $0x6e8] sm:$0xff] %v3546_v46  ;;  %v2091_v12 = vadd.f32 %v6565_v7, %v2090_v50  ;;  %v2739_v19 = vpop.f32.mrf.mxu1 }
 0x59c   : > { %3790 = vst [vmem:[%s5329_s27 + $0x4e8] sm:$0xff] %v3386_v18  ;;  %2129 = vmatmul.bf16.gmra.mxu0 %v5038_v23  ;;  %3587 = vmatmul.bf16.gmra.mxu3 %v4874_v24  ;;  %v2740_v0 = vadd.f32 %v2739_v19, %v2091_v12  ;;  %v7081_v18 = vld [vmem:[#allocation19_spill] sm:$0xff] }
 0x59d   : > { %2778 = vmatmul.bf16.gmra.mxu1 %v6522_v34  ;;  %v4876_v12 = vld [vmem:[%s5213_s17 + $0x4c8] sm:$0xff] }
 0x59e   : > { %3427 = vmatmul.bf16.gmra.mxu2 %v5039_v39 }
 0x59f   : > { %v3548_v4 = vpop.f32.mrf.mxu3 }
 0x5a0   : > { %v3549_v35 = vadd.f32 %v3548_v4, %v7078_v40  ;;  %v5042_v4 = vld [vmem:[%s5213_s17 + $0x2c8] sm:$0xff] }
 0x5a1   : > { %v3388_v6 = vpop.f32.mrf.mxu2  ;;  %v2092_v1 = vpop.f32.mrf.mxu0  ;;  %v5043_v40 = vld [vmem:[%s5213_s17 + $0x3c8] sm:$0xff] }
 0x5a2   : > { %v3389_v26 = vadd.f32 %v3388_v6, %v2740_v0  ;;  %3855 = vst [vmem:[%s5329_s27 + $0x6f0] sm:$0xff] %v3549_v35  ;;  %v2741_v42 = vpop.f32.mrf.mxu1  ;;  %v2093_v9 = vadd.f32 %v6565_v7, %v2092_v1  ;;  %v7082_v1 = vld [vmem:[#allocation20_spill] sm:$0xff] }
 0x5a4   : > { %3791 = vst [vmem:[%s5329_s27 + $0x4f0] sm:$0xff] %v3389_v26  ;;  %v2742_v47 = vadd.f32 %v2741_v42, %v2093_v9 }
 0x5a7   : > { %v3550_v34 = vpop.f32.mrf.mxu3 }
 0x5a8   : > { %v3551_v21 = vadd.f32 %v3550_v34, %v7079_v8 }
 0x5a9   : > { %v3390_v27 = vpop.f32.mrf.mxu2  ;;  %v2095_v17 = vpop.f32.mrf.mxu0 }
 0x5aa   : > { %v3391_v57 = vadd.f32 %v3390_v27, %v2742_v47  ;;  %3856 = vst [vmem:[%s5329_s27 + $0x6f8] sm:$0xff] %v3551_v21  ;;  %v2096_v2 = vadd.f32 %v6565_v7, %v2095_v17  ;;  %v2744_v52 = vpop.f32.mrf.mxu1  ;;  %v4877_v17 = vld [vmem:[%s5213_s17 + $0x4d0] sm:$0xff] }
 0x5ac   : > { %3792 = vst [vmem:[%s5329_s27 + $0x4f8] sm:$0xff] %v3391_v57  ;;  %2134 = vmatmul.bf16.gmra.mxu0 %v5040_v55  ;;  %3592 = vmatmul.bf16.gmra.mxu3 %v4875_v51  ;;  %v2745_v41 = vadd.f32 %v2744_v52, %v2096_v2  ;;  %v7083_v51 = vld [vmem:[#allocation21_spill] sm:$0xff] }
 0x5ad   : > { %2783 = vmatmul.bf16.gmra.mxu1 %v6541_v38 }
 0x5ae   : > { %3432 = vmatmul.bf16.gmra.mxu2 %v5041_v53  ;;  %v5044_v53 = vld [vmem:[%s5213_s17 + $0x2d0] sm:$0xff] }
 0x5af   : > { %v3553_v59 = vpop.f32.mrf.mxu3 }
 0x5b0   : > { %v3554_v15 = vadd.f32 %v3553_v59, %v7080_v56 }
 0x5b1   : > { %v3393_v5 = vpop.f32.mrf.mxu2  ;;  %v2097_v30 = vpop.f32.mrf.mxu0 }
 0x5b2   : > { %v3394_v37 = vadd.f32 %v3393_v5, %v2745_v41  ;;  %3857 = vst [vmem:[%s5329_s27 + $0x700] sm:$0xff] %v3554_v15  ;;  %v2746_v13 = vpop.f32.mrf.mxu1  ;;  %v2098_v28 = vadd.f32 %v6565_v7, %v2097_v30  ;;  %v5045_v5 = vld [vmem:[%s5213_s17 + $0x3d0] sm:$0xff] }
 0x5b4   : > { %3793 = vst [vmem:[%s5329_s27 + $0x500] sm:$0xff] %v3394_v37  ;;  %v2747_v46 = vadd.f32 %v2746_v13, %v2098_v28  ;;  %v7084_v37 = vld [vmem:[#allocation22_spill] sm:$0xff] }
 0x5b7   : > { %v3555_v38 = vpop.f32.mrf.mxu3 }
 0x5b8   : > { %v3556_v50 = vadd.f32 %v3555_v38, %v7081_v18 }
 0x5b9   : > { %v3395_v24 = vpop.f32.mrf.mxu2  ;;  %v2100_v23 = vpop.f32.mrf.mxu0 }
 0x5ba   : > { %v3396_v19 = vadd.f32 %v3395_v24, %v2747_v46  ;;  %3858 = vst [vmem:[%s5329_s27 + $0x708] sm:$0xff] %v3556_v50  ;;  %v2101_v0 = vadd.f32 %v6565_v7, %v2100_v23  ;;  %v2749_v39 = vpop.f32.mrf.mxu1  ;;  %v7085_v50 = vld [vmem:[#allocation23_spill] sm:$0xff] }
 0x5bc   : > { %3794 = vst [vmem:[%s5329_s27 + $0x508] sm:$0xff] %v3396_v19  ;;  %2139 = vmatmul.bf16.gmra.mxu0 %v5042_v4  ;;  %3597 = vmatmul.bf16.gmra.mxu3 %v4876_v12  ;;  %v2750_v6 = vadd.f32 %v2749_v39, %v2101_v0  ;;  %v4878_v19 = vld [vmem:[%s5213_s17 + $0x4d8] sm:$0xff] }
 0x5bd   : > { %2788 = vmatmul.bf16.gmra.mxu1 %v6556_v33 }
 0x5be   : > { %3437 = vmatmul.bf16.gmra.mxu2 %v5043_v40 }
 0x5bf   : > { %v3558_v35 = vpop.f32.mrf.mxu3 }
 0x5c0   : > { %v3559_v42 = vadd.f32 %v3558_v35, %v7082_v1  ;;  %v5047_v35 = vld [vmem:[%s5213_s17 + $0x3d8] sm:$0xff] }
 0x5c1   : > { %v3398_v26 = vpop.f32.mrf.mxu2  ;;  %v2102_v47 = vpop.f32.mrf.mxu0 }
 0x5c2   : > { %v3399_v9 = vadd.f32 %v3398_v26, %v2750_v6  ;;  %3859 = vst [vmem:[%s5329_s27 + $0x710] sm:$0xff] %v3559_v42  ;;  %v2751_v34 = vpop.f32.mrf.mxu1  ;;  %v2103_v27 = vadd.f32 %v6565_v7, %v2102_v47  ;;  %v5046_v6 = vld [vmem:[%s5213_s17 + $0x2d8] sm:$0xff]  ;;  %v7086_v42 = vld [vmem:[#allocation24_spill] sm:$0xff] }
 0x5c4   : > { %3795 = vst [vmem:[%s5329_s27 + $0x510] sm:$0xff] %v3399_v9  ;;  %v2752_v8 = vadd.f32 %v2751_v34, %v2103_v27 }
 0x5c7   : > { %v3560_v33 = vpop.f32.mrf.mxu3 }
 0x5c8   : > { %v3561_v57 = vadd.f32 %v3560_v33, %v7083_v51  ;;  %v7087_v51 = vld [vmem:[#allocation25_spill] sm:$0xff] }
 0x5c9   : > { %v3400_v21 = vpop.f32.mrf.mxu2  ;;  %v2105_v52 = vpop.f32.mrf.mxu0 }
 0x5ca   : > { %v3401_v2 = vadd.f32 %v3400_v21, %v2752_v8  ;;  %3860 = vst [vmem:[%s5329_s27 + $0x718] sm:$0xff] %v3561_v57  ;;  %v2106_v55 = vadd.f32 %v6565_v7, %v2105_v52  ;;  %v2754_v41 = vpop.f32.mrf.mxu1 }
 0x5cc   : > { %3796 = vst [vmem:[%s5329_s27 + $0x518] sm:$0xff] %v3401_v2  ;;  %2144 = vmatmul.bf16.gmra.mxu0 %v5044_v53  ;;  %3602 = vmatmul.bf16.gmra.mxu3 %v4877_v17  ;;  %v2755_v59 = vadd.f32 %v2754_v41, %v2106_v55  ;;  %v4879_v17 = vld [vmem:[%s5213_s17 + $0x4e0] sm:$0xff] }
 0x5cd   : > { %2793 = vmatmul.bf16.gmra.mxu1 %v6576_v48  ;;  %v5048_v53 = vld [vmem:[%s5213_s17 + $0x2e0] sm:$0xff] }
 0x5ce   : > { %3442 = vmatmul.bf16.gmra.mxu2 %v5045_v5  ;;  %v5049_v5 = vld [vmem:[%s5213_s17 + $0x3e0] sm:$0xff] }
 0x5cf   : > { %v3563_v56 = vpop.f32.mrf.mxu3 }
 0x5d0   : > { %v3564_v30 = vadd.f32 %v3563_v56, %v7084_v37  ;;  %v7088_v37 = vld [vmem:[#allocation26_spill] sm:$0xff] }
 0x5d1   : > { %v3403_v15 = vpop.f32.mrf.mxu2  ;;  %v2107_v28 = vpop.f32.mrf.mxu0 }
 0x5d2   : > { %v3404_v13 = vadd.f32 %v3403_v15, %v2755_v59  ;;  %3861 = vst [vmem:[%s5329_s27 + $0x720] sm:$0xff] %v3564_v30  ;;  %v2756_v46 = vpop.f32.mrf.mxu1  ;;  %v2108_v38 = vadd.f32 %v6565_v7, %v2107_v28 }
 0x5d4   : > { %3797 = vst [vmem:[%s5329_s27 + $0x520] sm:$0xff] %v3404_v13  ;;  %v2757_v24 = vadd.f32 %v2756_v46, %v2108_v38 }
 0x5d7   : > { %v3565_v48 = vpop.f32.mrf.mxu3 }
 0x5d8   : > { %v3566_v12 = vadd.f32 %v3565_v48, %v7085_v50 }
 0x5d9   : > { %v3405_v18 = vpop.f32.mrf.mxu2  ;;  %v2110_v0 = vpop.f32.mrf.mxu0 }
 0x5da   : > { %v3406_v23 = vadd.f32 %v3405_v18, %v2757_v24  ;;  %3862 = vst [vmem:[%s5329_s27 + $0x728] sm:$0xff] %v3566_v12  ;;  %v2111_v39 = vadd.f32 %v6565_v7, %v2110_v0  ;;  %v2759_v4 = vpop.f32.mrf.mxu1  ;;  %v7089_v18 = vld [vmem:[#allocation27_spill] sm:$0xff] }
 0x5db   : > { %v4880_v12 = vld [vmem:[%s5213_s17 + $0x4e8] sm:$0xff] }
 0x5dc   : > { %3798 = vst [vmem:[%s5329_s27 + $0x528] sm:$0xff] %v3406_v23  ;;  %2149 = vmatmul.bf16.gmra.mxu0 %v5046_v6  ;;  %3607 = vmatmul.bf16.gmra.mxu3 %v4878_v19  ;;  %v2760_v40 = vadd.f32 %v2759_v4, %v2111_v39  ;;  %v5050_v4 = vld [vmem:[%s5213_s17 + $0x2e8] sm:$0xff] }
 0x5dd   : > { %2798 = vmatmul.bf16.gmra.mxu1 %v6591_v3 }
 0x5de   : > { %3447 = vmatmul.bf16.gmra.mxu2 %v5047_v35 }
 0x5df   : > { %v3568_v26 = vpop.f32.mrf.mxu3 }
 0x5e0   : > { %v3569_v9 = vadd.f32 %v3568_v26, %v7086_v42 }
 0x5e1   : > { %v3408_v1 = vpop.f32.mrf.mxu2  ;;  %v2112_v34 = vpop.f32.mrf.mxu0 }
 0x5e2   : > { %v3409_v47 = vadd.f32 %v3408_v1, %v2760_v40  ;;  %3863 = vst [vmem:[%s5329_s27 + $0x730] sm:$0xff] %v3569_v9  ;;  %v2761_v27 = vpop.f32.mrf.mxu1  ;;  %v2113_v8 = vadd.f32 %v6565_v7, %v2112_v34  ;;  %v5051_v40 = vld [vmem:[%s5213_s17 + $0x3e8] sm:$0xff]  ;;  %v7090_v1 = vld [vmem:[#allocation28_spill] sm:$0xff] }
 0x5e4   : > { %3799 = vst [vmem:[%s5329_s27 + $0x530] sm:$0xff] %v3409_v47  ;;  %v2762_v33 = vadd.f32 %v2761_v27, %v2113_v8 }
 0x5e7   : > { %v3570_v3 = vpop.f32.mrf.mxu3 }
 0x5e8   : > { %v3571_v57 = vadd.f32 %v3570_v3, %v7087_v51  ;;  %v7091_v3 = vld [vmem:[#allocation29_spill] sm:$0xff]  ;;  %v4881_v51 = vld [vmem:[%s5213_s17 + $0x4f0] sm:$0xff] }
 0x5e9   : > { %v3410_v21 = vpop.f32.mrf.mxu2  ;;  %v2115_v52 = vpop.f32.mrf.mxu0 }
 0x5ea   : > { %v3411_v2 = vadd.f32 %v3410_v21, %v2762_v33  ;;  %3864 = vst [vmem:[%s5329_s27 + $0x738] sm:$0xff] %v3571_v57  ;;  %v2116_v55 = vadd.f32 %v6565_v7, %v2115_v52  ;;  %v2764_v41 = vpop.f32.mrf.mxu1 }
 0x5ec   : > { %3800 = vst [vmem:[%s5329_s27 + $0x538] sm:$0xff] %v3411_v2  ;;  %2154 = vmatmul.bf16.gmra.mxu0 %v5048_v53  ;;  %3612 = vmatmul.bf16.gmra.mxu3 %v4879_v17  ;;  %v2765_v59 = vadd.f32 %v2764_v41, %v2116_v55  ;;  %v5052_v55 = vld [vmem:[%s5213_s17 + $0x2f0] sm:$0xff] }
 0x5ed   : > { %2803 = vmatmul.bf16.gmra.mxu1 %v6606_v31  ;;  %v5053_v53 = vld [vmem:[%s5213_s17 + $0x3f0] sm:$0xff] }
 0x5ee   : > { %3452 = vmatmul.bf16.gmra.mxu2 %v5049_v5 }
 0x5ef   : > { %v3573_v56 = vpop.f32.mrf.mxu3 }
 0x5f0   : > { %v3574_v30 = vadd.f32 %v3573_v56, %v7088_v37  ;;  %v7092_v56 = vld [vmem:[#allocation30_spill] sm:$0xff] }
 0x5f1   : > { %v3413_v15 = vpop.f32.mrf.mxu2  ;;  %v2117_v28 = vpop.f32.mrf.mxu0 }
 0x5f2   : > { %v3414_v13 = vadd.f32 %v3413_v15, %v2765_v59  ;;  %3865 = vst [vmem:[%s5329_s27 + $0x740] sm:$0xff] %v3574_v30  ;;  %v2766_v46 = vpop.f32.mrf.mxu1  ;;  %v2118_v38 = vadd.f32 %v6565_v7, %v2117_v28 }
 0x5f4   : > { %3801 = vst [vmem:[%s5329_s27 + $0x540] sm:$0xff] %v3414_v13  ;;  %v2767_v24 = vadd.f32 %v2766_v46, %v2118_v38  ;;  %v6840_v13 = vld [vmem:[%s6933_s2] ss:$0 sm:$0xff] }
 0x5f7   : > { %v3575_v31 = vpop.f32.mrf.mxu3 }
 0x5f8   : > { %v3576_v50 = vadd.f32 %v3575_v31, %v7089_v18 }
 0x5f9   : > { %v3415_v48 = vpop.f32.mrf.mxu2  ;;  %v2120_v23 = vpop.f32.mrf.mxu0 }
 0x5fa   : > { %v3416_v19 = vadd.f32 %v3415_v48, %v2767_v24  ;;  %3866 = vst [vmem:[%s5329_s27 + $0x748] sm:$0xff] %v3576_v50  ;;  %v2121_v0 = vadd.f32 %v6565_v7, %v2120_v23  ;;  %v2769_v39 = vpop.f32.mrf.mxu1  ;;  %v7093_v24 = vld [vmem:[#allocation31_spill] sm:$0xff]  ;;  %v4882_v48 = vld [vmem:[%s5213_s17 + $0x4f8] sm:$0xff] }
 0x5fb   : > { %v5055_v23 = vld [vmem:[%s5213_s17 + $0x2f8] sm:$0xff] }
 0x5fc   : > { %3802 = vst [vmem:[%s5329_s27 + $0x548] sm:$0xff] %v3416_v19  ;;  %2159 = vmatmul.bf16.gmra.mxu0 %v5050_v4  ;;  %3617 = vmatmul.bf16.gmra.mxu3 %v4880_v12  ;;  %v2770_v6 = vadd.f32 %v2769_v39, %v2121_v0  ;;  %v5056_v39 = vld [vmem:[%s5213_s17 + $0x3f8] sm:$0xff] }
 0x5fd   : > { %2808 = vmatmul.bf16.gmra.mxu1 %v6621_v43 }
 0x5fe   : > { %3457 = vmatmul.bf16.gmra.mxu2 %v5051_v40  ;;  %v7094_v40 = vld [vmem:[#allocation32_spill] sm:$0xff] }
 0x5ff   : > { %v3578_v35 = vpop.f32.mrf.mxu3 }
 0x600   : > { %v3579_v42 = vadd.f32 %v3578_v35, %v7090_v1 }
 0x601   : > { %v3418_v26 = vpop.f32.mrf.mxu2  ;;  %v2122_v47 = vpop.f32.mrf.mxu0 }
 0x602   : > { %v3419_v9 = vadd.f32 %v3418_v26, %v2770_v6  ;;  %3867 = vst [vmem:[%s5329_s27 + $0x750] sm:$0xff] %v3579_v42  ;;  %v2771_v34 = vpop.f32.mrf.mxu1  ;;  %v2123_v27 = vadd.f32 %v6565_v7, %v2122_v47 }
 0x604   : > { %3803 = vst [vmem:[%s5329_s27 + $0x550] sm:$0xff] %v3419_v9  ;;  %v2772_v8 = vadd.f32 %v2771_v34, %v2123_v27 }
 0x607   : > { %v3580_v43 = vpop.f32.mrf.mxu3 }
 0x608   : > { %v3581_v21 = vadd.f32 %v3580_v43, %v7091_v3 }
 0x609   : > { %v3420_v33 = vpop.f32.mrf.mxu2  ;;  %v2125_v17 = vpop.f32.mrf.mxu0 }
 0x60a   : > { %v3421_v57 = vadd.f32 %v3420_v33, %v2772_v8  ;;  %3868 = vst [vmem:[%s5329_s27 + $0x758] sm:$0xff] %v3581_v21  ;;  %v2126_v2 = vadd.f32 %v6565_v7, %v2125_v17  ;;  %v2774_v52 = vpop.f32.mrf.mxu1 }
 0x60c   : > { %3804 = vst [vmem:[%s5329_s27 + $0x558] sm:$0xff] %v3421_v57  ;;  %2164 = vmatmul.bf16.gmra.mxu0 %v5052_v55  ;;  %3622 = vmatmul.bf16.gmra.mxu3 %v4881_v51  ;;  %v2775_v41 = vadd.f32 %v2774_v52, %v2126_v2 }
 0x60d   : > { %2813 = vmatmul.bf16.gmra.mxu1 %v6636_v58 }
 0x60e   : > { %3462 = vmatmul.bf16.gmra.mxu2 %v5053_v53 }
 0x60f   : > { %v3583_v59 = vpop.f32.mrf.mxu3 }
 0x610   : > { %v3584_v15 = vadd.f32 %v3583_v59, %v7092_v56 }
 0x611   : > { %v3423_v5 = vpop.f32.mrf.mxu2  ;;  %v2127_v30 = vpop.f32.mrf.mxu0 }
 0x612   : > { %v3424_v37 = vadd.f32 %v3423_v5, %v2775_v41  ;;  %3869 = vst [vmem:[%s5329_s27 + $0x760] sm:$0xff] %v3584_v15  ;;  %v2776_v7 = vpop.f32.mrf.mxu1  ;;  %v2128_v58 = vadd.f32 %v6840_v13, %v2127_v30 }
 0x614   : > { %3805 = vst [vmem:[%s5329_s27 + $0x560] sm:$0xff] %v3424_v37  ;;  %v2777_v28 = vadd.f32 %v2776_v7, %v2128_v58 }
 0x617   : > { %v3585_v46 = vpop.f32.mrf.mxu3 }
 0x618   : > { %v3586_v31 = vadd.f32 %v3585_v46, %v7093_v24 }
 0x619   : > { %v3425_v38 = vpop.f32.mrf.mxu2  ;;  %v2130_v50 = vpop.f32.mrf.mxu0 }
 0x61a   : > { %v3426_v18 = vadd.f32 %v3425_v38, %v2777_v28  ;;  %3870 = vst [vmem:[%s5329_s27 + $0x768] sm:$0xff] %v3586_v31  ;;  %v2131_v12 = vadd.f32 %v6840_v13, %v2130_v50  ;;  %v2779_v19 = vpop.f32.mrf.mxu1 }
 0x61c   : > { %3806 = vst [vmem:[%s5329_s27 + $0x568] sm:$0xff] %v3426_v18  ;;  %2169 = vmatmul.bf16.gmra.mxu0 %v5055_v23  ;;  %3627 = vmatmul.bf16.gmra.mxu3 %v4882_v48  ;;  %v2780_v0 = vadd.f32 %v2779_v19, %v2131_v12 }
 0x61d   : > { %2818 = vmatmul.bf16.gmra.mxu1 %v6651_v49 }
 0x61e   : > { %3467 = vmatmul.bf16.gmra.mxu2 %v5056_v39 }
 0x61f   : > { %v3588_v4 = vpop.f32.mrf.mxu3 }
 0x620   : > { %v3589_v35 = vadd.f32 %v3588_v4, %v7094_v40 }
 0x621   : > { %v3428_v6 = vpop.f32.mrf.mxu2  ;;  %v2132_v1 = vpop.f32.mrf.mxu0 }
 0x622   : > { %v3429_v26 = vadd.f32 %v3428_v6, %v2780_v0  ;;  %3871 = vst [vmem:[%s5329_s27 + $0x770] sm:$0xff] %v3589_v35  ;;  %v2781_v42 = vpop.f32.mrf.mxu1  ;;  %v2133_v9 = vadd.f32 %v6840_v13, %v2132_v1 }
 0x624   : > { %3807 = vst [vmem:[%s5329_s27 + $0x570] sm:$0xff] %v3429_v26  ;;  %v2782_v47 = vadd.f32 %v2781_v42, %v2133_v9 }
 0x627   : > { %v3590_v34 = vpop.f32.mrf.mxu3 }
 0x628   : > { %v3591_v49 = vadd.f32 %v3590_v34, %v6381_v22 }
 0x629   : > { %v3430_v27 = vpop.f32.mrf.mxu2  ;;  %v2135_v43 = vpop.f32.mrf.mxu0 }
 0x62a   : > { %v3431_v8 = vadd.f32 %v3430_v27, %v2782_v47  ;;  %3872 = vst [vmem:[%s5329_s27 + $0x778] sm:$0xff] %v3591_v49  ;;  %v2136_v33 = vadd.f32 %v6840_v13, %v2135_v43  ;;  %v2784_v3 = vpop.f32.mrf.mxu1 }
 0x62c   : > { %3808 = vst [vmem:[%s5329_s27 + $0x578] sm:$0xff] %v3431_v8  ;;  %v2785_v21 = vadd.f32 %v2784_v3, %v2136_v33 }
 0x62f   : > { %v3593_v51 = vpop.f32.mrf.mxu3 }
 0x630   : > { %v3594_v17 = vadd.f32 %v3593_v51, %v6394_v29 }
 0x631   : > { %v3433_v57 = vpop.f32.mrf.mxu2  ;;  %v2137_v52 = vpop.f32.mrf.mxu0 }
 0x632   : > { %v3434_v2 = vadd.f32 %v3433_v57, %v2785_v21  ;;  %3873 = vst [vmem:[%s5329_s27 + $0x780] sm:$0xff] %v3594_v17  ;;  %v2786_v55 = vpop.f32.mrf.mxu1  ;;  %v2138_v22 = vadd.f32 %v6840_v13, %v2137_v52 }
 0x634   : > { %3809 = vst [vmem:[%s5329_s27 + $0x580] sm:$0xff] %v3434_v2  ;;  %v2787_v41 = vadd.f32 %v2786_v55, %v2138_v22 }
 0x637   : > { %v3595_v53 = vpop.f32.mrf.mxu3 }
 0x638   : > { %v3596_v5 = vadd.f32 %v3595_v53, %v6400_v44 }
 0x639   : > { %v3435_v59 = vpop.f32.mrf.mxu2  ;;  %v2140_v15 = vpop.f32.mrf.mxu0 }
 0x63a   : > { %v3436_v56 = vadd.f32 %v3435_v59, %v2787_v41  ;;  %3874 = vst [vmem:[%s5329_s27 + $0x788] sm:$0xff] %v3596_v5  ;;  %v2141_v29 = vadd.f32 %v6840_v13, %v2140_v15  ;;  %v2789_v37 = vpop.f32.mrf.mxu1 }
 0x63c   : > { %3810 = vst [vmem:[%s5329_s27 + $0x588] sm:$0xff] %v3436_v56  ;;  %v2790_v30 = vadd.f32 %v2789_v37, %v2141_v29 }
 0x63f   : > { %v3598_v7 = vpop.f32.mrf.mxu3 }
 0x640   : > { %v3599_v28 = vadd.f32 %v3598_v7, %v6413_v36 }
 0x641   : > { %v3438_v58 = vpop.f32.mrf.mxu2  ;;  %v2142_v38 = vpop.f32.mrf.mxu0 }
 0x642   : > { %v3439_v46 = vadd.f32 %v3438_v58, %v2790_v30  ;;  %3875 = vst [vmem:[%s5329_s27 + $0x790] sm:$0xff] %v3599_v28  ;;  %v2791_v24 = vpop.f32.mrf.mxu1  ;;  %v2143_v44 = vadd.f32 %v6840_v13, %v2142_v38 }
 0x644   : > { %3811 = vst [vmem:[%s5329_s27 + $0x590] sm:$0xff] %v3439_v46  ;;  %v2792_v31 = vadd.f32 %v2791_v24, %v2143_v44 }
 0x647   : > { %v3600_v48 = vpop.f32.mrf.mxu3 }
 0x648   : > { %v3601_v50 = vadd.f32 %v3600_v48, %v6419_v11 }
 0x649   : > { %v3440_v18 = vpop.f32.mrf.mxu2  ;;  %v2145_v19 = vpop.f32.mrf.mxu0 }
 0x64a   : > { %v3441_v12 = vadd.f32 %v3440_v18, %v2792_v31  ;;  %3876 = vst [vmem:[%s5329_s27 + $0x798] sm:$0xff] %v3601_v50  ;;  %v2146_v36 = vadd.f32 %v6840_v13, %v2145_v19  ;;  %v2794_v23 = vpop.f32.mrf.mxu1 }
 0x64c   : > { %3812 = vst [vmem:[%s5329_s27 + $0x598] sm:$0xff] %v3441_v12  ;;  %v2795_v0 = vadd.f32 %v2794_v23, %v2146_v36 }
 0x64f   : > { %v3603_v39 = vpop.f32.mrf.mxu3 }
 0x650   : > { %v3604_v6 = vadd.f32 %v3603_v39, %v6432_v60 }
 0x651   : > { %v3443_v4 = vpop.f32.mrf.mxu2  ;;  %v2147_v35 = vpop.f32.mrf.mxu0 }
 0x652   : > { %v3444_v40 = vadd.f32 %v3443_v4, %v2795_v0  ;;  %3877 = vst [vmem:[%s5329_s27 + $0x7a0] sm:$0xff] %v3604_v6  ;;  %v2796_v26 = vpop.f32.mrf.mxu1  ;;  %v2148_v11 = vadd.f32 %v6840_v13, %v2147_v35 }
 0x654   : > { %3813 = vst [vmem:[%s5329_s27 + $0x5a0] sm:$0xff] %v3444_v40  ;;  %v2797_v1 = vadd.f32 %v2796_v26, %v2148_v11 }
 0x657   : > { %v3605_v42 = vpop.f32.mrf.mxu3 }
 0x658   : > { %v3606_v47 = vadd.f32 %v3605_v42, %v6438_v61 }
 0x659   : > { %v3445_v9 = vpop.f32.mrf.mxu2  ;;  %v2150_v27 = vpop.f32.mrf.mxu0 }
 0x65a   : > { %v3446_v34 = vadd.f32 %v3445_v9, %v2797_v1  ;;  %3878 = vst [vmem:[%s5329_s27 + $0x7a8] sm:$0xff] %v3606_v47  ;;  %v2151_v60 = vadd.f32 %v6840_v13, %v2150_v27  ;;  %v2799_v49 = vpop.f32.mrf.mxu1 }
 0x65c   : > { %3814 = vst [vmem:[%s5329_s27 + $0x5a8] sm:$0xff] %v3446_v34  ;;  %v2800_v8 = vadd.f32 %v2799_v49, %v2151_v60 }
 0x65f   : > { %v3608_v43 = vpop.f32.mrf.mxu3 }
 0x660   : > { %v3609_v3 = vadd.f32 %v3608_v43, %v6451_v16 }
 0x661   : > { %v3448_v33 = vpop.f32.mrf.mxu2  ;;  %v2152_v51 = vpop.f32.mrf.mxu0 }
 0x662   : > { %v3449_v21 = vadd.f32 %v3448_v33, %v2800_v8  ;;  %3879 = vst [vmem:[%s5329_s27 + $0x7b0] sm:$0xff] %v3609_v3  ;;  %v2801_v57 = vpop.f32.mrf.mxu1  ;;  %v2153_v61 = vadd.f32 %v6840_v13, %v2152_v51 }
 0x664   : > { %3815 = vst [vmem:[%s5329_s27 + $0x5b0] sm:$0xff] %v3449_v21  ;;  %v2802_v17 = vadd.f32 %v2801_v57, %v2153_v61 }
 0x667   : > { %v3610_v2 = vpop.f32.mrf.mxu3 }
 0x668   : > { %v3611_v55 = vadd.f32 %v3610_v2, %v6457_v54 }
 0x669   : > { %v3450_v52 = vpop.f32.mrf.mxu2  ;;  %v2155_v41 = vpop.f32.mrf.mxu0 }
 0x66a   : > { %v3451_v22 = vadd.f32 %v3450_v52, %v2802_v17  ;;  %3880 = vst [vmem:[%s5329_s27 + $0x7b8] sm:$0xff] %v3611_v55  ;;  %v2156_v16 = vadd.f32 %v6840_v13, %v2155_v41  ;;  %v2804_v53 = vpop.f32.mrf.mxu1 }
 0x66c   : > { %3816 = vst [vmem:[%s5329_s27 + $0x5b8] sm:$0xff] %v3451_v22  ;;  %v2805_v59 = vadd.f32 %v2804_v53, %v2156_v16 }
 0x66f   : > { %v3613_v5 = vpop.f32.mrf.mxu3 }
 0x670   : > { %v3614_v15 = vadd.f32 %v3613_v5, %v6470_v14 }
 0x671   : > { %v3453_v56 = vpop.f32.mrf.mxu2  ;;  %v2157_v37 = vpop.f32.mrf.mxu0 }
 0x672   : > { %v3454_v29 = vadd.f32 %v3453_v56, %v2805_v59  ;;  %3881 = vst [vmem:[%s5329_s27 + $0x7c0] sm:$0xff] %v3614_v15  ;;  %v2806_v30 = vpop.f32.mrf.mxu1  ;;  %v2158_v54 = vadd.f32 %v6840_v13, %v2157_v37 }
 0x674   : > { %3817 = vst [vmem:[%s5329_s27 + $0x5c0] sm:$0xff] %v3454_v29  ;;  %v2807_v7 = vadd.f32 %v2806_v30, %v2158_v54 }
 0x677   : > { %v3615_v58 = vpop.f32.mrf.mxu3 }
 0x678   : > { %v3616_v46 = vadd.f32 %v3615_v58, %v6476_v62 }
 0x679   : > { %v3455_v28 = vpop.f32.mrf.mxu2  ;;  %v2160_v24 = vpop.f32.mrf.mxu0 }
 0x67a   : > { %v3456_v38 = vadd.f32 %v3455_v28, %v2807_v7  ;;  %3882 = vst [vmem:[%s5329_s27 + $0x7c8] sm:$0xff] %v3616_v46  ;;  %v2161_v14 = vadd.f32 %v6840_v13, %v2160_v24  ;;  %v2809_v44 = vpop.f32.mrf.mxu1 }
 0x67c   : > { %3818 = vst [vmem:[%s5329_s27 + $0x5c8] sm:$0xff] %v3456_v38  ;;  %v2810_v31 = vadd.f32 %v2809_v44, %v2161_v14 }
 0x67f   : > { %v3618_v48 = vpop.f32.mrf.mxu3 }
 0x680   : > { %v3619_v50 = vadd.f32 %v3618_v48, %v6489_v63 }
 0x681   : > { %v3458_v18 = vpop.f32.mrf.mxu2  ;;  %v2162_v19 = vpop.f32.mrf.mxu0 }
 0x682   : > { %v3459_v12 = vadd.f32 %v3458_v18, %v2810_v31  ;;  %3883 = vst [vmem:[%s5329_s27 + $0x7d0] sm:$0xff] %v3619_v50  ;;  %v2811_v36 = vpop.f32.mrf.mxu1  ;;  %v2163_v62 = vadd.f32 %v6840_v13, %v2162_v19 }
 0x684   : > { %3819 = vst [vmem:[%s5329_s27 + $0x5d0] sm:$0xff] %v3459_v12  ;;  %v2812_v23 = vadd.f32 %v2811_v36, %v2163_v62 }
 0x687   : > { %v3620_v0 = vpop.f32.mrf.mxu3 }
 0x688   : > { %v3621_v4 = vadd.f32 %v3620_v0, %v6495_v25 }
 0x689   : > { %v3460_v39 = vpop.f32.mrf.mxu2  ;;  %v2165_v40 = vpop.f32.mrf.mxu0 }
 0x68a   : > { %v3461_v6 = vadd.f32 %v3460_v39, %v2812_v23  ;;  %3884 = vst [vmem:[%s5329_s27 + $0x7d8] sm:$0xff] %v3621_v4  ;;  %v2166_v63 = vadd.f32 %v6840_v13, %v2165_v40  ;;  %v2814_v35 = vpop.f32.mrf.mxu1 }
 0x68c   : > { %3820 = vst [vmem:[%s5329_s27 + $0x5d8] sm:$0xff] %v3461_v6  ;;  %v2815_v26 = vadd.f32 %v2814_v35, %v2166_v63 }
 0x68f   : > { %v3623_v11 = vpop.f32.mrf.mxu3 }
 0x690   : > { %v3624_v42 = vadd.f32 %v3623_v11, %v6508_v45 }
 0x691   : > { %v3463_v1 = vpop.f32.mrf.mxu2  ;;  %v2167_v47 = vpop.f32.mrf.mxu0 }
 0x692   : > { %v3464_v9 = vadd.f32 %v3463_v1, %v2815_v26  ;;  %3885 = vst [vmem:[%s5329_s27 + $0x7e0] sm:$0xff] %v3624_v42  ;;  %v2816_v34 = vpop.f32.mrf.mxu1  ;;  %v2168_v25 = vadd.f32 %v6840_v13, %v2167_v47 }
 0x694   : > { %3821 = vst [vmem:[%s5329_s27 + $0x5e0] sm:$0xff] %v3464_v9  ;;  %v2817_v27 = vadd.f32 %v2816_v34, %v2168_v25 }
 0x697   : > { %v3625_v60 = vpop.f32.mrf.mxu3 }
 0x698   : > { %v3626_v8 = vadd.f32 %v3625_v60, %v6514_v32 }
 0x699   : > { %v3465_v49 = vpop.f32.mrf.mxu2  ;;  %v2170_v33 = vpop.f32.mrf.mxu0 }
 0x69a   : > { %v3466_v43 = vadd.f32 %v3465_v49, %v2817_v27  ;;  %3886 = vst [vmem:[%s5329_s27 + $0x7e8] sm:$0xff] %v3626_v8  ;;  %v2171_v3 = vadd.f32 %v6840_v13, %v2170_v33  ;;  %v2819_v45 = vpop.f32.mrf.mxu1 }
 0x69c   : > { %3822 = vst [vmem:[%s5329_s27 + $0x5e8] sm:$0xff] %v3466_v43  ;;  %v2820_v21 = vadd.f32 %v2819_v45, %v2171_v3 }
 0x69f   : > { %v3628_v51 = vpop.f32.mrf.mxu3 }
 0x6a0   : > { %v3629_v61 = vadd.f32 %v3628_v51, %v6527_v20 }
 0x6a1   : > { %v3468_v57 = vpop.f32.mrf.mxu2  ;;  %v2172_v2 = vpop.f32.mrf.mxu0 }
 0x6a2   : > { %v3469_v17 = vadd.f32 %v3468_v57, %v2820_v21  ;;  %3887 = vst [vmem:[%s5329_s27 + $0x7f0] sm:$0xff] %v3629_v61  ;;  %v2173_v32 = vadd.f32 %v6840_v13, %v2172_v2  ;;  %v2821_v52 = vpop.f32.mrf.mxu1 }
 0x6a4   : > { %3823 = vst [vmem:[%s5329_s27 + $0x5f0] sm:$0xff] %v3469_v17  ;;  %v2822_v55 = vadd.f32 %v2821_v52, %v2173_v32 }
 0x6a7   : > { %v3630_v22 = vpop.f32.mrf.mxu3 }
 0x6a8   : > { %v3631_v16 = vadd.f32 %v3630_v22, %v6533_v10 }
 0x6a9   : > { %v3470_v41 = vpop.f32.mrf.mxu2 }
 0x6aa   : > { %v3471_v53 = vadd.f32 %v3470_v41, %v2822_v55  ;;  %3888 = vst [vmem:[%s5329_s27 + $0x7f8] sm:$0xff] %v3631_v16 }
 0x6ac   : > { %3824 = vst [vmem:[%s5329_s27 + $0x5f8] sm:$0xff] %v3471_v53 }
 0x6ad PF: > { %s13_s14 = sadd.s32 1, %s5079_s14   ;;  %s7095_s12 = smov %s5075_s13 }
 0x6ae   : > { %p10_p5 = scmp.ge.s32.totalorder %s13_s14, 4   ;;  %s7096_s13 = smov %s7098_s15 }
 0x6b0   :  { %12 = sbr.rel (!%p10_p5) target bundleno = 2 (0x2), region = 62 }

</bundles_post_ra>
